<compile_context>
chip_gen: v6e
topology: v6e:2x2x1
jax: 0.10.0
libtpu: 0.0.40
codegen_flags: <defaults>
</compile_context>

<pallas_src>
import functools

import jax
import jax.numpy as jnp
from jax.experimental import pallas as pl
from jax.experimental.pallas import tpu as pltpu


# ----------------------------------------------------------------------------
# In-kernel helper: 3x3 conv from an in-VMEM zero-padded buffer + BN stats
# ----------------------------------------------------------------------------
def _conv3x3_from_padded(xpad_ref, w_ref, y_ref, sum_ref, ssq_ref, *, Cin, H, W):
    """xpad_ref: (Cin, H+2, W+2) VMEM scratch (zero halo already in place).
    w_ref: (Cout, 9*Cin) weight slab, tap-major columns ((ky*3+kx)*Cin + c).
    Writes y_ref[0] = (Cout, H*W) plus per-channel sum / sum-of-squares."""
    taps = [xpad_ref[:, ky:ky + H, kx:kx + W]
            for ky in range(3) for kx in range(3)]               # 9 x (Cin, H, W)
    cols = jnp.concatenate(taps, axis=0).reshape(9 * Cin, H * W)  # (9*Cin, H*W)
    y = jnp.dot(w_ref[...], cols, preferred_element_type=jnp.float32)  # (Cout, H*W)
    y_ref[0] = y
    sum_ref[0] = jnp.sum(y, axis=1, keepdims=True)                # (Cout, 1)
    ssq_ref[0] = jnp.sum(y * y, axis=1, keepdims=True)            # (Cout, 1)


# ----------------------------------------------------------------------------
# Kernels
# ----------------------------------------------------------------------------
def _up_conv1_kernel(x1_ref, x2_ref, mh_ref, mwt_ref, w_ref,
                     y_ref, sum_ref, ssq_ref, xpad_ref,
                     *, C1, C2, H, W, h, w):
    """Fused: bilinear-x2 upsample(x1) + F.pad + cat([x2, x1]) + conv3x3 + BN stats."""
    Cin = C1 + C2
    # Zero the halo buffer (border must stay zero; interior is fully overwritten).
    xpad_ref[...] = jnp.zeros(xpad_ref.shape, xpad_ref.dtype)

    # Skip connection first: torch.cat([x2, x1], dim=1).
    xpad_ref[0:C2, 1:1 + H, 1:1 + W] = x2_ref[0]

    # Upsample + pad of x1 as two small matmuls against precomputed
    # (pad-embedded) interpolation matrices:  up[c] = Mh @ x1[c] @ Mw^T.
    x1 = x1_ref[0]                                                # (C1, h, w)
    t = jnp.dot(x1.reshape(C1 * h, w), mwt_ref[...],
                preferred_element_type=jnp.float32)               # (C1*h, W)
    t = t.reshape(C1, h, W)
    mh_b = jnp.broadcast_to(mh_ref[...], (C1, H, h))
    up = jnp.einsum("cHh,chW->cHW", mh_b, t,
                    preferred_element_type=jnp.float32)           # (C1, H, W)
    xpad_ref[C2:Cin, 1:1 + H, 1:1 + W] = up

    _conv3x3_from_padded(xpad_ref, w_ref, y_ref, sum_ref, ssq_ref,
                         Cin=Cin, H=H, W=W)


def _bn_relu_conv2_kernel(y1_ref, scale_ref, shift_ref, w_ref,
                          y_ref, sum_ref, ssq_ref, apad_ref,
                          *, Cmid, H, W):
    """Fused: BN1 affine + ReLU prologue, then conv3x3 + BN2 stats."""
    a = jnp.maximum(y1_ref[0] * scale_ref[...] + shift_ref[...], 0.0)  # (Cmid, H*W)
    apad_ref[...] = jnp.zeros(apad_ref.shape, apad_ref.dtype)
    apad_ref[:, 1:1 + H, 1:1 + W] = a.reshape(Cmid, H, W)
    _conv3x3_from_padded(apad_ref, w_ref, y_ref, sum_ref, ssq_ref,
                         Cin=Cmid, H=H, W=W)


def _bn_relu_kernel(y_ref, scale_ref, shift_ref, o_ref):
    """Final BN affine + ReLU epilogue (lane-dense: last dim is H*W)."""
    o_ref[0] = jnp.maximum(y_ref[0] * scale_ref[...] + shift_ref[...], 0.0)


# ----------------------------------------------------------------------------
# Host-side helpers (tiny, C-sized / shape-only work)
# ----------------------------------------------------------------------------
def _interp_matrix(out_size, in_size):
    """(out_size, in_size) 1-D bilinear interpolation matrix, align_corners=True."""
    if in_size == 1:
        return jnp.ones((out_size, 1), jnp.float32)
    s = jnp.arange(out_size, dtype=jnp.float32) * (in_size - 1) / (out_size - 1)
    i0 = jnp.floor(s).astype(jnp.int32)
    i1 = jnp.minimum(i0 + 1, in_size - 1)
    frac = s - i0.astype(jnp.float32)
    rows = jnp.arange(out_size)
    m = jnp.zeros((out_size, in_size), jnp.float32)
    m = m.at[rows, i0].add(1.0 - frac)
    m = m.at[rows, i1].add(frac)
    return m


def _fold_bn(sums, sumsqs, count, gamma, beta, eps=1e-5):
    """Training-mode BatchNorm (biased variance over N,H,W) folded to scale/shift."""
    total = jnp.sum(sums, axis=(0, 2))          # (C,)
    total_sq = jnp.sum(sumsqs, axis=(0, 2))     # (C,)
    mean = total / count
    var = jnp.maximum(total_sq / count - mean * mean, 0.0)
    scale = gamma * jax.lax.rsqrt(var + eps)
    shift = beta - mean * scale
    return scale.astype(jnp.float32), shift.astype(jnp.float32)


# ----------------------------------------------------------------------------
# Forward of Up(in_channels, out_channels, bilinear=True)
# ----------------------------------------------------------------------------
def up_forward(x1_nchw, x2_nchw, params):
    x1 = x1_nchw.astype(jnp.float32)
    x2 = x2_nchw.astype(jnp.float32)
    N, C1, h, w = x1.shape
    N2, C2, H, W = x2.shape
    assert N == N2
    Cin = C1 + C2
    HW = H * W

    # PyTorch OIHW conv weights -> tap-major 2D slabs (Cout, 9*Cin).
    w1 = params["w1"].astype(jnp.float32)       # (Cmid, Cin, 3, 3)
    w2 = params["w2"].astype(jnp.float32)       # (Cout, Cmid, 3, 3)
    Cmid, Cout = w1.shape[0], w2.shape[0]
    assert w1.shape[1] == Cin and w2.shape[1] == Cmid
    w1s = jnp.transpose(w1, (0, 2, 3, 1)).reshape(Cmid, 9 * Cin)
    w2s = jnp.transpose(w2, (0, 2, 3, 1)).reshape(Cout, 9 * Cmid)

    # Bilinear x2 (align_corners=True) + F.pad folded into interpolation
    # matrices sized to x2's spatial dims (zero rows/cols = the pad).
    Hup, Wup = 2 * h, 2 * w
    diffY, diffX = H - Hup, W - Wup
    assert diffY >= 0 and diffX >= 0, "negative pad (crop) not supported"
    py0, px0 = diffY // 2, diffX // 2
    mh = jnp.zeros((H, h), jnp.float32).at[py0:py0 + Hup, :].set(_interp_matrix(Hup, h))
    mwt = jnp.zeros((w, W), jnp.float32).at[:, px0:px0 + Wup].set(_interp_matrix(Wup, w).T)

    # ---- conv1: fused upsample/pad/concat + 3x3 conv + BN1 stats ----------
    k1 = functools.partial(_up_conv1_kernel, C1=C1, C2=C2, H=H, W=W, h=h, w=w)
    y1, s1, ss1 = pl.pallas_call(
        k1,
        out_shape=(
            jax.ShapeDtypeStruct((N, Cmid, HW), jnp.float32),
            jax.ShapeDtypeStruct((N, Cmid, 1), jnp.float32),
            jax.ShapeDtypeStruct((N, Cmid, 1), jnp.float32),
        ),
        grid=(N,),
        in_specs=[
            pl.BlockSpec((1, C1, h, w), lambda n: (n, 0, 0, 0)),
            pl.BlockSpec((1, C2, H, W), lambda n: (n, 0, 0, 0)),
            pl.BlockSpec((H, h), lambda n: (0, 0)),
            pl.BlockSpec((w, W), lambda n: (0, 0)),
            pl.BlockSpec((Cmid, 9 * Cin), lambda n: (0, 0)),
        ],
        out_specs=(
            pl.BlockSpec((1, Cmid, HW), lambda n: (n, 0, 0)),
            pl.BlockSpec((1, Cmid, 1), lambda n: (n, 0, 0)),
            pl.BlockSpec((1, Cmid, 1), lambda n: (n, 0, 0)),
        ),
        scratch_shapes=[pltpu.VMEM((Cin, H + 2, W + 2), jnp.float32)],
        compiler_params=pltpu.CompilerParams(dimension_semantics=("parallel",)),
    )(x1, x2, mh, mwt, w1s)

    scale1, shift1 = _fold_bn(s1, ss1, N * HW, params["gamma1"], params["beta1"])

    # ---- conv2: BN1 affine + ReLU prologue + 3x3 conv + BN2 stats ---------
    k2 = functools.partial(_bn_relu_conv2_kernel, Cmid=Cmid, H=H, W=W)
    y2, s2, ss2 = pl.pallas_call(
        k2,
        out_shape=(
            jax.ShapeDtypeStruct((N, Cout, HW), jnp.float32),
            jax.ShapeDtypeStruct((N, Cout, 1), jnp.float32),
            jax.ShapeDtypeStruct((N, Cout, 1), jnp.float32),
        ),
        grid=(N,),
        in_specs=[
            pl.BlockSpec((1, Cmid, HW), lambda n: (n, 0, 0)),
            pl.BlockSpec((Cmid, 1), lambda n: (0, 0)),
            pl.BlockSpec((Cmid, 1), lambda n: (0, 0)),
            pl.BlockSpec((Cout, 9 * Cmid), lambda n: (0, 0)),
        ],
        out_specs=(
            pl.BlockSpec((1, Cout, HW), lambda n: (n, 0, 0)),
            pl.BlockSpec((1, Cout, 1), lambda n: (n, 0, 0)),
            pl.BlockSpec((1, Cout, 1), lambda n: (n, 0, 0)),
        ),
        scratch_shapes=[pltpu.VMEM((Cmid, H + 2, W + 2), jnp.float32)],
        compiler_params=pltpu.CompilerParams(dimension_semantics=("parallel",)),
    )(y1, scale1[:, None], shift1[:, None], w2s)

    scale2, shift2 = _fold_bn(s2, ss2, N * HW, params["gamma2"], params["beta2"])

    # ---- final BN2 affine + ReLU (lane-dense epilogue) --------------------
    out = pl.pallas_call(
        _bn_relu_kernel,
        out_shape=jax.ShapeDtypeStruct((N, Cout, HW), jnp.float32),
        grid=(N,),
        in_specs=[
            pl.BlockSpec((1, Cout, HW), lambda n: (n, 0, 0)),
            pl.BlockSpec((Cout, 1), lambda n: (0, 0)),
            pl.BlockSpec((Cout, 1), lambda n: (0, 0)),
        ],
        out_specs=pl.BlockSpec((1, Cout, HW), lambda n: (n, 0, 0)),
        compiler_params=pltpu.CompilerParams(dimension_semantics=("parallel",)),
    )(y2, scale2[:, None], shift2[:, None])

    # (N, Cout, H*W) -> NCHW: free row-major reshape, no transpose needed.
    return out.reshape(N, Cout, H, W)


# ----------------------------------------------------------------------------
# Deterministic parameters + example run
# ----------------------------------------------------------------------------
if __name__ == "__main__":
    key = jax.random.PRNGKey(0)
    kx1, kx2, kw1, kw2 = jax.random.split(key, 4)

    in_channels, out_channels = 8, 4
    mid_channels = in_channels // 2   # bilinear=True -> DoubleConv(in, out, in//2)
    N = 2
    # UNet convention: x1 (coarse) and x2 (skip) each carry in_channels // 2
    # channels so that cat([x2, up(x1)]) has in_channels channels.
    x1 = jax.random.normal(kx1, (N, in_channels // 2, 8, 8), jnp.float32)     # NCHW
    x2 = jax.random.normal(kx2, (N, in_channels // 2, 16, 16), jnp.float32)   # NCHW

    params = {
        # PyTorch OIHW conv weights (bias=False); BatchNorm default weight=1, bias=0.
        "w1": jax.random.normal(kw1, (mid_channels, in_channels, 3, 3), jnp.float32) * 0.1,
        "w2": jax.random.normal(kw2, (out_channels, mid_channels, 3, 3), jnp.float32) * 0.1,
        "gamma1": jnp.ones((mid_channels,), jnp.float32),
        "beta1": jnp.zeros((mid_channels,), jnp.float32),
        "gamma2": jnp.ones((out_channels,), jnp.float32),
        "beta2": jnp.zeros((out_channels,), jnp.float32),
    }

    out = jax.jit(up_forward)(x1, x2, params)
    jax.block_until_ready(out)

    assert out.shape == (N, out_channels, 16, 16), out.shape
    assert bool(jnp.all(jnp.isfinite(out)))
    print("KERNEL_OK")
</pallas_src>

<mosaic_0001>
module attributes {stable_mosaic.version = 11 : i64} {
  func.func private @main(%arg0: i32) attributes {dimension_semantics = [#tpu.dimension_semantics<core_parallel>], iteration_bounds = array<i64: 2>, tpu.core_type = #tpu.core_type<sc_scalar_subcore>, window_params = []} {
    return
  }
}

module attributes {stable_mosaic.version = 11 : i64} {
  func.func private @main(%arg0: i32) attributes {dimension_semantics = [#tpu.dimension_semantics<core_parallel>], iteration_bounds = array<i64: 2>, tpu.core_type = #tpu.core_type<sc_scalar_subcore>, window_params = []} {
    return
  }
}

module attributes {stable_mosaic.version = 11 : i64} {
  func.func @_bn_relu_kernel(%arg0: i32, %arg1: memref<1x4x256xf32, #tpu.memory_space<vmem>>, %arg2: memref<4x1xf32, #tpu.memory_space<vmem>>, %arg3: memref<4x1xf32, #tpu.memory_space<vmem>>, %arg4: memref<1x4x256xf32, #tpu.memory_space<vmem>>) attributes {dimension_semantics = [#tpu.dimension_semantics<parallel>], iteration_bounds = array<i64: 2>, scalar_prefetch = 0 : i64, scratch_operands = 0 : i64, tpu.core_type = #tpu.core_type<tc>, window_params = [{transform_indices = @transform_0, window_bounds = array<i64: 1, 4, 256>}, {pipeline_mode = #tpu.pipeline_mode<synchronous>, transform_indices = @transform_1, window_bounds = array<i64: 4, 1>}, {pipeline_mode = #tpu.pipeline_mode<synchronous>, transform_indices = @transform_2, window_bounds = array<i64: 4, 1>}, {transform_indices = @transform_3, window_bounds = array<i64: 1, 4, 256>}]} {
    %c0 = arith.constant 0 : index
    %c0_0 = arith.constant 0 : index
    %c0_1 = arith.constant 0 : index
    %0 = vector.load %arg1[%c0, %c0_0, %c0_1] : memref<1x4x256xf32, #tpu.memory_space<vmem>>, vector<1x4x256xf32>
    %1 = vector.shape_cast %0 : vector<1x4x256xf32> to vector<4x256xf32>
    %c0_2 = arith.constant 0 : index
    %c0_3 = arith.constant 0 : index
    %2 = vector.load %arg2[%c0_2, %c0_3] : memref<4x1xf32, #tpu.memory_space<vmem>>, vector<4x1xf32>
    %3 = vector.broadcast %2 : vector<4x1xf32> to vector<4x256xf32>
    %4 = arith.mulf %1, %3 : vector<4x256xf32>
    %c0_4 = arith.constant 0 : index
    %c0_5 = arith.constant 0 : index
    %5 = vector.load %arg3[%c0_4, %c0_5] : memref<4x1xf32, #tpu.memory_space<vmem>>, vector<4x1xf32>
    %6 = vector.broadcast %5 : vector<4x1xf32> to vector<4x256xf32>
    %7 = arith.addf %4, %6 : vector<4x256xf32>
    %cst = arith.constant 0.000000e+00 : f32
    %8 = vector.broadcast %cst : f32 to vector<4x256xf32>
    %9 = arith.maximumf %7, %8 : vector<4x256xf32>
    %c0_6 = arith.constant 0 : index
    %c0_7 = arith.constant 0 : index
    %c0_8 = arith.constant 0 : index
    %10 = vector.load %arg4[%c0_6, %c0_7, %c0_8] : memref<1x4x256xf32, #tpu.memory_space<vmem>>, vector<1x4x256xf32>
    %11 = vector.shape_cast %10 : vector<1x4x256xf32> to vector<4x256xf32>
    %12 = vector.shape_cast %9 : vector<4x256xf32> to vector<1x4x256xf32>
    tpu.vector_store %arg4[%c0_6, %c0_7, %c0_8], %12 {strides = array<i32>} : memref<1x4x256xf32, #tpu.memory_space<vmem>>, vector<1x4x256xf32>,
    return
  }
  func.func @transform_0(%arg0: i32) -> (i32, i32, i32) {
    %c0_i32 = arith.constant 0 : i32
    %c0_i32_0 = arith.constant 0 : i32
    %c0_i32_1 = arith.constant 0 : i32
    return %arg0, %c0_i32, %c0_i32_0 : i32, i32, i32
  }
  func.func @transform_1(%arg0: i32) -> (i32, i32) {
    %c0_i32 = arith.constant 0 : i32
    %c0_i32_0 = arith.constant 0 : i32
    %c0_i32_1 = arith.constant 0 : i32
    return %c0_i32, %c0_i32_0 : i32, i32
  }
  func.func @transform_2(%arg0: i32) -> (i32, i32) {
    %c0_i32 = arith.constant 0 : i32
    %c0_i32_0 = arith.constant 0 : i32
    %c0_i32_1 = arith.constant 0 : i32
    return %c0_i32, %c0_i32_0 : i32, i32
  }
  func.func @transform_3(%arg0: i32) -> (i32, i32, i32) {
    %c0_i32 = arith.constant 0 : i32
    %c0_i32_0 = arith.constant 0 : i32
    %c0_i32_1 = arith.constant 0 : i32
    return %arg0, %c0_i32, %c0_i32_0 : i32, i32, i32
  }
}

module attributes {stable_mosaic.version = 11 : i64} {
  func.func @_bn_relu_conv2_kernel(%arg0: i32, %arg1: memref<1x4x256xf32, #tpu.memory_space<vmem>>, %arg2: memref<4x1xf32, #tpu.memory_space<vmem>>, %arg3: memref<4x1xf32, #tpu.memory_space<vmem>>, %arg4: memref<4x36xf32, #tpu.memory_space<vmem>>, %arg5: memref<1x4x256xf32, #tpu.memory_space<vmem>>, %arg6: memref<1x4x1xf32, #tpu.memory_space<vmem>>, %arg7: memref<1x4x1xf32, #tpu.memory_space<vmem>>, %arg8: memref<4x18x18xf32, #tpu.memory_space<vmem>>) attributes {dimension_semantics = [#tpu.dimension_semantics<parallel>], iteration_bounds = array<i64: 2>, scalar_prefetch = 0 : i64, scratch_operands = 1 : i64, tpu.core_type = #tpu.core_type<tc>, window_params = [{transform_indices = @transform_0, window_bounds = array<i64: 1, 4, 256>}, {pipeline_mode = #tpu.pipeline_mode<synchronous>, transform_indices = @transform_1, window_bounds = array<i64: 4, 1>}, {pipeline_mode = #tpu.pipeline_mode<synchronous>, transform_indices = @transform_2, window_bounds = array<i64: 4, 1>}, {pipeline_mode = #tpu.pipeline_mode<synchronous>, transform_indices = @transform_3, window_bounds = array<i64: 4, 36>}, {transform_indices = @transform_4, window_bounds = array<i64: 1, 4, 256>}, {transform_indices = @transform_5, window_bounds = array<i64: 1, 4, 1>}, {transform_indices = @transform_6, window_bounds = array<i64: 1, 4, 1>}]} {
    %c0 = arith.constant 0 : index
    %c0_0 = arith.constant 0 : index
    %c0_1 = arith.constant 0 : index
    %0 = vector.load %arg1[%c0, %c0_0, %c0_1] : memref<1x4x256xf32, #tpu.memory_space<vmem>>, vector<1x4x256xf32>
    %1 = vector.shape_cast %0 : vector<1x4x256xf32> to vector<4x256xf32>
    %c0_2 = arith.constant 0 : index
    %c0_3 = arith.constant 0 : index
    %2 = vector.load %arg2[%c0_2, %c0_3] : memref<4x1xf32, #tpu.memory_space<vmem>>, vector<4x1xf32>
    %3 = vector.broadcast %2 : vector<4x1xf32> to vector<4x256xf32>
    %4 = arith.mulf %1, %3 : vector<4x256xf32>
    %c0_4 = arith.constant 0 : index
    %c0_5 = arith.constant 0 : index
    %5 = vector.load %arg3[%c0_4, %c0_5] : memref<4x1xf32, #tpu.memory_space<vmem>>, vector<4x1xf32>
    %6 = vector.broadcast %5 : vector<4x1xf32> to vector<4x256xf32>
    %7 = arith.addf %4, %6 : vector<4x256xf32>
    %cst = arith.constant 0.000000e+00 : f32
    %8 = vector.broadcast %cst : f32 to vector<4x256xf32>
    %9 = arith.maximumf %7, %8 : vector<4x256xf32>
    %cst_6 = arith.constant 0.000000e+00 : f32
    %10 = vector.broadcast %cst_6 : f32 to vector<4x18x18xf32>
    %c0_7 = arith.constant 0 : index
    %c0_8 = arith.constant 0 : index
    %c0_9 = arith.constant 0 : index
    %11 = vector.load %arg8[%c0_7, %c0_8, %c0_9] : memref<4x18x18xf32, #tpu.memory_space<vmem>>, vector<4x18x18xf32>
    tpu.vector_store %arg8[%c0_7, %c0_8, %c0_9], %10 {strides = array<i32>} : memref<4x18x18xf32, #tpu.memory_space<vmem>>, vector<4x18x18xf32>,
    %12 = vector.shape_cast %9 : vector<4x256xf32> to vector<4x16x16xf32>
    %c0_10 = arith.constant 0 : index
    %c1 = arith.constant 1 : index
    %c1_11 = arith.constant 1 : index
    %13 = vector.load %arg8[%c0_10, %c1, %c1_11] : memref<4x18x18xf32, #tpu.memory_space<vmem>>, vector<4x16x16xf32>
    tpu.vector_store %arg8[%c0_10, %c1, %c1_11], %12 {strides = array<i32>} : memref<4x18x18xf32, #tpu.memory_space<vmem>>, vector<4x16x16xf32>,
    %c0_12 = arith.constant 0 : index
    %c0_13 = arith.constant 0 : index
    %c0_14 = arith.constant 0 : index
    %14 = vector.load %arg8[%c0_12, %c0_13, %c0_14] : memref<4x18x18xf32, #tpu.memory_space<vmem>>, vector<4x16x16xf32>
    %c0_15 = arith.constant 0 : index
    %c0_16 = arith.constant 0 : index
    %c1_17 = arith.constant 1 : index
    %15 = vector.load %arg8[%c0_15, %c0_16, %c1_17] : memref<4x18x18xf32, #tpu.memory_space<vmem>>, vector<4x16x16xf32>
    %c0_18 = arith.constant 0 : index
    %c0_19 = arith.constant 0 : index
    %c2 = arith.constant 2 : index
    %16 = vector.load %arg8[%c0_18, %c0_19, %c2] : memref<4x18x18xf32, #tpu.memory_space<vmem>>, vector<4x16x16xf32>
    %c0_20 = arith.constant 0 : index
    %c1_21 = arith.constant 1 : index
    %c0_22 = arith.constant 0 : index
    %17 = vector.load %arg8[%c0_20, %c1_21, %c0_22] : memref<4x18x18xf32, #tpu.memory_space<vmem>>, vector<4x16x16xf32>
    %c0_23 = arith.constant 0 : index
    %c1_24 = arith.constant 1 : index
    %c1_25 = arith.constant 1 : index
    %18 = vector.load %arg8[%c0_23, %c1_24, %c1_25] : memref<4x18x18xf32, #tpu.memory_space<vmem>>, vector<4x16x16xf32>
    %c0_26 = arith.constant 0 : index
    %c1_27 = arith.constant 1 : index
    %c2_28 = arith.constant 2 : index
    %19 = vector.load %arg8[%c0_26, %c1_27, %c2_28] : memref<4x18x18xf32, #tpu.memory_space<vmem>>, vector<4x16x16xf32>
    %c0_29 = arith.constant 0 : index
    %c2_30 = arith.constant 2 : index
    %c0_31 = arith.constant 0 : index
    %20 = vector.load %arg8[%c0_29, %c2_30, %c0_31] : memref<4x18x18xf32, #tpu.memory_space<vmem>>, vector<4x16x16xf32>
    %c0_32 = arith.constant 0 : index
    %c2_33 = arith.constant 2 : index
    %c1_34 = arith.constant 1 : index
    %21 = vector.load %arg8[%c0_32, %c2_33, %c1_34] : memref<4x18x18xf32, #tpu.memory_space<vmem>>, vector<4x16x16xf32>
    %c0_35 = arith.constant 0 : index
    %c2_36 = arith.constant 2 : index
    %c2_37 = arith.constant 2 : index
    %22 = vector.load %arg8[%c0_35, %c2_36, %c2_37] : memref<4x18x18xf32, #tpu.memory_space<vmem>>, vector<4x16x16xf32>
    %23 = tpu.concatenate %14, %15, %16, %17, %18, %19, %20, %21, %22 in 0 : vector<4x16x16xf32>, vector<4x16x16xf32>, vector<4x16x16xf32>, vector<4x16x16xf32>, vector<4x16x16xf32>, vector<4x16x16xf32>, vector<4x16x16xf32>, vector<4x16x16xf32>, vector<4x16x16xf32> -> vector<36x16x16xf32>
    %24 = vector.shape_cast %23 : vector<36x16x16xf32> to vector<36x256xf32>
    %c0_38 = arith.constant 0 : index
    %c0_39 = arith.constant 0 : index
    %25 = vector.load %arg4[%c0_38, %c0_39] : memref<4x36xf32, #tpu.memory_space<vmem>>, vector<4x36xf32>
    %cst_40 = arith.constant dense<0.000000e+00> : vector<4x256xf32>
    %26 = tpu.matmul %25, %24, %cst_40 {dimension_numbers = #tpu.dot_dimension_numbers<[1], [0], [0], [1], [0, 0, 1, 1], [], []>} : vector<4x36xf32>, vector<36x256xf32>, vector<4x256xf32> -> vector<4x256xf32>
    %c0_41 = arith.constant 0 : index
    %c0_42 = arith.constant 0 : index
    %c0_43 = arith.constant 0 : index
    %27 = vector.load %arg5[%c0_41, %c0_42, %c0_43] : memref<1x4x256xf32, #tpu.memory_space<vmem>>, vector<1x4x256xf32>
    %28 = vector.shape_cast %27 : vector<1x4x256xf32> to vector<4x256xf32>
    %29 = vector.shape_cast %26 : vector<4x256xf32> to vector<1x4x256xf32>
    tpu.vector_store %arg5[%c0_41, %c0_42, %c0_43], %29 {strides = array<i32>} : memref<1x4x256xf32, #tpu.memory_space<vmem>>, vector<1x4x256xf32>,
    %cst_44 = arith.constant dense<0.000000e+00> : vector<4xf32>
    %30 = vector.multi_reduction <add>, %26, %cst_44 [1] : vector<4x256xf32> to vector<4xf32>
    %31 = vector.shape_cast %30 : vector<4xf32> to vector<4x1xf32>
    %c0_45 = arith.constant 0 : index
    %c0_46 = arith.constant 0 : index
    %c0_47 = arith.constant 0 : index
    %32 = vector.load %arg6[%c0_45, %c0_46, %c0_47] : memref<1x4x1xf32, #tpu.memory_space<vmem>>, vector<1x4x1xf32>
    %33 = vector.shape_cast %32 : vector<1x4x1xf32> to vector<4x1xf32>
    %34 = vector.shape_cast %31 : vector<4x1xf32> to vector<1x4x1xf32>
    tpu.vector_store %arg6[%c0_45, %c0_46, %c0_47], %34 {strides = array<i32>} : memref<1x4x1xf32, #tpu.memory_space<vmem>>, vector<1x4x1xf32>,
    %35 = arith.mulf %26, %26 : vector<4x256xf32>
    %cst_48 = arith.constant dense<0.000000e+00> : vector<4xf32>
    %36 = vector.multi_reduction <add>, %35, %cst_48 [1] : vector<4x256xf32> to vector<4xf32>
    %37 = vector.shape_cast %36 : vector<4xf32> to vector<4x1xf32>
    %c0_49 = arith.constant 0 : index
    %c0_50 = arith.constant 0 : index
    %c0_51 = arith.constant 0 : index
    %38 = vector.load %arg7[%c0_49, %c0_50, %c0_51] : memref<1x4x1xf32, #tpu.memory_space<vmem>>, vector<1x4x1xf32>
    %39 = vector.shape_cast %38 : vector<1x4x1xf32> to vector<4x1xf32>
    %40 = vector.shape_cast %37 : vector<4x1xf32> to vector<1x4x1xf32>
    tpu.vector_store %arg7[%c0_49, %c0_50, %c0_51], %40 {strides = array<i32>} : memref<1x4x1xf32, #tpu.memory_space<vmem>>, vector<1x4x1xf32>,
    return
  }
  func.func @transform_0(%arg0: i32) -> (i32, i32, i32) {
    %c0_i32 = arith.constant 0 : i32
    %c0_i32_0 = arith.constant 0 : i32
    %c0_i32_1 = arith.constant 0 : i32
    return %arg0, %c0_i32, %c0_i32_0 : i32, i32, i32
  }
  func.func @transform_1(%arg0: i32) -> (i32, i32) {
    %c0_i32 = arith.constant 0 : i32
    %c0_i32_0 = arith.constant 0 : i32
    %c0_i32_1 = arith.constant 0 : i32
    return %c0_i32, %c0_i32_0 : i32, i32
  }
  func.func @transform_2(%arg0: i32) -> (i32, i32) {
    %c0_i32 = arith.constant 0 : i32
    %c0_i32_0 = arith.constant 0 : i32
    %c0_i32_1 = arith.constant 0 : i32
    return %c0_i32, %c0_i32_0 : i32, i32
  }
  func.func @transform_3(%arg0: i32) -> (i32, i32) {
    %c0_i32 = arith.constant 0 : i32
    %c0_i32_0 = arith.constant 0 : i32
    %c0_i32_1 = arith.constant 0 : i32
    return %c0_i32, %c0_i32_0 : i32, i32
  }
  func.func @transform_4(%arg0: i32) -> (i32, i32, i32) {
    %c0_i32 = arith.constant 0 : i32
    %c0_i32_0 = arith.constant 0 : i32
    %c0_i32_1 = arith.constant 0 : i32
    return %arg0, %c0_i32, %c0_i32_0 : i32, i32, i32
  }
  func.func @transform_5(%arg0: i32) -> (i32, i32, i32) {
    %c0_i32 = arith.constant 0 : i32
    %c0_i32_0 = arith.constant 0 : i32
    %c0_i32_1 = arith.constant 0 : i32
    return %arg0, %c0_i32, %c0_i32_0 : i32, i32, i32
  }
  func.func @transform_6(%arg0: i32) -> (i32, i32, i32) {
    %c0_i32 = arith.constant 0 : i32
    %c0_i32_0 = arith.constant 0 : i32
    %c0_i32_1 = arith.constant 0 : i32
    return %arg0, %c0_i32, %c0_i32_0 : i32, i32, i32
  }
}

module attributes {stable_mosaic.version = 11 : i64} {
  func.func @_up_conv1_kernel(%arg0: i32, %arg1: memref<1x4x8x8xf32, #tpu.memory_space<vmem>>, %arg2: memref<1x4x16x16xf32, #tpu.memory_space<vmem>>, %arg3: memref<16x8xf32, #tpu.memory_space<vmem>>, %arg4: memref<8x16xf32, #tpu.memory_space<vmem>>, %arg5: memref<4x72xf32, #tpu.memory_space<vmem>>, %arg6: memref<1x4x256xf32, #tpu.memory_space<vmem>>, %arg7: memref<1x4x1xf32, #tpu.memory_space<vmem>>, %arg8: memref<1x4x1xf32, #tpu.memory_space<vmem>>, %arg9: memref<8x18x18xf32, #tpu.memory_space<vmem>>) attributes {dimension_semantics = [#tpu.dimension_semantics<parallel>], iteration_bounds = array<i64: 2>, scalar_prefetch = 0 : i64, scratch_operands = 1 : i64, tpu.core_type = #tpu.core_type<tc>, window_params = [{transform_indices = @transform_0, window_bounds = array<i64: 1, 4, 8, 8>}, {transform_indices = @transform_1, window_bounds = array<i64: 1, 4, 16, 16>}, {pipeline_mode = #tpu.pipeline_mode<synchronous>, transform_indices = @transform_2, window_bounds = array<i64: 16, 8>}, {pipeline_mode = #tpu.pipeline_mode<synchronous>, transform_indices = @transform_3, window_bounds = array<i64: 8, 16>}, {pipeline_mode = #tpu.pipeline_mode<synchronous>, transform_indices = @transform_4, window_bounds = array<i64: 4, 72>}, {transform_indices = @transform_5, window_bounds = array<i64: 1, 4, 256>}, {transform_indices = @transform_6, window_bounds = array<i64: 1, 4, 1>}, {transform_indices = @transform_7, window_bounds = array<i64: 1, 4, 1>}]} {
    %cst = arith.constant 0.000000e+00 : f32
    %0 = vector.broadcast %cst : f32 to vector<8x18x18xf32>
    %c0 = arith.constant 0 : index
    %c0_0 = arith.constant 0 : index
    %c0_1 = arith.constant 0 : index
    %1 = vector.load %arg9[%c0, %c0_0, %c0_1] : memref<8x18x18xf32, #tpu.memory_space<vmem>>, vector<8x18x18xf32>
    tpu.vector_store %arg9[%c0, %c0_0, %c0_1], %0 {strides = array<i32>} : memref<8x18x18xf32, #tpu.memory_space<vmem>>, vector<8x18x18xf32>,
    %c0_2 = arith.constant 0 : index
    %c0_3 = arith.constant 0 : index
    %c0_4 = arith.constant 0 : index
    %c0_5 = arith.constant 0 : index
    %2 = vector.load %arg2[%c0_2, %c0_3, %c0_4, %c0_5] : memref<1x4x16x16xf32, #tpu.memory_space<vmem>>, vector<1x4x16x16xf32>
    %3 = vector.shape_cast %2 : vector<1x4x16x16xf32> to vector<4x16x16xf32>
    %c0_6 = arith.constant 0 : index
    %c1 = arith.constant 1 : index
    %c1_7 = arith.constant 1 : index
    %4 = vector.load %arg9[%c0_6, %c1, %c1_7] : memref<8x18x18xf32, #tpu.memory_space<vmem>>, vector<4x16x16xf32>
    tpu.vector_store %arg9[%c0_6, %c1, %c1_7], %3 {strides = array<i32>} : memref<8x18x18xf32, #tpu.memory_space<vmem>>, vector<4x16x16xf32>,
    %c0_8 = arith.constant 0 : index
    %c0_9 = arith.constant 0 : index
    %c0_10 = arith.constant 0 : index
    %c0_11 = arith.constant 0 : index
    %5 = vector.load %arg1[%c0_8, %c0_9, %c0_10, %c0_11] : memref<1x4x8x8xf32, #tpu.memory_space<vmem>>, vector<1x4x8x8xf32>
    %6 = vector.shape_cast %5 : vector<1x4x8x8xf32> to vector<4x8x8xf32>
    %7 = vector.shape_cast %6 : vector<4x8x8xf32> to vector<32x8xf32>
    %c0_12 = arith.constant 0 : index
    %c0_13 = arith.constant 0 : index
    %8 = vector.load %arg4[%c0_12, %c0_13] : memref<8x16xf32, #tpu.memory_space<vmem>>, vector<8x16xf32>
    %cst_14 = arith.constant dense<0.000000e+00> : vector<32x16xf32>
    %9 = tpu.matmul %7, %8, %cst_14 {dimension_numbers = #tpu.dot_dimension_numbers<[1], [0], [0], [1], [0, 0, 1, 1], [], []>} : vector<32x8xf32>, vector<8x16xf32>, vector<32x16xf32> -> vector<32x16xf32>
    %10 = vector.shape_cast %9 : vector<32x16xf32> to vector<4x8x16xf32>
    %c0_15 = arith.constant 0 : index
    %c0_16 = arith.constant 0 : index
    %11 = vector.load %arg3[%c0_15, %c0_16] : memref<16x8xf32, #tpu.memory_space<vmem>>, vector<16x8xf32>
    %12 = vector.shape_cast %11 : vector<16x8xf32> to vector<1x16x8xf32>
    %13 = vector.broadcast %12 : vector<1x16x8xf32> to vector<4x16x8xf32>
    "tpu.trace_start"() <{level = 10 : i32, message = "cHh,chW->cHW"}> : () -> ()
    %cst_17 = arith.constant dense<0.000000e+00> : vector<4x16x16xf32>
    %14 = tpu.matmul %13, %10, %cst_17 {dimension_numbers = #tpu.dot_dimension_numbers<[2], [1], [1], [2], [0, 0, 0, 1, 1, 2], [0], [0]>} : vector<4x16x8xf32>, vector<4x8x16xf32>, vector<4x16x16xf32> -> vector<4x16x16xf32>
    "tpu.trace_stop"() : () -> ()
    %c4 = arith.constant 4 : index
    %c1_18 = arith.constant 1 : index
    %c1_19 = arith.constant 1 : index
    %15 = vector.load %arg9[%c4, %c1_18, %c1_19] : memref<8x18x18xf32, #tpu.memory_space<vmem>>, vector<4x16x16xf32>
    tpu.vector_store %arg9[%c4, %c1_18, %c1_19], %14 {strides = array<i32>} : memref<8x18x18xf32, #tpu.memory_space<vmem>>, vector<4x16x16xf32>,
    %c0_20 = arith.constant 0 : index
    %c0_21 = arith.constant 0 : index
    %c0_22 = arith.constant 0 : index
    %16 = vector.load %arg9[%c0_20, %c0_21, %c0_22] : memref<8x18x18xf32, #tpu.memory_space<vmem>>, vector<8x16x16xf32>
    %c0_23 = arith.constant 0 : index
    %c0_24 = arith.constant 0 : index
    %c1_25 = arith.constant 1 : index
    %17 = vector.load %arg9[%c0_23, %c0_24, %c1_25] : memref<8x18x18xf32, #tpu.memory_space<vmem>>, vector<8x16x16xf32>
    %c0_26 = arith.constant 0 : index
    %c0_27 = arith.constant 0 : index
    %c2 = arith.constant 2 : index
    %18 = vector.load %arg9[%c0_26, %c0_27, %c2] : memref<8x18x18xf32, #tpu.memory_space<vmem>>, vector<8x16x16xf32>
    %c0_28 = arith.constant 0 : index
    %c1_29 = arith.constant 1 : index
    %c0_30 = arith.constant 0 : index
    %19 = vector.load %arg9[%c0_28, %c1_29, %c0_30] : memref<8x18x18xf32, #tpu.memory_space<vmem>>, vector<8x16x16xf32>
    %c0_31 = arith.constant 0 : index
    %c1_32 = arith.constant 1 : index
    %c1_33 = arith.constant 1 : index
    %20 = vector.load %arg9[%c0_31, %c1_32, %c1_33] : memref<8x18x18xf32, #tpu.memory_space<vmem>>, vector<8x16x16xf32>
    %c0_34 = arith.constant 0 : index
    %c1_35 = arith.constant 1 : index
    %c2_36 = arith.constant 2 : index
    %21 = vector.load %arg9[%c0_34, %c1_35, %c2_36] : memref<8x18x18xf32, #tpu.memory_space<vmem>>, vector<8x16x16xf32>
    %c0_37 = arith.constant 0 : index
    %c2_38 = arith.constant 2 : index
    %c0_39 = arith.constant 0 : index
    %22 = vector.load %arg9[%c0_37, %c2_38, %c0_39] : memref<8x18x18xf32, #tpu.memory_space<vmem>>, vector<8x16x16xf32>
    %c0_40 = arith.constant 0 : index
    %c2_41 = arith.constant 2 : index
    %c1_42 = arith.constant 1 : index
    %23 = vector.load %arg9[%c0_40, %c2_41, %c1_42] : memref<8x18x18xf32, #tpu.memory_space<vmem>>, vector<8x16x16xf32>
    %c0_43 = arith.constant 0 : index
    %c2_44 = arith.constant 2 : index
    %c2_45 = arith.constant 2 : index
    %24 = vector.load %arg9[%c0_43, %c2_44, %c2_45] : memref<8x18x18xf32, #tpu.memory_space<vmem>>, vector<8x16x16xf32>
    %25 = tpu.concatenate %16, %17, %18, %19, %20, %21, %22, %23, %24 in 0 : vector<8x16x16xf32>, vector<8x16x16xf32>, vector<8x16x16xf32>, vector<8x16x16xf32>, vector<8x16x16xf32>, vector<8x16x16xf32>, vector<8x16x16xf32>, vector<8x16x16xf32>, vector<8x16x16xf32> -> vector<72x16x16xf32>
    %26 = vector.shape_cast %25 : vector<72x16x16xf32> to vector<72x256xf32>
    %c0_46 = arith.constant 0 : index
    %c0_47 = arith.constant 0 : index
    %27 = vector.load %arg5[%c0_46, %c0_47] : memref<4x72xf32, #tpu.memory_space<vmem>>, vector<4x72xf32>
    %cst_48 = arith.constant dense<0.000000e+00> : vector<4x256xf32>
    %28 = tpu.matmul %27, %26, %cst_48 {dimension_numbers = #tpu.dot_dimension_numbers<[1], [0], [0], [1], [0, 0, 1, 1], [], []>} : vector<4x72xf32>, vector<72x256xf32>, vector<4x256xf32> -> vector<4x256xf32>
    %c0_49 = arith.constant 0 : index
    %c0_50 = arith.constant 0 : index
    %c0_51 = arith.constant 0 : index
    %29 = vector.load %arg6[%c0_49, %c0_50, %c0_51] : memref<1x4x256xf32, #tpu.memory_space<vmem>>, vector<1x4x256xf32>
    %30 = vector.shape_cast %29 : vector<1x4x256xf32> to vector<4x256xf32>
    %31 = vector.shape_cast %28 : vector<4x256xf32> to vector<1x4x256xf32>
    tpu.vector_store %arg6[%c0_49, %c0_50, %c0_51], %31 {strides = array<i32>} : memref<1x4x256xf32, #tpu.memory_space<vmem>>, vector<1x4x256xf32>,
    %cst_52 = arith.constant dense<0.000000e+00> : vector<4xf32>
    %32 = vector.multi_reduction <add>, %28, %cst_52 [1] : vector<4x256xf32> to vector<4xf32>
    %33 = vector.shape_cast %32 : vector<4xf32> to vector<4x1xf32>
    %c0_53 = arith.constant 0 : index
    %c0_54 = arith.constant 0 : index
    %c0_55 = arith.constant 0 : index
    %34 = vector.load %arg7[%c0_53, %c0_54, %c0_55] : memref<1x4x1xf32, #tpu.memory_space<vmem>>, vector<1x4x1xf32>
    %35 = vector.shape_cast %34 : vector<1x4x1xf32> to vector<4x1xf32>
    %36 = vector.shape_cast %33 : vector<4x1xf32> to vector<1x4x1xf32>
    tpu.vector_store %arg7[%c0_53, %c0_54, %c0_55], %36 {strides = array<i32>} : memref<1x4x1xf32, #tpu.memory_space<vmem>>, vector<1x4x1xf32>,
    %37 = arith.mulf %28, %28 : vector<4x256xf32>
    %cst_56 = arith.constant dense<0.000000e+00> : vector<4xf32>
    %38 = vector.multi_reduction <add>, %37, %cst_56 [1] : vector<4x256xf32> to vector<4xf32>
    %39 = vector.shape_cast %38 : vector<4xf32> to vector<4x1xf32>
    %c0_57 = arith.constant 0 : index
    %c0_58 = arith.constant 0 : index
    %c0_59 = arith.constant 0 : index
    %40 = vector.load %arg8[%c0_57, %c0_58, %c0_59] : memref<1x4x1xf32, #tpu.memory_space<vmem>>, vector<1x4x1xf32>
    %41 = vector.shape_cast %40 : vector<1x4x1xf32> to vector<4x1xf32>
    %42 = vector.shape_cast %39 : vector<4x1xf32> to vector<1x4x1xf32>
    tpu.vector_store %arg8[%c0_57, %c0_58, %c0_59], %42 {strides = array<i32>} : memref<1x4x1xf32, #tpu.memory_space<vmem>>, vector<1x4x1xf32>,
    return
  }
  func.func @transform_0(%arg0: i32) -> (i32, i32, i32, i32) {
    %c0_i32 = arith.constant 0 : i32
    %c0_i32_0 = arith.constant 0 : i32
    %c0_i32_1 = arith.constant 0 : i32
    %c0_i32_2 = arith.constant 0 : i32
    return %arg0, %c0_i32, %c0_i32_0, %c0_i32_1 : i32, i32, i32, i32
  }
  func.func @transform_1(%arg0: i32) -> (i32, i32, i32, i32) {
    %c0_i32 = arith.constant 0 : i32
    %c0_i32_0 = arith.constant 0 : i32
    %c0_i32_1 = arith.constant 0 : i32
    %c0_i32_2 = arith.constant 0 : i32
    return %arg0, %c0_i32, %c0_i32_0, %c0_i32_1 : i32, i32, i32, i32
  }
  func.func @transform_2(%arg0: i32) -> (i32, i32) {
    %c0_i32 = arith.constant 0 : i32
    %c0_i32_0 = arith.constant 0 : i32
    %c0_i32_1 = arith.constant 0 : i32
    return %c0_i32, %c0_i32_0 : i32, i32
  }
  func.func @transform_3(%arg0: i32) -> (i32, i32) {
    %c0_i32 = arith.constant 0 : i32
    %c0_i32_0 = arith.constant 0 : i32
    %c0_i32_1 = arith.constant 0 : i32
    return %c0_i32, %c0_i32_0 : i32, i32
  }
  func.func @transform_4(%arg0: i32) -> (i32, i32) {
    %c0_i32 = arith.constant 0 : i32
    %c0_i32_0 = arith.constant 0 : i32
    %c0_i32_1 = arith.constant 0 : i32
    return %c0_i32, %c0_i32_0 : i32, i32
  }
  func.func @transform_5(%arg0: i32) -> (i32, i32, i32) {
    %c0_i32 = arith.constant 0 : i32
    %c0_i32_0 = arith.constant 0 : i32
    %c0_i32_1 = arith.constant 0 : i32
    return %arg0, %c0_i32, %c0_i32_0 : i32, i32, i32
  }
  func.func @transform_6(%arg0: i32) -> (i32, i32, i32) {
    %c0_i32 = arith.constant 0 : i32
    %c0_i32_0 = arith.constant 0 : i32
    %c0_i32_1 = arith.constant 0 : i32
    return %arg0, %c0_i32, %c0_i32_0 : i32, i32, i32
  }
  func.func @transform_7(%arg0: i32) -> (i32, i32, i32) {
    %c0_i32 = arith.constant 0 : i32
    %c0_i32_0 = arith.constant 0 : i32
    %c0_i32_1 = arith.constant 0 : i32
    return %arg0, %c0_i32, %c0_i32_0 : i32, i32, i32
  }
}

</mosaic_0001>

<bundles_post_ra>
// kernel: up_forward.5
= control target key start
LH: loop header
LB: loop body
LE: loop exit
PB: predicated region body
PF: predicated region fallthrough
CT: control target
= control target key end

     0   :  { %s311_s12 = smov 0   ;;  %s334_s0 = inlined_call_operand.vmem [shape: f32[2,4,256], index: 0, kind: input, shape index: {}]   ;;  %s335_s1 = inlined_call_operand.vmem [shape: f32[4,1], index: 1, kind: input, shape index: {}]   ;;  %s336_s2 = inlined_call_operand.vmem [shape: f32[4,1], index: 2, kind: input, shape index: {}]   ;;  %s337_s3 = inlined_call_operand.vmem [shape: f32[2,4,256], index: 3, kind: output, shape index: {}]  }
   0x1 LB: > { %s257_s13 = sadd.s32 4294967295, %s287_s12   ;;  %p261_p0 = scmp.ge.s32.totalorder %s287_s12, 1  ;;  %s287_s12 = sphi %s311_s12, %s13_s12  }
   0x2   : > { %p137_p1 = scmp.lt.s32.totalorder %s287_s12, 3 }
   0x4   : > { %p138_p2 = pnand %p261_p0, %p137_p1 }
   0x5   : > { %p161_p3 = scmp.lt.s32.totalorder (!%p138_p2), %s257_s13, 1 }
   0x6   : > { %141 = sbr.rel (%p138_p2) target bundleno = 148 (0x94), region = 32 }
   0xb   : > { %v172_v0 = vld [vmem:[%s335_s1] sm:$0xf]  ;;  %v289_v1 = vmov 0   ;;  %v290_v3 = vmov 839922192   ;;  %v180_v5 = vlaneseq  ;;  %s339_s13 = smov (!%p161_p3, %s257_s13), 1 }
   0xc   : > { %280 = vset.pattern.permute.xlu0 %v289_v1  ;;  %v186_v2 = vld [vmem:[%s336_s2] sm:$0xf]  ;;  %v178_v4 = vunpack.c.l.s4 %v290_v3  ;;  %s268_s18 = sshll.u32 %s339_s13, 3 }
   0xd   : > { %175 = vperm.xlu0 %280, %v172_v0   ;;  %v181_v7 = vshrl.u32 %v180_v5, 7  ;;  %s165_s21 = scalar_lea.vmem %s334_s0, %s268_s18  ;;  %s170_s24 = scalar_lea.vmem %s337_s3, %s268_s18 }
   0xe   : > { %v179_v6 = vunpack.c.0.s8 %v178_v4  ;;  %v171_v11 = vld [vmem:[%s165_s21] sm:$0xff] }
  0x10   : > { %v182_v8 = vsub.s32 %v179_v6, %v181_v7 }
  0x11   : > { %189 = vperm.xlu0 %280, %v186_v2  }
  0x88   : > { %v176_v9 = vpop.permute.xlu0 %175 }
  0x89   : > { %v183_v10 = vrot.slane %v176_v9, %v182_v8 }
  0x8b   : > { %v185_v13 = vmul.f32 %v183_v10, %v171_v11 }
  0x8c   : > { %v190_v12 = vpop.permute.xlu0 %189 }
  0x8d   : > { %v197_v14 = vrot.slane %v190_v12, %v182_v8 }
  0x8f   : > { %v199_v15 = vadd.f32 %v197_v14, %v185_v13 }
  0x91   : > { %v200_v16 = vmax.f32 %v199_v15, 0.0 }
  0x93   : > { %201 = vst [vmem:[%s170_s24] sm:$0xff] %v200_v16 }
  0x94 PF: > { %s13_s12 = sadd.s32 1, %s287_s12  }
  0x95   : > { %p10_p4 = scmp.ge.s32.totalorder %s13_s12, 4  }
  0x97   :  { %12 = sbr.rel (!%p10_p4) target bundleno = 1 (0x1), region = 62 }

// kernel: up_forward.4
= control target key start
LH: loop header
LB: loop body
LE: loop exit
PB: predicated region body
PF: predicated region fallthrough
CT: control target
= control target key end

     0   :  { %s2665_s21 = smov 0   ;;  %s3812_s0 = inlined_call_operand.vmem [shape: f32[2,4,256], index: 0, kind: input, shape index: {}]   ;;  %s3813_s1 = inlined_call_operand.vmem [shape: f32[4,1], index: 1, kind: input, shape index: {}]   ;;  %s3814_s2 = inlined_call_operand.vmem [shape: f32[4,1], index: 2, kind: input, shape index: {}]   ;;  %s3815_s3 = inlined_call_operand.vmem [shape: f32[4,36], index: 3, kind: input, shape index: {}]   ;;  %s3816_s4 = inlined_call_operand.vmem [shape: f32[2,4,256], index: 4, kind: output, shape index: {0}]   ;;  %s3817_s5 = inlined_call_operand.vmem [shape: f32[2,4,1], index: 5, kind: output, shape index: {1}]   ;;  %s3818_s6 = inlined_call_operand.vmem [shape: f32[2,4,1], index: 6, kind: output, shape index: {2}]  }
   0x1 LB: > { %s2541_s22 = sadd.s32 4294967295, %s2613_s21   ;;  %p2545_p0 = scmp.ge.s32.totalorder %s2613_s21, 1  ;;  %s2613_s21 = sphi %s2665_s21, %s17_s21  }
   0x2   : > { %p217_p1 = scmp.lt.s32.totalorder %s2613_s21, 3 }
   0x4   : > { %p218_p2 = pnand %p2545_p0, %p217_p1 }
   0x6   : > { %221 = sbr.rel (%p218_p2) target bundleno = 1167 (0x48f), region = 36 }
   0xb   : > { %v274_v0 = vld [vmem:[%s3813_s1] sm:$0xf]  ;;  %v2615_v1 = vmov 0   ;;  %p255_p3 = scmp.lt.s32.totalorder %s2541_s22, 1  ;;  %v2616_v3 = vmov 839922192   ;;  %v282_v5 = vlaneseq }
   0xc   : > { %2586 = vset.pattern.permute.xlu0 %v2615_v1  ;;  %v288_v2 = vld [vmem:[%s3814_s2] sm:$0xf]  ;;  %v280_v4 = vunpack.c.l.s4 %v2616_v3  ;;  %s2617_s7 = smov 80   ;;  %s2618_s8 = smov 112   ;;  %vm303_vm0 = vcmask 146432   ;;  %v3819_v17 = vmov 0.0  }
   0xd   : > { %277 = vperm.xlu0 %2586, %v274_v0   ;;  %s3956_s22 = smov (!%p255_p3, %s2541_s22), 1  ;;  %v2681_v7 = vshrl.u32 %v282_v5, 7  ;;  %s2619_s9 = smov 48   ;;  %308 = vst.msk [vmem:[#allocation2 + $0x18] sm:$0xff] %vm303_vm0, %v3819_v17  ;;  %309 = vst.msk [vmem:[#allocation2 + $0x20] sm:$0xff] %vm303_vm0, %v3819_v17  ;;  %2397 = vmatprep.mubr.f32.mxu0 %v3819_v17  ;;  %vm306_vm1 = vcmask 140288  }
   0xe   : > { %v281_v6 = vunpack.c.0.s8 %v280_v4  ;;  %s2561_s27 = sshll.u32 %s3956_s22, 3  ;;  %s2620_s10 = smov 96   ;;  %304 = vst.msk [vmem:[#allocation2] sm:$0xff] %vm303_vm0, %v3819_v17  ;;  %305 = vst.msk [vmem:[#allocation2 + $0x8] sm:$0xff] %vm303_vm0, %v3819_v17  ;;  %v2625_v18 = vmov 1983009808  }
   0xf   : > { %s259_s30 = scalar_lea.vmem %s3812_s0, %s2561_s27  ;;  %s2621_s11 = smov 16   ;;  %311 = vst.msk [vmem:[#allocation2 + $0x30] sm:$0xff] %vm303_vm0, %v3819_v17  ;;  %312 = vst.msk [vmem:[#allocation2 + $0x38] sm:$0xff] %vm303_vm0, %v3819_v17  ;;  %v357_v19 = vunpack.c.l.s4 %v2625_v18  ;;  %v2626_v25 = vmov 1934713408   ;;  %vm539_vm2 = vcmask 138248  }
  0x10   : > { %v284_v8 = vsub.s32 %v281_v6, %v2681_v7  ;;  %v273_v11 = vld [vmem:[%s259_s30] sm:$0xff]  ;;  %s2622_s12 = smov 64   ;;  %s2623_s13 = smov 32   ;;  %314 = vst.msk [vmem:[#allocation2 + $0x48] sm:$0xff] %vm303_vm0, %v3819_v17  ;;  %315 = vst.msk [vmem:[#allocation2 + $0x50] sm:$0xff] %vm303_vm0, %v3819_v17  ;;  %v374_v26 = vunpack.c.l.s4 %v2626_v25  ;;  %vm2244_vm3 = vcmask 130048  }
  0x11   : > { %291 = vperm.xlu0 %2586, %v288_v2   ;;  %v358_v22 = vunpack.c.0.s8 %v357_v19  ;;  %310 = vst.msk [vmem:[#allocation2 + $0x28] sm:$0x3] %vm306_vm1, %v3819_v17  ;;  %307 = vst.msk [vmem:[#allocation2 + $0x10] sm:$0x3] %vm306_vm1, %v3819_v17  ;;  %s2627_s14 = smov 1   ;;  %s2628_s15 = smov 127  }
  0x12   : > { %v375_v32 = vunpack.c.0.s8 %v374_v26  ;;  %313 = vst.msk [vmem:[#allocation2 + $0x40] sm:$0x3] %vm306_vm1, %v3819_v17  ;;  %316 = vst.msk [vmem:[#allocation2 + $0x58] sm:$0x3] %vm306_vm1, %v3819_v17  ;;  %s2629_s16 = smov 126   ;;  %vm2250_vm4 = vcmask 261120   ;;  %s264_s23 = scalar_lea.vmem %s3816_s4, %s2561_s27 }
  0x13   : > { %v2707_v28 = vsub.s32 %v358_v22, %v2681_v7  ;;  %vm2256_vm5 = vcmask 392192   ;;  %vm2262_vm6 = vcmask 523264   ;;  %vm2268_vm7 = vcmask 654336   ;;  %s2550_s24 = sshll.u32 %s3956_s22, 2 }
  0x14   : > { %v2712_v46 = vsub.s32 %v375_v32, %v2681_v7  ;;  %vm2274_vm8 = vcmask 785408   ;;  %vm2280_vm9 = vcmask 916480   ;;  %vm2326_vm10 = vcmask 1043456   ;;  %s268_s27 = scalar_lea.vmem %s3817_s5, %s2550_s24  ;;  %s272_s30 = scalar_lea.vmem %s3818_s6, %s2550_s24 }
  0x15   : > { %vm2322_vm11 = vcmask 293888   ;;  %vm2414_vm12 = vcmask 3072  }
  0x88   : > { %v278_v9 = vpop.permute.xlu0 %277 }
  0x89   : > { %v285_v10 = vrot.slane %v278_v9, %v284_v8 }
  0x8b   : > { %v287_v13 = vmul.f32 %v285_v10, %v273_v11 }
  0x8c   : > { %v292_v12 = vpop.permute.xlu0 %291 }
  0x8d   : > { %v299_v14 = vrot.slane %v292_v12, %v284_v8 }
  0x8f   : > { %v301_v15 = vadd.f32 %v299_v14, %v287_v13 }
  0x91   : > { %v302_v16 = vmax.f32 %v301_v15, 0.0 }
  0x93   : > { %328 = vrot.lane.b32.xlu0 %v302_v16, %s2617_s7  ;;  %320 = vrot.lane.b32.xlu1 %v302_v16, %s2618_s8  ;;  %v318_v40 = vrot.slane %v302_v16, 4 }
  0x97   : > { %336 = vrot.lane.b32.xlu0 %v302_v16, %s2619_s9  ;;  %324 = vrot.lane.b32.xlu1 %v302_v16, %s2620_s10 }
  0x9b   : > { %344 = vrot.lane.b32.xlu0 %v302_v16, %s2621_s11  ;;  %332 = vrot.lane.b32.xlu1 %v302_v16, %s2622_s12 }
  0x9f   : > { %340 = vrot.lane.b32.xlu1 %v302_v16, %s2623_s13 }
 0x105   : > { %v329_v20 = vpop.permute.xlu0 %328  ;;  %v321_v21 = vpop.permute.xlu1 %320 }
 0x106   : > { %v363_v29 = vcombine.low %v321_v21, %v329_v20  ;;  %v330_v37 = vrot.slane %v329_v20, 4  ;;  %v322_v38 = vrot.slane %v321_v21, 4 }
 0x108   : > { %v370_v39 = vrot.slane %v363_v29, %v2707_v28  ;;  %v431_v53 = vcombine.low %v322_v38, %v330_v37 }
 0x109   : > { %v337_v23 = vpop.permute.xlu0 %336  ;;  %v325_v24 = vpop.permute.xlu1 %324 }
 0x10a   : > { %v355_v27 = vcombine.low %v302_v16, %v325_v24  ;;  %v326_v33 = vrot.slane %v325_v24, 4  ;;  %v338_v42 = vrot.slane %v337_v23, 4  ;;  %v438_v62 = vrot.slane %v431_v53, %v2707_v28 }
 0x10c   : > { %v362_v34 = vrot.slane %v355_v27, %v2707_v28  ;;  %v423_v48 = vcombine.low %v318_v40, %v326_v33 }
 0x10d   : > { %v345_v30 = vpop.permute.xlu0 %344  ;;  %v333_v31 = vpop.permute.xlu1 %332 }
 0x10e   : > { %v346_v35 = vrot.slane %v345_v30, 4  ;;  %v397_v36 = vcombine.low %v337_v23, %v345_v30  ;;  %v334_v43 = vrot.slane %v333_v31, 4  ;;  %v371_v47 = vcombine.low %v362_v34, %v370_v39 }
 0x10f   : > { %v372_v57 = vcombine.high %v362_v34, %v370_v39  ;;  %v430_v58 = vrot.slane %v423_v48, %v2707_v28 }
 0x110   : > { %v404_v49 = vrot.slane %v397_v36, %v2707_v28  ;;  %v465_v50 = vcombine.low %v338_v42, %v346_v35  ;;  %v379_v60 = vrot.slane %v371_v47, %v2712_v46 }
 0x111   : > { %v341_v41 = vpop.permute.xlu1 %340  ;;  %v386_v3 = vrot.slane %v372_v57, %v2712_v46  ;;  %v439_v4 = vcombine.low %v430_v58, %v438_v62  ;;  %v440_v10 = vcombine.high %v430_v58, %v438_v62 }
 0x112   : > { %v342_v44 = vrot.slane %v341_v41, 4  ;;  %v389_v45 = vcombine.low %v333_v31, %v341_v41  ;;  %v472_v59 = vrot.slane %v465_v50, %v2707_v28 }
 0x113   : > { %v447_v9 = vrot.slane %v439_v4, %v2712_v46  ;;  %v454_v14 = vrot.slane %v440_v10, %v2712_v46 }
 0x114   : > { %v396_v51 = vrot.slane %v389_v45, %v2707_v28  ;;  %v457_v52 = vcombine.low %v334_v43, %v342_v44 }
 0x116   : > { %v405_v54 = vcombine.low %v396_v51, %v404_v49  ;;  %v406_v55 = vcombine.high %v396_v51, %v404_v49  ;;  %v464_v56 = vrot.slane %v457_v52, %v2707_v28 }
 0x118   : > { %v413_v61 = vrot.slane %v405_v54, %v2712_v46  ;;  %v420_v1 = vrot.slane %v406_v55, %v2712_v46  ;;  %v473_v2 = vcombine.low %v464_v56, %v472_v59  ;;  %v474_v8 = vcombine.high %v464_v56, %v472_v59 }
 0x11a   : > { %v2552_v63 = vcombine.high %v379_v60, %v413_v61  ;;  %v507_v0 = vcombine.low %v379_v60, %v413_v61  ;;  %v2554_v5 = vcombine.high %v386_v3, %v420_v1  ;;  %v511_v6 = vcombine.low %v386_v3, %v420_v1 }
 0x11b   : > { %v481_v7 = vrot.slane %v473_v2, %v2712_v46  ;;  %v488_v13 = vrot.slane %v474_v8, %v2712_v46 }
 0x11c   : > { %519 = vrot.lane.b32.xlu0 %v2552_v63, %s2627_s14  ;;  %515 = vrot.lane.b32.xlu1 %v507_v0, %s2627_s14 }
 0x11d   : > { %v2553_v11 = vcombine.high %v447_v9, %v481_v7  ;;  %v508_v12 = vcombine.low %v447_v9, %v481_v7  ;;  %v2555_v15 = vcombine.high %v454_v14, %v488_v13  ;;  %v512_v16 = vcombine.low %v454_v14, %v488_v13 }
 0x120   : > { %527 = vrot.lane.b32.xlu0 %v2554_v5, %s2627_s14  ;;  %523 = vrot.lane.b32.xlu1 %v511_v6, %s2627_s14 }
 0x124   : > { %521 = vrot.lane.b32.xlu0 %v2553_v11, %s2627_s14  ;;  %517 = vrot.lane.b32.xlu1 %v508_v12, %s2627_s14 }
 0x128   : > { %529 = vrot.lane.b32.xlu0 %v2555_v15, %s2627_s14  ;;  %525 = vrot.lane.b32.xlu1 %v512_v16, %s2627_s14 }
 0x18e   : > { %v520_v18 = vpop.permute.xlu0 %519  ;;  %v516_v19 = vpop.permute.xlu1 %515 }
 0x18f   : > { %542 = vst.msk [vmem:[#allocation2 + $0x19] sm:$0xff] %vm539_vm2, %v520_v18  ;;  %540 = vst.msk [vmem:[#allocation2 + $0x1] sm:$0xff] %vm539_vm2, %v516_v19 }
 0x192   : > { %v528_v20 = vpop.permute.xlu0 %527  ;;  %v524_v21 = vpop.permute.xlu1 %523 }
 0x193   : > { %546 = vst.msk [vmem:[#allocation2 + $0x49] sm:$0xff] %vm539_vm2, %v528_v20  ;;  %544 = vst.msk [vmem:[#allocation2 + $0x31] sm:$0xff] %vm539_vm2, %v524_v21 }
 0x196   : > { %v522_v22 = vpop.permute.xlu0 %521  ;;  %v518_v23 = vpop.permute.xlu1 %517  ;;  %v558_v24 = vld [vmem:[#allocation2 + $0x19] sm:$0xff]  ;;  %v556_v25 = vld [vmem:[#allocation2 + $0x1] sm:$0xff] }
 0x197   : > { %543 = vst.msk [vmem:[#allocation2 + $0x21] sm:$0xff] %vm539_vm2, %v522_v22  ;;  %541 = vst.msk [vmem:[#allocation2 + $0x9] sm:$0xff] %vm539_vm2, %v518_v23  ;;  %640 = vrot.lane.b32.xlu0 %v558_v24, %s2628_s15  ;;  %636 = vrot.lane.b32.xlu1 %v556_v25, %s2628_s15  ;;  %v2745_v36 = vld [vmem:[#allocation2 + $0x18] sm:$0xff]  ;;  %v2747_v37 = vld [vmem:[#allocation2] sm:$0xff] }
 0x19a   : > { %v530_v26 = vpop.permute.xlu0 %529  ;;  %v526_v27 = vpop.permute.xlu1 %525  ;;  %v562_v29 = vld [vmem:[#allocation2 + $0x49] sm:$0xff]  ;;  %v560_v30 = vld [vmem:[#allocation2 + $0x31] sm:$0xff] }
 0x19b   : > { %v2740_v31 = vld [vmem:[#allocation2 + $0x48] sm:$0xff]  ;;  %547 = vst.msk [vmem:[#allocation2 + $0x51] sm:$0xff] %vm539_vm2, %v530_v26  ;;  %545 = vst.msk [vmem:[#allocation2 + $0x39] sm:$0xff] %vm539_vm2, %v526_v27  ;;  %v924_v32 = vcombine.low %v558_v24, %v562_v29  ;;  %v925_v33 = vcombine.high %v558_v24, %v562_v29  ;;  %648 = vrot.lane.b32.xlu0 %v562_v29, %s2628_s15  ;;  %v908_v34 = vcombine.low %v556_v25, %v560_v30  ;;  %v2749_v38 = vld [vmem:[#allocation2 + $0x30] sm:$0xff] }
 0x19c   : > { %v909_v35 = vcombine.high %v556_v25, %v560_v30  ;;  %644 = vrot.lane.b32.xlu1 %v560_v30, %s2628_s15  ;;  %v756_v39 = vcombine.low %v2745_v36, %v2740_v31  ;;  %v757_v40 = vcombine.high %v2745_v36, %v2740_v31  ;;  %v740_v41 = vcombine.low %v2747_v37, %v2749_v38 }
 0x19d   : > { %v741_v42 = vcombine.high %v2747_v37, %v2749_v38  ;;  %v2761_v43 = vrot.slane %v924_v32, %v2707_v28  ;;  %v2764_v44 = vrot.slane %v925_v33, %v2707_v28  ;;  %v2767_v45 = vrot.slane %v908_v34, %v2707_v28 }
 0x19e   : > { %v2770_v47 = vrot.slane %v909_v35, %v2707_v28  ;;  %v2773_v48 = vrot.slane %v756_v39, %v2707_v28  ;;  %v2776_v49 = vrot.slane %v757_v40, %v2707_v28  ;;  %v2779_v50 = vrot.slane %v740_v41, %v2707_v28  ;;  %v2802_v60 = vld [vmem:[#allocation2 + $0x22] sm:$0xff]  ;;  %v2804_v61 = vld [vmem:[#allocation2 + $0xa] sm:$0xff]  ;;  %v566_v5 = vld [vmem:[#allocation2 + $0x1a] sm:$0xff] }
 0x19f   : > { %v2782_v51 = vrot.slane %v741_v42, %v2707_v28  ;;  %664 = vrot.lane.b32.xlu0 %v558_v24, %s2629_s16  ;;  %v972_v52 = vcombine.low %v2767_v45, %v2761_v43  ;;  %v564_v6 = vld [vmem:[#allocation2 + $0x2] sm:$0xff] }
 0x1a0   : > { %660 = vrot.lane.b32.xlu1 %v556_v25, %s2629_s16  ;;  %v559_v19 = vld [vmem:[#allocation2 + $0x21] sm:$0xff]  ;;  %v557_v20 = vld [vmem:[#allocation2 + $0x9] sm:$0xff] }
 0x1a2   : > { %v2806_v62 = vld [vmem:[#allocation2 + $0x52] sm:$0xff]  ;;  %v2808_v63 = vld [vmem:[#allocation2 + $0x3a] sm:$0xff]  ;;  %v2810_v0 = vld [vmem:[#allocation2 + $0x4a] sm:$0xff] }
 0x1a3   : > { %672 = vrot.lane.b32.xlu0 %v562_v29, %s2629_s16  ;;  %v1776_v1 = vcombine.low %v2802_v60, %v2806_v62  ;;  %v1777_v2 = vcombine.high %v2802_v60, %v2806_v62  ;;  %v1760_v3 = vcombine.low %v2804_v61, %v2808_v63  ;;  %v1761_v4 = vcombine.high %v2804_v61, %v2808_v63  ;;  %v568_v7 = vld [vmem:[#allocation2 + $0x32] sm:$0xff] }
 0x1a4   : > { %668 = vrot.lane.b32.xlu1 %v560_v30, %s2629_s16  ;;  %v1164_v8 = vcombine.low %v566_v5, %v2810_v0  ;;  %v1165_v9 = vcombine.high %v566_v5, %v2810_v0  ;;  %v1148_v10 = vcombine.low %v564_v6, %v568_v7  ;;  %v1149_v11 = vcombine.high %v564_v6, %v568_v7  ;;  %v563_v12 = vld [vmem:[#allocation2 + $0x51] sm:$0xff]  ;;  %v561_v13 = vld [vmem:[#allocation2 + $0x39] sm:$0xff] }
 0x1a5   : > { %v2825_v14 = vrot.slane %v1776_v1, %v2707_v28  ;;  %v2828_v15 = vrot.slane %v1760_v3, %v2707_v28  ;;  %v1536_v21 = vcombine.low %v559_v19, %v563_v12  ;;  %v1537_v22 = vcombine.high %v559_v19, %v563_v12 }
 0x1a6   : > { %v2831_v16 = vrot.slane %v1164_v8, %v2707_v28  ;;  %v2834_v18 = vrot.slane %v1148_v10, %v2707_v28  ;;  %v1520_v23 = vcombine.low %v557_v20, %v561_v13  ;;  %v1521_v24 = vcombine.high %v557_v20, %v561_v13 }
 0x1a7   : > { %608 = vrot.lane.b32.xlu0 %v2745_v36, %s2629_s16  ;;  %v2841_v25 = vrot.slane %v1777_v2, %v2707_v28  ;;  %v2844_v26 = vrot.slane %v1761_v4, %v2707_v28  ;;  %v2847_v27 = vrot.slane %v1165_v9, %v2707_v28  ;;  %v2850_v29 = vrot.slane %v1149_v11, %v2707_v28 }
 0x1a8   : > { %604 = vrot.lane.b32.xlu1 %v2747_v37, %s2629_s16  ;;  %v2853_v30 = vrot.slane %v1536_v21, %v2707_v28  ;;  %v2856_v32 = vrot.slane %v1520_v23, %v2707_v28  ;;  %v2859_v33 = vrot.slane %v1537_v22, %v2707_v28  ;;  %v2862_v34 = vrot.slane %v1521_v24, %v2707_v28 }
 0x1a9   : > { %3862 = vst [vmem:[#allocation3_spill] sm:$0xff] %v2841_v25  ;;  %3863 = vst [vmem:[#allocation4_spill] sm:$0xff] %v2844_v26  ;;  %v3039_v1 = vrot.slane %v972_v52, %v2712_v46 }
 0x1aa   : > { %3864 = vst [vmem:[#allocation5_spill] sm:$0xff] %v2847_v27  ;;  %3865 = vst [vmem:[#allocation6_spill] sm:$0xff] %v2850_v29 }
 0x1ab   : > { %3866 = vst [vmem:[#allocation7_spill] sm:$0xff] %v2853_v30  ;;  %3867 = vst [vmem:[#allocation8_spill] sm:$0xff] %v2859_v33  ;;  %616 = vrot.lane.b32.xlu0 %v2740_v31, %s2629_s16 }
 0x1ac   : > { %3868 = vst [vmem:[#allocation9_spill] sm:$0xff] %v2862_v34  ;;  %612 = vrot.lane.b32.xlu1 %v2749_v38, %s2629_s16  ;;  %3872 = vst [vmem:[#allocation13_spill] sm:$0xff] %v3039_v1 }
 0x1af   : > { %584 = vrot.lane.b32.xlu0 %v2745_v36, %s2628_s15  ;;  %v2938_v36 = vld [vmem:[#allocation2 + $0x8] sm:$0xff] }
 0x1b0   : > { %580 = vrot.lane.b32.xlu1 %v2747_v37, %s2628_s15  ;;  %v2942_v37 = vld [vmem:[#allocation2 + $0x50] sm:$0xff] }
 0x1b3   : > { %592 = vrot.lane.b32.xlu0 %v2740_v31, %s2628_s15  ;;  %v2934_v31 = vld [vmem:[#allocation2 + $0x20] sm:$0xff] }
 0x1b4   : > { %588 = vrot.lane.b32.xlu1 %v2749_v38, %s2628_s15  ;;  %v2946_v38 = vld [vmem:[#allocation2 + $0x38] sm:$0xff] }
 0x1b7   : > { %722 = vrot.lane.b32.xlu0 %v2802_v60, %s2629_s16 }
 0x1b8   : > { %718 = vrot.lane.b32.xlu1 %v2804_v61, %s2629_s16 }
 0x1bb   : > { %730 = vrot.lane.b32.xlu0 %v2806_v62, %s2629_s16 }
 0x1bc   : > { %726 = vrot.lane.b32.xlu1 %v2808_v63, %s2629_s16 }
 0x1bf   : > { %720 = vrot.lane.b32.xlu0 %v566_v5, %s2629_s16 }
 0x1c0   : > { %716 = vrot.lane.b32.xlu1 %v564_v6, %s2629_s16 }
 0x1c3   : > { %728 = vrot.lane.b32.xlu0 %v2810_v0, %s2629_s16 }
 0x1c4   : > { %724 = vrot.lane.b32.xlu1 %v568_v7, %s2629_s16 }
 0x1c7   : > { %698 = vrot.lane.b32.xlu0 %v2802_v60, %s2628_s15 }
 0x1c8   : > { %694 = vrot.lane.b32.xlu1 %v2804_v61, %s2628_s15 }
 0x1cb   : > { %706 = vrot.lane.b32.xlu0 %v2806_v62, %s2628_s15 }
 0x1cc   : > { %702 = vrot.lane.b32.xlu1 %v2808_v63, %s2628_s15 }
 0x1cf   : > { %696 = vrot.lane.b32.xlu0 %v566_v5, %s2628_s15 }
 0x1d0   : > { %692 = vrot.lane.b32.xlu1 %v564_v6, %s2628_s15 }
 0x1d3   : > { %704 = vrot.lane.b32.xlu0 %v2810_v0, %s2628_s15 }
 0x1d4   : > { %700 = vrot.lane.b32.xlu1 %v568_v7, %s2628_s15 }
 0x1d7   : > { %642 = vrot.lane.b32.xlu0 %v559_v19, %s2628_s15 }
 0x1d8   : > { %638 = vrot.lane.b32.xlu1 %v557_v20, %s2628_s15 }
 0x1db   : > { %650 = vrot.lane.b32.xlu0 %v563_v12, %s2628_s15 }
 0x1dc   : > { %646 = vrot.lane.b32.xlu1 %v561_v13, %s2628_s15 }
 0x1df   : > { %666 = vrot.lane.b32.xlu0 %v559_v19, %s2629_s16 }
 0x1e0   : > { %662 = vrot.lane.b32.xlu1 %v557_v20, %s2629_s16 }
 0x1e3   : > { %674 = vrot.lane.b32.xlu0 %v563_v12, %s2629_s16 }
 0x1e4   : > { %670 = vrot.lane.b32.xlu1 %v561_v13, %s2629_s16 }
 0x1e7   : > { %610 = vrot.lane.b32.xlu0 %v2934_v31, %s2629_s16 }
 0x1e8   : > { %606 = vrot.lane.b32.xlu1 %v2938_v36, %s2629_s16 }
 0x1eb   : > { %618 = vrot.lane.b32.xlu0 %v2942_v37, %s2629_s16 }
 0x1ec   : > { %614 = vrot.lane.b32.xlu1 %v2946_v38, %s2629_s16 }
 0x1ef   : > { %586 = vrot.lane.b32.xlu0 %v2934_v31, %s2628_s15 }
 0x1f0   : > { %582 = vrot.lane.b32.xlu1 %v2938_v36, %s2628_s15 }
 0x1f3   : > { %594 = vrot.lane.b32.xlu0 %v2942_v37, %s2628_s15 }
 0x1f4   : > { %590 = vrot.lane.b32.xlu1 %v2946_v38, %s2628_s15 }
 0x209   : > { %v2958_v60 = vpop.permute.xlu0 %640  ;;  %v2960_v61 = vpop.permute.xlu1 %636 }
 0x20d   : > { %v2962_v62 = vpop.permute.xlu0 %648 }
 0x20e   : > { %v2964_v63 = vpop.permute.xlu1 %644  ;;  %v1028_v6 = vcombine.low %v2958_v60, %v2962_v62 }
 0x20f   : > { %v1012_v7 = vcombine.low %v2960_v61, %v2964_v63 }
 0x210   : > { %v2983_v20 = vrot.slane %v1028_v6, %v2707_v28 }
 0x211   : > { %v2966_v0 = vpop.permute.xlu0 %664  ;;  %v2986_v21 = vrot.slane %v1012_v7, %v2707_v28 }
 0x212   : > { %v2968_v5 = vpop.permute.xlu1 %660 }
 0x213   : > { %v1076_v6 = vcombine.low %v2986_v21, %v2983_v20 }
 0x215   : > { %v2974_v11 = vpop.permute.xlu0 %672  ;;  %v3017_v2 = vrot.slane %v1076_v6, %v2712_v46 }
 0x216   : > { %v1060_v12 = vcombine.low %v2966_v0, %v2974_v11  ;;  %v2978_v13 = vpop.permute.xlu1 %668  ;;  %v1061_v25 = vcombine.high %v2966_v0, %v2974_v11 }
 0x217   : > { %v1044_v19 = vcombine.low %v2968_v5, %v2978_v13  ;;  %3870 = vst [vmem:[#allocation11_spill] sm:$0xff] %v3017_v2 }
 0x218   : > { %v2989_v22 = vrot.slane %v1060_v12, %v2707_v28 }
 0x219   : > { %v2992_v23 = vrot.slane %v1044_v19, %v2707_v28  ;;  %v2994_v24 = vpop.permute.xlu0 %608 }
 0x21a   : > { %v2996_v10 = vpop.permute.xlu1 %604 }
 0x21b   : > { %v1108_v9 = vcombine.low %v2992_v23, %v2989_v22 }
 0x21d   : > { %v3002_v8 = vpop.permute.xlu0 %616  ;;  %v3009_v19 = vrot.slane %v1108_v9, %v2712_v46 }
 0x21e   : > { %v892_v7 = vcombine.low %v2994_v24, %v3002_v8  ;;  %v3006_v12 = vpop.permute.xlu1 %612 }
 0x21f   : > { %3869 = vst [vmem:[#allocation10_spill] sm:$0xff] %v3009_v19  ;;  %v876_v4 = vcombine.low %v2996_v10, %v3006_v12 }
 0x220   : > { %v3014_v3 = vrot.slane %v892_v7, %v2707_v28 }
 0x221   : > { %v3020_v42 = vrot.slane %v876_v4, %v2707_v28  ;;  %v585_v55 = vpop.permute.xlu0 %584 }
 0x222   : > { %v581_v41 = vpop.permute.xlu1 %580 }
 0x223   : > { %v940_v9 = vcombine.low %v3020_v42, %v3014_v3 }
 0x225   : > { %v593_v40 = vpop.permute.xlu0 %592  ;;  %v3027_v7 = vrot.slane %v940_v9, %v2712_v46 }
 0x226   : > { %v788_v58 = vcombine.low %v585_v55, %v593_v40  ;;  %v789_v17 = vcombine.high %v585_v55, %v593_v40  ;;  %v589_v54 = vpop.permute.xlu1 %588 }
 0x227   : > { %3871 = vst [vmem:[#allocation12_spill] sm:$0xff] %v3027_v7  ;;  %v772_v6 = vcombine.low %v581_v41, %v589_v54  ;;  %v773_v57 = vcombine.high %v581_v41, %v589_v54 }
 0x228   : > { %v3030_v4 = vrot.slane %v788_v58, %v2707_v28  ;;  %v3033_v39 = vrot.slane %v789_v17, %v2707_v28  ;;  %v3875_v58 = vcombine.low %v2779_v50, %v2773_v48 }
 0x229   : > { %v3042_v55 = vrot.slane %v772_v6, %v2707_v28  ;;  %v3045_v40 = vrot.slane %v773_v57, %v2707_v28  ;;  %v723_v9 = vpop.permute.xlu0 %722 }
 0x22a   : > { %v719_v54 = vpop.permute.xlu1 %718  ;;  %v3063_v34 = vrot.slane %v3875_v58, %v2712_v46 }
 0x22b   : > { %v836_v17 = vcombine.low %v3042_v55, %v3030_v4  ;;  %v853_v41 = vcombine.high %v3045_v40, %v3033_v39 }
 0x22c   : > { %3876 = vst [vmem:[#allocation16_spill] sm:$0xff] %v3063_v34 }
 0x22d   : > { %v731_v53 = vpop.permute.xlu0 %730  ;;  %v3054_v6 = vrot.slane %v836_v17, %v2712_v46  ;;  %v3057_v57 = vrot.slane %v853_v41, %v2712_v46  ;;  %v3877_v17 = vcombine.high %v2782_v51, %v2776_v49 }
 0x22e   : > { %v1912_v52 = vcombine.low %v723_v9, %v731_v53  ;;  %v1913_v35 = vcombine.high %v723_v9, %v731_v53  ;;  %v727_v59 = vpop.permute.xlu1 %726  ;;  %v1045_v53 = vcombine.high %v2968_v5, %v2978_v13 }
 0x22f   : > { %3873 = vst [vmem:[#allocation14_spill] sm:$0xff] %v3054_v6  ;;  %3874 = vst [vmem:[#allocation15_spill] sm:$0xff] %v3057_v57  ;;  %v1896_v56 = vcombine.low %v719_v54, %v727_v59  ;;  %v1897_v33 = vcombine.high %v719_v54, %v727_v59  ;;  %v3076_v59 = vrot.slane %v3877_v17, %v2712_v46 }
 0x230   : > { %v3070_v9 = vrot.slane %v1912_v52, %v2707_v28  ;;  %v1927_v54 = vrot.slane %v1913_v35, %v2707_v28  ;;  %v1029_v52 = vcombine.high %v2958_v60, %v2962_v62  ;;  %v1013_v17 = vcombine.high %v2960_v61, %v2964_v63 }
 0x231   : > { %3878 = vst [vmem:[#allocation17_spill] sm:$0xff] %v3076_v59  ;;  %v3080_v58 = vrot.slane %v1896_v56, %v2707_v28  ;;  %v1911_v41 = vrot.slane %v1897_v33, %v2707_v28  ;;  %v721_v0 = vpop.permute.xlu0 %720  ;;  %v3094_v35 = vrot.slane %v1061_v25, %v2707_v28  ;;  %v3097_v33 = vrot.slane %v1045_v53, %v2707_v28 }
 0x232   : > { %v717_v11 = vpop.permute.xlu1 %716  ;;  %v3103_v60 = vrot.slane %v1029_v52, %v2707_v28  ;;  %v3106_v61 = vrot.slane %v1013_v17, %v2707_v28 }
 0x233   : > { %v1929_v56 = vcombine.high %v3080_v58, %v3070_v9  ;;  %v1945_v13 = vcombine.high %v1911_v41, %v1927_v54  ;;  %v1124_v25 = vcombine.low %v3097_v33, %v3094_v35 }
 0x235   : > { %v729_v26 = vpop.permute.xlu0 %728  ;;  %v3100_v5 = vrot.slane %v1929_v56, %v2712_v46  ;;  %v3121_v52 = vrot.slane %v1945_v13, %v2712_v46 }
 0x236   : > { %v1300_v27 = vcombine.low %v721_v0, %v729_v26  ;;  %v725_v29 = vpop.permute.xlu1 %724  ;;  %v1301_v17 = vcombine.high %v721_v0, %v729_v26  ;;  %v893_v26 = vcombine.high %v2994_v24, %v3002_v8 }
 0x237   : > { %3879 = vst [vmem:[#allocation18_spill] sm:$0xff] %v3100_v5  ;;  %v1284_v62 = vcombine.low %v717_v11, %v725_v29  ;;  %2137 = vrot.lane.b32.xlu1 %v3100_v5, %s2623_s13  ;;  %3883 = vst [vmem:[#allocation22_spill] sm:$0xff] %v3121_v52  ;;  %v1285_v59 = vcombine.high %v717_v11, %v725_v29  ;;  %v1092_v5 = vcombine.low %v3106_v61, %v3103_v60 }
 0x238   : > { %v3113_v63 = vrot.slane %v1300_v27, %v2707_v28  ;;  %v877_v29 = vcombine.high %v2996_v10, %v3006_v12  ;;  %v1005_v11 = vcombine.high %v3027_v7, %v3039_v1  ;;  %v3146_v30 = vrot.slane %v1301_v17, %v2707_v28 }
 0x239   : > { %v3116_v53 = vrot.slane %v1284_v62, %v2707_v28  ;;  %v3118_v56 = vpop.permute.xlu0 %698  ;;  %v1132_v62 = vrot.slane %v1124_v25, %v2712_v46  ;;  %v1944_v10 = vcombine.low %v1911_v41, %v1927_v54  ;;  %v1100_v25 = vrot.slane %v1092_v5, %v2712_v46 }
 0x23a   : > { %3880 = vst [vmem:[#allocation19_spill] sm:$0xff] %v3113_v63  ;;  %3882 = vst [vmem:[#allocation21_spill] sm:$0xff] %v3118_v56  ;;  %v3123_v57 = vpop.permute.xlu1 %694 }
 0x23b   : > { %3881 = vst [vmem:[#allocation20_spill] sm:$0xff] %v3116_v53  ;;  %3884 = vst [vmem:[#allocation23_spill] sm:$0xff] %v3123_v57  ;;  %v1317_v27 = vcombine.high %v3116_v53, %v3113_v63  ;;  %2217 = vrot.lane.b32.xlu1 %v3121_v52, %s2620_s10  ;;  %v3149_v52 = vrot.slane %v1285_v59, %v2707_v28  ;;  %v3165_v59 = vrot.slane %v893_v26, %v2707_v28 }
 0x23c   : > { %v3180_v5 = vrot.slane %v1944_v10, %v2712_v46  ;;  %v1109_v10 = vcombine.high %v2992_v23, %v2989_v22 }
 0x23d   : > { %v3138_v0 = vpop.permute.xlu0 %706  ;;  %v3143_v13 = vrot.slane %v1317_v27, %v2712_v46  ;;  %v3168_v27 = vrot.slane %v877_v29, %v2707_v28  ;;  %v1332_v1 = vcombine.low %v3149_v52, %v3146_v30 }
 0x23e   : > { %v1808_v8 = vcombine.low %v3118_v56, %v3138_v0  ;;  %v3153_v24 = vpop.permute.xlu1 %702 }
 0x23f   : > { %3885 = vst [vmem:[#allocation24_spill] sm:$0xff] %v3143_v13  ;;  %3886 = vst [vmem:[#allocation25_spill] sm:$0xff] %v3153_v24  ;;  %v1792_v12 = vcombine.low %v3123_v57, %v3153_v24  ;;  %1971 = vrot.lane.b32.xlu1 %v1005_v11, %s2621_s11  ;;  %1997 = vrot.lane.b32.xlu0 %v3143_v13, %s2623_s13  ;;  %v1144_v11 = vcombine.low %v1100_v25, %v1132_v62 }
 0x240   : > { %v3162_v17 = vrot.slane %v1808_v8, %v2707_v28  ;;  %v956_v29 = vcombine.low %v3168_v27, %v3165_v59 }
 0x241   : > { %v3171_v54 = vrot.slane %v1792_v12, %v2707_v28  ;;  %v3173_v41 = vpop.permute.xlu0 %696  ;;  %v869_v12 = vcombine.high %v3063_v34, %v3054_v6  ;;  %v1077_v6 = vcombine.high %v2986_v21, %v2983_v20 }
 0x242   : > { %v3177_v7 = vpop.permute.xlu1 %692  ;;  %v964_v20 = vrot.slane %v956_v29, %v2712_v46  ;;  %v852_v29 = vcombine.low %v3045_v40, %v3033_v39  ;;  %v3894_v39 = vcombine.low %v2834_v18, %v2831_v16 }
 0x243   : > { %v1856_v26 = vcombine.low %v3171_v54, %v3162_v17  ;;  %2033 = vrot.lane.b32.xlu1 %v1144_v11, %s2622_s12  ;;  %2177 = vrot.lane.b32.xlu0 %v3180_v5, %s2622_s12  ;;  %v3200_v11 = vrot.slane %v1332_v1, %v2712_v46  ;;  %v3889_v1 = vcombine.low %v2828_v15, %v2825_v14 }
 0x244   : > { %v3260_v40 = vrot.slane %v3894_v39, %v2712_v46 }
 0x245   : > { %v3189_v8 = vpop.permute.xlu0 %704  ;;  %3887 = vst [vmem:[#allocation26_spill] sm:$0xff] %v3200_v11  ;;  %v3203_v53 = vrot.slane %v1856_v26, %v2712_v46  ;;  %v3219_v23 = vrot.slane %v3889_v1, %v2712_v46 }
 0x246   : > { %v1196_v13 = vcombine.low %v3173_v41, %v3189_v8  ;;  %v3197_v63 = vpop.permute.xlu1 %700  ;;  %3895 = vst [vmem:[#allocation31_spill] sm:$0xff] %v3260_v40 }
 0x247   : > { %3888 = vst [vmem:[#allocation27_spill] sm:$0xff] %v3203_v53  ;;  %v1180_v57 = vcombine.low %v3177_v7, %v3197_v63  ;;  %1969 = vrot.lane.b32.xlu1 %v869_v12, %s2621_s11  ;;  %2037 = vrot.lane.b32.xlu0 %v3200_v11, %s2622_s12  ;;  %3890 = vst [vmem:[#allocation28_spill] sm:$0xff] %v3219_v23  ;;  %v1145_v12 = vcombine.high %v1100_v25, %v1132_v62 }
 0x248   : > { %v3211_v22 = vrot.slane %v1196_v13, %v2707_v28  ;;  %v1141_v13 = vcombine.high %v3017_v2, %v3009_v19  ;;  %v1123_v11 = vrot.slane %v1109_v10, %v2712_v46  ;;  %v1091_v25 = vrot.slane %v1077_v6, %v2712_v46 }
 0x249   : > { %v3222_v26 = vrot.slane %v1180_v57, %v2707_v28  ;;  %v3224_v34 = vpop.permute.xlu0 %642  ;;  %v3892_v57 = vcombine.low %v2770_v47, %v2764_v44  ;;  %v1333_v19 = vcombine.high %v3149_v52, %v3146_v30  ;;  %v860_v30 = vrot.slane %v852_v29, %v2712_v46 }
 0x24a   : > { %v3227_v21 = vpop.permute.xlu1 %638  ;;  %v941_v52 = vcombine.high %v3020_v42, %v3014_v3  ;;  %v1928_v3 = vcombine.low %v3080_v58, %v3070_v9 }
 0x24b   : > { %3891 = vst [vmem:[#allocation29_spill] sm:$0xff] %v3227_v21  ;;  %v1244_v1 = vcombine.low %v3222_v26, %v3211_v22  ;;  %2053 = vrot.lane.b32.xlu1 %v1145_v12, %s2617_s7  ;;  %v996_v62 = vrot.slane %v3892_v57, %v2712_v46  ;;  %1973 = vrot.lane.b32.xlu0 %v1141_v13, %s2621_s11 }
 0x24c   : > { %v1142_v12 = vcombine.low %v1091_v25, %v1123_v11 }
 0x24d   : > { %v3245_v10 = vpop.permute.xlu0 %650  ;;  %v1008_v24 = vcombine.low %v964_v20, %v996_v62  ;;  %v3252_v56 = vrot.slane %v1244_v1, %v2712_v46  ;;  %v1009_v13 = vcombine.high %v964_v20, %v996_v62 }
 0x24e   : > { %v3249_v2 = vpop.permute.xlu1 %646  ;;  %v1640_v62 = vcombine.low %v3224_v34, %v3245_v10 }
 0x24f   : > { %3893 = vst [vmem:[#allocation30_spill] sm:$0xff] %v3252_v56  ;;  %2031 = vrot.lane.b32.xlu1 %v1008_v24, %s2622_s12  ;;  %1993 = vrot.lane.b32.xlu0 %v1142_v12, %s2623_s13  ;;  %v3270_v24 = vrot.slane %v1333_v19, %v2712_v46  ;;  %v3897_v12 = vcombine.low %v2782_v51, %v2776_v49 }
 0x250   : > { %v1624_v42 = vcombine.low %v3227_v21, %v3249_v2  ;;  %v1143_v51 = vcombine.high %v1091_v25, %v1123_v11  ;;  %v3298_v57 = vrot.slane %v1640_v62, %v2707_v28  ;;  %v3898_v11 = vcombine.high %v2767_v45, %v2761_v43 }
 0x251   : > { %v3262_v6 = vpop.permute.xlu0 %666  ;;  %3896 = vst [vmem:[#allocation32_spill] sm:$0xff] %v3270_v24  ;;  %v828_v20 = vrot.slane %v3897_v12, %v2712_v46  ;;  %v1125_v45 = vcombine.high %v3097_v33, %v3094_v35  ;;  %v1093_v35 = vcombine.high %v3106_v61, %v3103_v60 }
 0x252   : > { %v3267_v1 = vpop.permute.xlu1 %662  ;;  %v3301_v9 = vrot.slane %v1624_v42, %v2707_v28  ;;  %v987_v25 = vrot.slane %v3898_v11, %v2712_v46  ;;  %v837_v42 = vcombine.high %v3042_v55, %v3030_v4 }
 0x253   : > { %2051 = vrot.lane.b32.xlu1 %v1009_v13, %s2617_s7  ;;  %2077 = vrot.lane.b32.xlu0 %v3270_v24, %s2620_s10  ;;  %v872_v29 = vcombine.low %v828_v20, %v860_v30  ;;  %v955_v13 = vrot.slane %v941_v52, %v2712_v46  ;;  %v873_v62 = vcombine.high %v828_v20, %v860_v30  ;;  %v3901_v20 = vmov 0.0  }
 0x254   : > { %v3317_v24 = vrot.slane %v1928_v3, %v2712_v46  ;;  %v1688_v43 = vcombine.low %v3301_v9, %v3298_v57  ;;  %v851_v11 = vrot.slane %v837_v42, %v2712_v46  ;;  %v1368_v42 = vcombine.low %v2934_v31, %v2942_v37 }
 0x255   : > { %v3287_v19 = vpop.permute.xlu0 %674 }
 0x256   : > { %v1672_v39 = vcombine.low %v3262_v6, %v3287_v19  ;;  %v3291_v49 = vpop.permute.xlu1 %670  ;;  %3899 = vst [vmem:[#allocation33_spill] sm:$0xff] %v3317_v24  ;;  %v1960_v4 = vcombine.high %v3317_v24, %v3901_v20  ;;  %v1245_v24 = vcombine.high %v3222_v26, %v3211_v22 }
 0x257   : > { %v1656_v12 = vcombine.low %v3267_v1, %v3291_v49  ;;  %2029 = vrot.lane.b32.xlu1 %v872_v29, %s2622_s12  ;;  %2013 = vrot.lane.b32.xlu0 %v1143_v51, %s2619_s9  ;;  %v1006_v51 = vcombine.low %v955_v13, %v987_v25 }
 0x258   : > { %v3304_v58 = vrot.slane %v1672_v39, %v2707_v28 }
 0x259   : > { %v3312_v52 = vrot.slane %v1656_v12, %v2707_v28  ;;  %v3314_v29 = vpop.permute.xlu0 %610  ;;  %v1007_v12 = vcombine.high %v955_v13, %v987_v25  ;;  %v3902_v13 = vcombine.high %v2779_v50, %v2773_v48  ;;  %v1352_v48 = vcombine.low %v2938_v36, %v2946_v38 }
 0x25a   : > { %v3321_v39 = vpop.permute.xlu1 %606 }
 0x25b   : > { %3900 = vst [vmem:[#allocation34_spill] sm:$0xff] %v3321_v39  ;;  %v1720_v21 = vcombine.low %v3312_v52, %v3304_v58  ;;  %2049 = vrot.lane.b32.xlu1 %v873_v62, %s2617_s7  ;;  %1991 = vrot.lane.b32.xlu0 %v1006_v51, %s2623_s13  ;;  %v819_v25 = vrot.slane %v3902_v13, %v2712_v46 }
 0x25d   : > { %v3331_v30 = vpop.permute.xlu0 %618  ;;  %v3341_v62 = vrot.slane %v1720_v21, %v2712_v46  ;;  %v3357_v21 = vrot.slane %v1688_v43, %v2712_v46  ;;  %v870_v43 = vcombine.low %v819_v25, %v851_v11 }
 0x25e   : > { %v1504_v55 = vcombine.low %v3314_v29, %v3331_v30  ;;  %v3337_v3 = vpop.permute.xlu1 %614 }
 0x25f   : > { %v1488_v51 = vcombine.low %v3321_v39, %v3337_v3  ;;  %2117 = vrot.lane.b32.xlu1 %v1960_v4, %s2621_s11  ;;  %2011 = vrot.lane.b32.xlu0 %v1007_v12, %s2619_s9  ;;  %v1857_v4 = vcombine.high %v3171_v54, %v3162_v17  ;;  %v1139_v12 = vrot.slane %v1125_v45, %v2712_v46 }
 0x260   : > { %v3349_v33 = vrot.slane %v1504_v55, %v2707_v28  ;;  %v1889_v55 = vcombine.high %v3219_v23, %v3203_v53  ;;  %v1107_v54 = vrot.slane %v1093_v35, %v2712_v46  ;;  %v1277_v45 = vcombine.high %v3260_v40, %v3252_v56  ;;  %v3904_v56 = vld [vmem:[#allocation7_spill] sm:$0xff] }
 0x261   : > { %v3364_v60 = vrot.slane %v1488_v51, %v2707_v28  ;;  %v3366_v61 = vpop.permute.xlu0 %586  ;;  %v3383_v51 = vrot.slane %v1368_v42, %v2707_v28  ;;  %v3392_v13 = vrot.slane %v1857_v4, %v2712_v46  ;;  %v3903_v4 = vcombine.high %v2828_v15, %v2825_v14 }
 0x262   : > { %v3372_v50 = vpop.permute.xlu1 %582  ;;  %v1146_v22 = vcombine.low %v1107_v54, %v1139_v12  ;;  %v3905_v40 = vcombine.low %v2856_v32, %v3904_v56  ;;  %v1259_v14 = vrot.slane %v1245_v24, %v2712_v46  ;;  %v957_v15 = vcombine.high %v3168_v27, %v3165_v59 }
 0x263   : > { %v1552_v17 = vcombine.low %v3364_v60, %v3349_v33  ;;  %2115 = vrot.lane.b32.xlu1 %v1889_v55, %s2621_s11  ;;  %1989 = vrot.lane.b32.xlu0 %v870_v43, %s2623_s13  ;;  %v3395_v55 = vrot.slane %v1352_v48, %v2707_v28  ;;  %v3411_v48 = vrot.slane %v3903_v4, %v2712_v46 }
 0x264   : > { %v3421_v23 = vrot.slane %v3905_v40, %v2712_v46 }
 0x265   : > { %v3387_v53 = vpop.permute.xlu0 %594  ;;  %v3398_v43 = vrot.slane %v1552_v17, %v2712_v46 }
 0x266   : > { %v1400_v35 = vcombine.low %v3366_v61, %v3387_v53  ;;  %v3402_v42 = vpop.permute.xlu1 %590 }
 0x267   : > { %v1384_v26 = vcombine.low %v3372_v50, %v3402_v42  ;;  %1975 = vrot.lane.b32.xlu1 %v1277_v45, %s2621_s11  ;;  %2073 = vrot.lane.b32.xlu0 %v1146_v22, %s2620_s10  ;;  %v1890_v45 = vcombine.low %v3411_v48, %v3392_v13  ;;  %v1416_v22 = vcombine.low %v3395_v55, %v3383_v51 }
 0x268   : > { %v3414_v17 = vrot.slane %v1400_v35, %v2707_v28  ;;  %v871_v35 = vcombine.high %v819_v25, %v851_v11  ;;  %v1147_v11 = vcombine.high %v1107_v54, %v1139_v12  ;;  %v971_v25 = vrot.slane %v957_v15, %v2712_v46 }
 0x269   : > { %v3424_v39 = vrot.slane %v1384_v26, %v2707_v28  ;;  %v3906_v26 = vcombine.high %v2834_v18, %v2831_v16  ;;  %v3448_v4 = vrot.slane %v1416_v22, %v2712_v46  ;;  %v3907_v16 = vcombine.high %v2770_v47, %v2764_v44  ;;  %v3908_v22 = vld [vmem:[#allocation21_spill] sm:$0xff] }
 0x26a   : > { %v1197_v12 = vcombine.high %v3173_v41, %v3189_v8  ;;  %v1181_v54 = vcombine.high %v3177_v7, %v3197_v63  ;;  %v1753_v15 = vcombine.high %v3357_v21, %v3341_v62  ;;  %v1721_v41 = vcombine.high %v3312_v52, %v3304_v58 }
 0x26b   : > { %v1448_v40 = vcombine.low %v3424_v39, %v3414_v17  ;;  %2135 = vrot.lane.b32.xlu1 %v1890_v45, %s2623_s13  ;;  %v1227_v24 = vrot.slane %v3906_v26, %v2712_v46  ;;  %2009 = vrot.lane.b32.xlu0 %v871_v35, %s2619_s9  ;;  %v1003_v18 = vrot.slane %v3907_v16, %v2712_v46  ;;  %v3909_v26 = vld [vmem:[#allocation25_spill] sm:$0xff]  ;;  %v3912_v16 = vld [vmem:[#allocation19_spill] sm:$0xff] }
 0x26c   : > { %v3467_v44 = vrot.slane %v1197_v12, %v2707_v28  ;;  %v3470_v47 = vrot.slane %v1181_v54, %v2707_v28  ;;  %v1962_v7 = vcombine.high %v3180_v5, %v3901_v20  ;;  %v1689_v8 = vcombine.high %v3301_v9, %v3298_v57  ;;  %v3915_v12 = vld [vmem:[#allocation17_spill] sm:$0xff] }
 0x26d   : > { %v3444_v59 = vrot.slane %v1448_v40, %v2712_v46  ;;  %v1278_v27 = vcombine.low %v1227_v24, %v1259_v14  ;;  %v1010_v35 = vcombine.low %v971_v25, %v1003_v18  ;;  %v1011_v63 = vcombine.high %v971_v25, %v1003_v18  ;;  %v3911_v25 = vld [vmem:[#allocation20_spill] sm:$0xff]  ;;  %v3914_v18 = vld [vmem:[#allocation15_spill] sm:$0xff] }
 0x26e   : > { %v1809_v40 = vcombine.high %v3908_v22, %v3138_v0  ;;  %v1260_v58 = vcombine.low %v3470_v47, %v3467_v44  ;;  %v1735_v52 = vrot.slane %v1721_v41, %v2712_v46  ;;  %v1279_v5 = vcombine.high %v1227_v24, %v1259_v14 }
 0x26f   : > { %1995 = vrot.lane.b32.xlu1 %v1278_v27, %s2623_s13  ;;  %2093 = vrot.lane.b32.xlu0 %v1147_v11, %s2618_s8  ;;  %v1480_v45 = vcombine.low %v3448_v4, %v3444_v59  ;;  %v3910_v27 = vld [vmem:[#allocation23_spill] sm:$0xff]  ;;  %v3913_v57 = vcombine.low %v3911_v25, %v3912_v16  ;;  %v874_v0 = vcombine.low %v3915_v12, %v3914_v18  ;;  %v3920_v25 = vld [vmem:[#allocation24_spill] sm:$0xff] }
 0x270   : > { %v1793_v11 = vcombine.high %v3910_v27, %v3909_v26  ;;  %v1703_v54 = vrot.slane %v1689_v8, %v2712_v46  ;;  %v1268_v14 = vrot.slane %v1260_v58, %v2712_v46  ;;  %v1349_v16 = vcombine.high %v3920_v25, %v3901_v20 }
 0x271   : > { %v3491_v9 = vrot.slane %v3913_v57, %v2712_v46  ;;  %v3921_v57 = vld [vmem:[#allocation4_spill] sm:$0xff] }
 0x272   : > { %v1754_v24 = vcombine.low %v1703_v54, %v1735_v52 }
 0x273   : > { %2113 = vrot.lane.b32.xlu1 %v1753_v15, %s2621_s11  ;;  %2071 = vrot.lane.b32.xlu0 %v1010_v35, %s2620_s10  ;;  %v1823_v15 = vrot.slane %v1809_v40, %v2707_v28  ;;  %v1807_v35 = vrot.slane %v1793_v11, %v2707_v28  ;;  %v1348_v41 = vcombine.high %v3491_v9, %v3901_v20  ;;  %v3919_v40 = vld [vmem:[#allocation18_spill] sm:$0xff] }
 0x274   : > { %v1961_v11 = vcombine.high %v3919_v40, %v3901_v20 }
 0x275   : > { %v1872_v26 = vcombine.low %v1807_v35, %v1823_v15  ;;  %v1873_v40 = vcombine.high %v1807_v35, %v1823_v15 }
 0x277   : > { %2197 = vrot.lane.b32.xlu1 %v1962_v7, %s2617_s7  ;;  %2091 = vrot.lane.b32.xlu0 %v1011_v63, %s2618_s8  ;;  %v3916_v7 = vld [vmem:[#allocation6_spill] sm:$0xff]  ;;  %v3917_v63 = vld [vmem:[#allocation5_spill] sm:$0xff]  ;;  %v1880_v58 = vrot.slane %v1872_v26, %v2712_v46  ;;  %v1891_v26 = vcombine.high %v3411_v48, %v3392_v13  ;;  %v1641_v13 = vcombine.high %v3224_v34, %v3245_v10 }
 0x278   : > { %v3918_v8 = vcombine.low %v3916_v7, %v3917_v63  ;;  %v3925_v48 = vld [vmem:[#allocation29_spill] sm:$0xff] }
 0x279   : > { %v1625_v15 = vcombine.high %v3925_v48, %v3249_v2  ;;  %v1655_v35 = vrot.slane %v1641_v13, %v2707_v28  ;;  %v1385_v13 = vcombine.high %v3372_v50, %v3402_v42 }
 0x27a   : > { %v1236_v22 = vrot.slane %v3918_v8, %v2712_v46  ;;  %v1553_v8 = vcombine.high %v3364_v60, %v3349_v33  ;;  %v3924_v33 = vld [vmem:[#allocation26_spill] sm:$0xff] }
 0x27b   : > { %2015 = vrot.lane.b32.xlu1 %v1279_v5, %s2619_s9  ;;  %2069 = vrot.lane.b32.xlu0 %v874_v0, %s2620_s10  ;;  %v1617_v5 = vcombine.high %v3398_v43, %v3421_v23  ;;  %v3922_v0 = vld [vmem:[#allocation3_spill] sm:$0xff]  ;;  %v1350_v60 = vcombine.high %v3924_v33, %v3901_v20  ;;  %v1399_v42 = vrot.slane %v1385_v13, %v2707_v28 }
 0x27c   : > { %v1280_v27 = vcombine.low %v1236_v22, %v1268_v14  ;;  %v3535_v25 = vrot.slane %v1553_v8, %v2712_v46  ;;  %v1755_v8 = vcombine.high %v1703_v54, %v1735_v52  ;;  %v1417_v52 = vcombine.high %v3395_v55, %v3383_v51 }
 0x27d   : > { %v1401_v55 = vcombine.high %v3366_v61, %v3387_v53  ;;  %v3930_v53 = vcombine.high %v3916_v7, %v3917_v63 }
 0x27f   : > { %2133 = vrot.lane.b32.xlu1 %v1754_v24, %s2623_s13  ;;  %1977 = vrot.lane.b32.xlu0 %v1348_v41, %s2621_s11  ;;  %v3923_v24 = vcombine.low %v3921_v57, %v3922_v0  ;;  %v1243_v61 = vrot.slane %v3930_v53, %v2712_v46  ;;  %v1415_v50 = vrot.slane %v1401_v55, %v2707_v28 }
 0x281   : > { %v1848_v41 = vrot.slane %v3923_v24, %v2712_v46  ;;  %v1464_v7 = vcombine.low %v1399_v42, %v1415_v50 }
 0x283   : > { %2035 = vrot.lane.b32.xlu1 %v1280_v27, %s2622_s12  ;;  %2157 = vrot.lane.b32.xlu0 %v1961_v11, %s2619_s9  ;;  %v1893_v27 = vcombine.high %v1848_v41, %v1880_v58  ;;  %v1673_v11 = vcombine.high %v3262_v6, %v3287_v19  ;;  %v3926_v6 = vcombine.high %v2856_v32, %v3904_v56 }
 0x284   : > { %v3552_v19 = vrot.slane %v1873_v40, %v2712_v46  ;;  %v1892_v10 = vcombine.low %v1848_v41, %v1880_v58  ;;  %v3927_v32 = vcombine.high %v3921_v57, %v3922_v0  ;;  %v1481_v57 = vcombine.high %v3448_v4, %v3444_v59  ;;  %v3928_v0 = vld [vmem:[#allocation22_spill] sm:$0xff] }
 0x286   : > { %v3565_v56 = vrot.slane %v3927_v32, %v2712_v46 }
 0x287   : > { %2111 = vrot.lane.b32.xlu1 %v1617_v5, %s2621_s11  ;;  %2017 = vrot.lane.b32.xlu0 %v1349_v16, %s2619_s9  ;;  %v1657_v5 = vcombine.high %v3267_v1, %v3291_v49  ;;  %v1281_v16 = vcombine.high %v1236_v22, %v1268_v14  ;;  %v3548_v1 = vrot.slane %v3926_v6, %v2712_v46 }
 0x288   : > { %v1687_v49 = vrot.slane %v1673_v11, %v2707_v28  ;;  %v1639_v14 = vrot.slane %v1625_v15, %v2707_v28  ;;  %v1894_v24 = vcombine.low %v3565_v56, %v3552_v19  ;;  %v1353_v15 = vcombine.high %v2938_v36, %v2946_v38  ;;  %v3931_v36 = vld [vmem:[#allocation34_spill] sm:$0xff] }
 0x289   : > { %v1671_v34 = vrot.slane %v1657_v5, %v2707_v28  ;;  %v1618_v2 = vcombine.low %v3535_v25, %v3548_v1 }
 0x28a   : > { %v1704_v58 = vcombine.low %v1639_v14, %v1655_v35  ;;  %v1705_v33 = vcombine.high %v1639_v14, %v1655_v35  ;;  %v1472_v14 = vrot.slane %v1464_v7, %v2712_v46 }
 0x28b   : > { %2195 = vrot.lane.b32.xlu1 %v1893_v27, %s2617_s7  ;;  %2155 = vrot.lane.b32.xlu0 %v1891_v26, %s2619_s9  ;;  %v1736_v22 = vcombine.low %v1671_v34, %v1687_v49  ;;  %v1449_v27 = vcombine.high %v3424_v39, %v3414_v17  ;;  %v1963_v26 = vcombine.high %v3928_v0, %v3901_v20  ;;  %v3929_v17 = vld [vmem:[#allocation32_spill] sm:$0xff]  ;;  %v3933_v0 = vld [vmem:[#allocation13_spill] sm:$0xff] }
 0x28c   : > { %v1712_v40 = vrot.slane %v1704_v58, %v2712_v46  ;;  %v1737_v54 = vcombine.high %v1671_v34, %v1687_v49  ;;  %v1261_v39 = vcombine.high %v3470_v47, %v3467_v44  ;;  %v1719_v6 = vrot.slane %v1705_v33, %v2712_v46 }
 0x28d   : > { %v1744_v41 = vrot.slane %v1736_v22, %v2712_v46  ;;  %v1463_v11 = vrot.slane %v1449_v27, %v2712_v46 }
 0x28e   : > { %v1751_v51 = vrot.slane %v1737_v54, %v2712_v46  ;;  %v1275_v44 = vrot.slane %v1261_v39, %v2712_v46  ;;  %v3936_v54 = vld [vmem:[#allocation8_spill] sm:$0xff] }
 0x28f   : > { %2055 = vrot.lane.b32.xlu1 %v1281_v16, %s2617_s7  ;;  %2057 = vrot.lane.b32.xlu0 %v1350_v60, %s2617_s7  ;;  %v1757_v5 = vcombine.high %v1712_v40, %v1744_v41  ;;  %v1351_v16 = vcombine.high %v3929_v17, %v3901_v20  ;;  %v1431_v60 = vrot.slane %v1417_v52, %v2712_v46  ;;  %v3935_v52 = vld [vmem:[#allocation9_spill] sm:$0xff] }
 0x290   : > { %v1756_v47 = vcombine.low %v1712_v40, %v1744_v41  ;;  %v1369_v20 = vcombine.high %v2934_v31, %v2942_v37  ;;  %v1758_v49 = vcombine.low %v1719_v6, %v1751_v51  ;;  %v1505_v31 = vcombine.high %v3314_v29, %v3331_v30 }
 0x291   : > { %v1482_v48 = vcombine.low %v1431_v60, %v1463_v11  ;;  %v1489_v37 = vcombine.high %v3931_v36, %v3337_v3  ;;  %v1282_v38 = vcombine.low %v1243_v61, %v1275_v44  ;;  %v1619_v30 = vcombine.high %v3535_v25, %v3548_v1 }
 0x292   : > { %v1383_v34 = vrot.slane %v1369_v20, %v2707_v28  ;;  %v1519_v35 = vrot.slane %v1505_v31, %v2707_v28  ;;  %v1759_v22 = vcombine.high %v1719_v6, %v1751_v51  ;;  %v1465_v25 = vcombine.high %v1399_v42, %v1415_v50  ;;  %v3938_v20 = vld [vmem:[#allocation16_spill] sm:$0xff] }
 0x293   : > { %2131 = vrot.lane.b32.xlu1 %v1618_v2, %s2623_s13  ;;  %2175 = vrot.lane.b32.xlu0 %v1892_v10, %s2622_s12  ;;  %v1367_v2 = vrot.slane %v1353_v15, %v2707_v28  ;;  %v1483_v10 = vcombine.high %v1431_v60, %v1463_v11  ;;  %v1503_v29 = vrot.slane %v1489_v37, %v2707_v28  ;;  %v3939_v15 = vld [vmem:[#allocation14_spill] sm:$0xff] }
 0x294   : > { %v3937_v11 = vcombine.low %v3935_v52, %v3936_v54  ;;  %v1479_v39 = vrot.slane %v1465_v25, %v2712_v46  ;;  %v3940_v6 = vcombine.low %v3938_v20, %v3939_v15  ;;  %v3941_v50 = vcombine.high %v3935_v52, %v3936_v54  ;;  %v3946_v52 = vld [vmem:[#allocation28_spill] sm:$0xff]  ;;  %v3947_v54 = vld [vmem:[#allocation27_spill] sm:$0xff] }
 0x295   : > { %v1432_v3 = vcombine.low %v1367_v2, %v1383_v34  ;;  %v1569_v33 = vcombine.high %v1503_v29, %v1519_v35 }
 0x296   : > { %v1615_v42 = vrot.slane %v3941_v50, %v2712_v46 }
 0x297   : > { %2215 = vrot.lane.b32.xlu1 %v1894_v24, %s2620_s10  ;;  %2153 = vrot.lane.b32.xlu0 %v1755_v8, %s2619_s9  ;;  %v1568_v24 = vcombine.low %v1503_v29, %v1519_v35  ;;  %v1895_v8 = vcombine.high %v3565_v56, %v3552_v19  ;;  %v1440_v28 = vrot.slane %v1432_v3, %v2712_v46 }
 0x298   : > { %v1283_v19 = vcombine.high %v1243_v61, %v1275_v44  ;;  %v1433_v56 = vcombine.high %v1367_v2, %v1383_v34  ;;  %v1583_v44 = vrot.slane %v1569_v33, %v2712_v46  ;;  %v3943_v34 = vld [vmem:[#allocation10_spill] sm:$0xff] }
 0x299   : > { %v1484_v41 = vcombine.low %v1440_v28, %v1472_v14  ;;  %v1576_v27 = vrot.slane %v1568_v24, %v2712_v46  ;;  %v3950_v33 = vld [vmem:[#allocation30_spill] sm:$0xff] }
 0x29a   : > { %v1447_v55 = vrot.slane %v1433_v56, %v2712_v46  ;;  %v1622_v37 = vcombine.low %v1583_v44, %v1615_v42  ;;  %v1623_v29 = vcombine.high %v1583_v44, %v1615_v42 }
 0x29b   : > { %2109 = vrot.lane.b32.xlu1 %v1481_v57, %s2621_s11  ;;  %2237 = vrot.lane.b32.xlu0 %v1963_v26, %s2618_s8  ;;  %v3932_v57 = vld [vmem:[#allocation12_spill] sm:$0xff] }
 0x29c   : > { %v3934_v26 = vcombine.low %v3932_v57, %v3933_v0  ;;  %v1487_v31 = vcombine.high %v1447_v55, %v1479_v39 }
 0x29f   : > { %2193 = vrot.lane.b32.xlu1 %v1757_v5, %s2617_s7  ;;  %2097 = vrot.lane.b32.xlu0 %v1351_v16, %s2618_s8  ;;  %v1608_v5 = vrot.slane %v3937_v11, %v2712_v46  ;;  %v1485_v16 = vcombine.high %v1440_v28, %v1472_v14  ;;  %v3945_v14 = vcombine.high %v3915_v12, %v3914_v18 }
 0x2a0   : > { %v3948_v11 = vcombine.low %v3946_v52, %v3947_v54 }
 0x2a1   : > { %v1620_v51 = vcombine.low %v1576_v27, %v1608_v5  ;;  %v1621_v61 = vcombine.high %v1576_v27, %v1608_v5 }
 0x2a3   : > { %2129 = vrot.lane.b32.xlu1 %v1482_v48, %s2623_s13  ;;  %2173 = vrot.lane.b32.xlu0 %v1756_v47, %s2622_s12  ;;  %v1486_v48 = vcombine.low %v1447_v55, %v1479_v39 }
 0x2a7   : > { %2213 = vrot.lane.b32.xlu1 %v1758_v49, %s2620_s10  ;;  %2075 = vrot.lane.b32.xlu0 %v1282_v38, %s2620_s10  ;;  %v3942_v38 = vld [vmem:[#allocation11_spill] sm:$0xff] }
 0x2a8   : > { %v3944_v2 = vcombine.low %v3942_v38, %v3943_v34 }
 0x2a9   : > { %v3619_v63 = vpop.permute.xlu1 %2137 }
 0x2ab   : > { %2149 = vrot.lane.b32.xlu1 %v1483_v10, %s2619_s9  ;;  %2151 = vrot.lane.b32.xlu0 %v1619_v30, %s2619_s9 }
 0x2ad   : > { %v3628_v32 = vpop.permute.xlu1 %2217 }
 0x2af   : > { %2233 = vrot.lane.b32.xlu1 %v1759_v22, %s2618_s8  ;;  %2235 = vrot.lane.b32.xlu0 %v1895_v8, %s2618_s8 }
 0x2b1   : > { %v3635_v1 = vpop.permute.xlu0 %1997  ;;  %v1972_v58 = vpop.permute.xlu1 %1971 }
 0x2b2   : > { %v2246_v40 = vsel %vm2244_vm3, %v3934_v26, %v1972_v58 }
 0x2b3   : > { %2169 = vrot.lane.b32.xlu1 %v1484_v41, %s2622_s12  ;;  %2095 = vrot.lane.b32.xlu0 %v1283_v19, %s2618_s8 }
 0x2b5   : > { %v2034_v17 = vpop.permute.xlu1 %2033  ;;  %v3649_v60 = vpop.permute.xlu0 %2177 }
 0x2b7   : > { %2189 = vrot.lane.b32.xlu1 %v1485_v16, %s2617_s7  ;;  %2171 = vrot.lane.b32.xlu0 %v1620_v51, %s2622_s12  ;;  %v3949_v16 = vld [vmem:[#allocation31_spill] sm:$0xff] }
 0x2b8   : > { %v3951_v51 = vcombine.low %v3949_v16, %v3950_v33 }
 0x2b9   : > { %v1970_v13 = vpop.permute.xlu1 %1969  ;;  %v3655_v47 = vpop.permute.xlu0 %2037 }
 0x2ba   : > { %v2245_v53 = vsel %vm2244_vm3, %v3940_v6, %v1970_v13 }
 0x2bb   : > { %2209 = vrot.lane.b32.xlu1 %v1486_v48, %s2620_s10  ;;  %2191 = vrot.lane.b32.xlu0 %v1621_v61, %s2617_s7 }
 0x2bd   : > { %v2054_v49 = vpop.permute.xlu1 %2053  ;;  %v1974_v36 = vpop.permute.xlu0 %1973 }
 0x2be   : > { %v2247_v7 = vsel %vm2244_vm3, %v3944_v2, %v1974_v36 }
 0x2bf   : > { %2229 = vrot.lane.b32.xlu1 %v1487_v31, %s2618_s8  ;;  %2211 = vrot.lane.b32.xlu0 %v1622_v37, %s2620_s10 }
 0x2c1   : > { %v2032_v10 = vpop.permute.xlu1 %2031  ;;  %v1994_v35 = vpop.permute.xlu0 %1993 }
 0x2c2   : > { %v2253_v30 = vsel %vm2250_vm4, %v2247_v7, %v1994_v35 }
 0x2c3   : > { %2231 = vrot.lane.b32.xlu0 %v1623_v29, %s2618_s8  ;;  %v3952_v29 = vld [vmem:[#allocation33_spill] sm:$0xff] }
 0x2c5   : > { %v2052_v46 = vpop.permute.xlu1 %2051  ;;  %v3675_v3 = vpop.permute.xlu0 %2077 }
 0x2c7   : > { %2089 = vrot.lane.b32.xlu0 %v3945_v14, %s2618_s8 }
 0x2c9   : > { %v2030_v22 = vpop.permute.xlu1 %2029  ;;  %v2014_v24 = vpop.permute.xlu0 %2013 }
 0x2ca   : > { %v2259_v8 = vsel %vm2256_vm5, %v2253_v30, %v2014_v24 }
 0x2cb   : > { %v2265_v28 = vsel %vm2262_vm6, %v2259_v8, %v2034_v17 }
 0x2cc   : > { %v2271_v58 = vsel %vm2268_vm7, %v2265_v28, %v2054_v49 }
 0x2cd   : > { %v2050_v25 = vpop.permute.xlu1 %2049  ;;  %v1992_v41 = vpop.permute.xlu0 %1991 }
 0x2ce   : > { %v2252_v27 = vsel %vm2250_vm4, %v2246_v40, %v1992_v41 }
 0x2d1   : > { %v2118_v57 = vpop.permute.xlu1 %2117  ;;  %v2012_v0 = vpop.permute.xlu0 %2011 }
 0x2d2   : > { %v2258_v18 = vsel %vm2256_vm5, %v2252_v27, %v2012_v0  ;;  %v2290_v30 = vsel %vm2244_vm3, %v3952_v29, %v2118_v57 }
 0x2d3   : > { %v2264_v12 = vsel %vm2262_vm6, %v2258_v18, %v2032_v10 }
 0x2d4   : > { %v2270_v19 = vsel %vm2268_vm7, %v2264_v12, %v2052_v46 }
 0x2d5   : > { %v2116_v26 = vpop.permute.xlu1 %2115  ;;  %v1990_v56 = vpop.permute.xlu0 %1989 }
 0x2d6   : > { %v3692_v5 = vsel %vm2244_vm3, %v3948_v11, %v2116_v26  ;;  %v2251_v39 = vsel %vm2250_vm4, %v2245_v53, %v1990_v56 }
 0x2d9   : > { %v1976_v40 = vpop.permute.xlu1 %1975  ;;  %v2074_v17 = vpop.permute.xlu0 %2073 }
 0x2da   : > { %v3699_v55 = vsel %vm2244_vm3, %v3951_v51, %v1976_v40  ;;  %v2277_v13 = vsel %vm2274_vm8, %v2271_v58, %v2074_v17 }
 0x2dd   : > { %v2136_v48 = vpop.permute.xlu1 %2135  ;;  %v2010_v44 = vpop.permute.xlu0 %2009 }
 0x2de   : > { %v2257_v20 = vsel %vm2256_vm5, %v2251_v39, %v2010_v44  ;;  %v2294_v44 = vsel %vm2250_vm4, %v3692_v5, %v2136_v48 }
 0x2df   : > { %v2263_v15 = vsel %vm2262_vm6, %v2257_v20, %v2030_v22  ;;  %v2295_v22 = vsel %vm2250_vm4, %v2290_v30, %v3619_v63 }
 0x2e0   : > { %v2269_v53 = vsel %vm2268_vm7, %v2263_v15, %v2050_v25 }
 0x2e1   : > { %v1996_v6 = vpop.permute.xlu1 %1995  ;;  %v2094_v61 = vpop.permute.xlu0 %2093 }
 0x2e2   : > { %v3706_v50 = vsel %vm2280_vm9, %v2277_v13, %v2094_v61  ;;  %v3953_v61 = vcombine.low %v3357_v21, %v3341_v62 }
 0x2e5   : > { %v2114_v42 = vpop.permute.xlu1 %2113  ;;  %v2072_v49 = vpop.permute.xlu0 %2071 }
 0x2e6   : > { %v2276_v31 = vsel %vm2274_vm8, %v2270_v19, %v2072_v49  ;;  %v2288_v49 = vsel %vm2244_vm3, %v3953_v61, %v2114_v42 }
 0x2e9   : > { %v2198_v36 = vpop.permute.xlu1 %2197  ;;  %v2092_v37 = vpop.permute.xlu0 %2091 }
 0x2ea   : > { %v3710_v38 = vsel %vm2280_vm9, %v2276_v31, %v2092_v37 }
 0x2ed   : > { %v2016_v34 = vpop.permute.xlu1 %2015  ;;  %v2070_v2 = vpop.permute.xlu0 %2069 }
 0x2ee   : > { %v3713_v7 = vsel %vm2274_vm8, %v2269_v53, %v2070_v2  ;;  %v2254_v2 = vsel %vm2250_vm4, %v3699_v55, %v1996_v6 }
 0x2ef   : > { %v2260_v29 = vsel %vm2256_vm5, %v2254_v2, %v2016_v34 }
 0x2f1   : > { %v2134_v10 = vpop.permute.xlu1 %2133  ;;  %v1978_v35 = vpop.permute.xlu0 %1977 }
 0x2f2   : > { %v2249_v24 = vsel %vm2244_vm3, %v3491_v9, %v1978_v35  ;;  %v2293_v31 = vsel %vm2250_vm4, %v2288_v49, %v2134_v10 }
 0x2f3   : > { %v2255_v58 = vsel %vm2250_vm4, %v2249_v24, %v3635_v1 }
 0x2f5   : > { %v2036_v46 = vpop.permute.xlu1 %2035  ;;  %v2158_v14 = vpop.permute.xlu0 %2157 }
 0x2f6   : > { %v2300_v8 = vsel %vm2256_vm5, %v2295_v22, %v2158_v14  ;;  %v2266_v21 = vsel %vm2262_vm6, %v2260_v29, %v2036_v46 }
 0x2f7   : > { %v2305_v28 = vsel %vm2262_vm6, %v2300_v8, %v3649_v60 }
 0x2f8   : > { %v2310_v1 = vsel %vm2268_vm7, %v2305_v28, %v2198_v36 }
 0x2f9   : > { %v3724_v25 = vpop.permute.xlu1 %2111  ;;  %v2018_v41 = vpop.permute.xlu0 %2017 }
 0x2fa   : > { %v2261_v27 = vsel %vm2256_vm5, %v2255_v58, %v2018_v41  ;;  %v3954_v41 = vcombine.low %v3398_v43, %v3421_v23 }
 0x2fb   : > { %v2267_v57 = vsel %vm2262_vm6, %v2261_v27, %v3655_v47  ;;  %v2315_v47 = vsel %vm2274_vm8, %v2310_v1, %v3628_v32 }
 0x2fc   : > { %v2287_v27 = vsel %vm2244_vm3, %v3954_v41, %v3724_v25 }
 0x2fd   : > { %v2196_v63 = vpop.permute.xlu1 %2195  ;;  %v2156_v0 = vpop.permute.xlu0 %2155 }
 0x2fe   : > { %v2299_v20 = vsel %vm2256_vm5, %v2294_v44, %v2156_v0 }
 0x301   : > { %v2056_v18 = vpop.permute.xlu1 %2055  ;;  %v2058_v9 = vpop.permute.xlu0 %2057 }
 0x302   : > { %v2273_v12 = vsel %vm2268_vm7, %v2267_v57, %v2058_v9  ;;  %v2272_v42 = vsel %vm2268_vm7, %v2266_v21, %v2056_v18 }
 0x303   : > { %v2279_v60 = vsel %vm2274_vm8, %v2273_v12, %v3675_v3 }
 0x305   : > { %v2132_v26 = vpop.permute.xlu1 %2131  ;;  %v2176_v19 = vpop.permute.xlu0 %2175 }
 0x306   : > { %v2304_v15 = vsel %vm2262_vm6, %v2299_v20, %v2176_v19  ;;  %v2292_v57 = vsel %vm2250_vm4, %v2287_v27, %v2132_v26 }
 0x307   : > { %v2309_v36 = vsel %vm2268_vm7, %v2304_v15, %v2196_v63 }
 0x309   : > { %v2216_v56 = vpop.permute.xlu1 %2215  ;;  %v2154_v52 = vpop.permute.xlu0 %2153 }
 0x30a   : > { %v2298_v5 = vsel %vm2256_vm5, %v2293_v31, %v2154_v52  ;;  %v2314_v48 = vsel %vm2274_vm8, %v2309_v36, %v2216_v56  ;;  %v2321_v52 = vld [vmem:[%s3815_s3] sm:$0xf] }
 0x30d   : > { %v2110_v54 = vpop.permute.xlu1 %2109  ;;  %v2238_v11 = vpop.permute.xlu0 %2237 }
 0x30e   : > { %v2320_v39 = vsel %vm2280_vm9, %v2315_v47, %v2238_v11  ;;  %v2286_v0 = vsel %vm2244_vm3, %v1480_v45, %v2110_v54 }
 0x30f   : > { %2556 = vmatprep.subr.msk.mxu0 %vm2326_vm10, %v2320_v39 }
 0x311   : > { %v2194_v40 = vpop.permute.xlu1 %2193  ;;  %v2098_v17 = vpop.permute.xlu0 %2097 }
 0x312   : > { %v2285_v3 = vsel %vm2280_vm9, %v2279_v60, %v2098_v17 }
 0x313   : > { %2557 = vmatpush1.msk.msra.mxu0 %vm2326_vm10, %v2285_v3 }
 0x315   : > { %v2130_v16 = vpop.permute.xlu1 %2129  ;;  %v2174_v33 = vpop.permute.xlu0 %2173 }
 0x316   : > { %v2303_v30 = vsel %vm2262_vm6, %v2298_v5, %v2174_v33 }
 0x317   : > { %v2308_v55 = vsel %vm2268_vm7, %v2303_v30, %v2194_v40 }
 0x319   : > { %v2214_v51 = vpop.permute.xlu1 %2213  ;;  %v2076_v13 = vpop.permute.xlu0 %2075 }
 0x31a   : > { %v2278_v14 = vsel %vm2274_vm8, %v2272_v42, %v2076_v13  ;;  %v2313_v22 = vsel %vm2274_vm8, %v2308_v55, %v2214_v51 }
 0x31d   : > { %v2150_v32 = vpop.permute.xlu1 %2149  ;;  %v2152_v53 = vpop.permute.xlu0 %2151 }
 0x31e   : > { %v2297_v18 = vsel %vm2256_vm5, %v2292_v57, %v2152_v53 }
 0x321   : > { %v2234_v37 = vpop.permute.xlu1 %2233  ;;  %v2236_v35 = vpop.permute.xlu0 %2235 }
 0x322   : > { %v2319_v62 = vsel %vm2280_vm9, %v2314_v48, %v2236_v35  ;;  %v2318_v34 = vsel %vm2280_vm9, %v2313_v22, %v2234_v37 }
 0x323   : > { %2357 = vmatprep.subr.mxu0 %v2319_v62 }
 0x325   : > { %v2170_v10 = vpop.permute.xlu1 %2169  ;;  %v2096_v6 = vpop.permute.xlu0 %2095 }
 0x326   : > { %v2284_v24 = vsel %vm2280_vm9, %v2278_v14, %v2096_v6 }
 0x327   : > { %2358 = vmatpush1.msra.mxu0 %v2284_v24 }
 0x328   : > { %2359 = vmatprep.subr.mxu0 %v2318_v34 }
 0x329   : > { %v2172_v8 = vpop.permute.xlu0 %2171  ;;  %2360 = vmatpush1.msra.mxu0 %v3706_v50  ;;  %v2190_v46 = vpop.permute.xlu1 %2189  ;;  %v2291_v50 = vsel %vm2250_vm4, %v2286_v0, %v2130_v16 }
 0x32a   : > { %v2302_v9 = vsel %vm2262_vm6, %v2297_v18, %v2172_v8  ;;  %v2296_v12 = vsel %vm2256_vm5, %v2291_v50, %v2150_v32 }
 0x32b   : > { %v2301_v43 = vsel %vm2262_vm6, %v2296_v12, %v2170_v10 }
 0x32c   : > { %v2306_v4 = vsel %vm2268_vm7, %v2301_v43, %v2190_v46 }
 0x32d   : > { %v2192_v28 = vpop.permute.xlu0 %2191  ;;  %v2210_v58 = vpop.permute.xlu1 %2209 }
 0x32e   : > { %v2307_v23 = vsel %vm2268_vm7, %v2302_v9, %v2192_v28  ;;  %v2311_v45 = vsel %vm2274_vm8, %v2306_v4, %v2210_v58 }
 0x331   : > { %v2212_v63 = vpop.permute.xlu0 %2211  ;;  %v2230_v60 = vpop.permute.xlu1 %2229 }
 0x332   : > { %v2312_v25 = vsel %vm2274_vm8, %v2307_v23, %v2212_v63  ;;  %v2316_v19 = vsel %vm2280_vm9, %v2311_v45, %v2230_v60 }
 0x335   : > { %v2232_v26 = vpop.permute.xlu0 %2231 }
 0x336   : > { %v2317_v59 = vsel %vm2280_vm9, %v2312_v25, %v2232_v26 }
 0x337   : > { %2361 = vmatprep.subr.mxu0 %v2317_v59 }
 0x338   : > { %2362 = vmatpush1.msra.mxu0 %v3710_v38 }
 0x339   : > { %v2090_v56 = vpop.permute.xlu0 %2089  ;;  %2363 = vmatprep.subr.mxu0 %v2316_v19 }
 0x33a   : > { %v2281_v1 = vsel %vm2280_vm9, %v3713_v7, %v2090_v56 }
 0x33b   : > { %2364 = vmatpush1.msra.mxu0 %v2281_v1 }
 0x33c   : > { %2558 = vmatmul.mubr.msk.f32.vlgmr.msra.gmra.mxu0 %vm2322_vm11, %v2321_v52 }
 0x3fc   : > { %v2399_v54 = vpop.f32.mrf.mxu0 }
 0x3fd   : > { %v2416_v11 = vmul.f32 %v2399_v54, %v2399_v54  ;;  %v2409_v47 = vsel %vm2326_vm10, %v2399_v54, 0.0 }
 0x3fe   : > { %v2401_v38 = vpop.f32.mrf.mxu0 }
 0x3ff   : > { %v2406_v39 = vcombine.low %v2399_v54, %v2401_v38  ;;  %v2410_v40 = vsel %vm2326_vm10, %v2401_v38, 0.0  ;;  %v2417_v17 = vmul.f32 %v2401_v38, %v2401_v38  ;;  %v2418_v16 = vsel %vm2326_vm10, %v2416_v11, 0.0 }
 0x400   : > { %v2411_v3 = vadd.f32 %v2410_v40, %v2409_v47 }
 0x401   : > { %2408 = vst [vmem:[%s264_s23] sm:$0xff] %v2406_v39  ;;  %v2419_v7 = vsel %vm2326_vm10, %v2417_v17, 0.0 }
 0x402   : > { %2412 = vadd.xlane.f32.xlu1 %v2411_v3  ;;  %v2420_v33 = vadd.f32 %v2419_v7, %v2418_v16 }
 0x404   : > { %2421 = vadd.xlane.f32.xlu0 %v2420_v33 }
 0x48b   : > { %v2413_v51 = vpop.xlane.xlu1 %2412 }
 0x48c   : > { %2415 = vst.msk [vmem:[%s268_s27] sm:$0xf] %vm2414_vm12, %v2413_v51 }
 0x48d   : > { %v2422_v13 = vpop.xlane.xlu0 %2421 }
 0x48e   : > { %2423 = vst.msk [vmem:[%s272_s30] sm:$0xf] %vm2414_vm12, %v2422_v13 }
 0x48f PF: > { %s17_s21 = sadd.s32 1, %s2613_s21  }
 0x490   : > { %p14_p4 = scmp.ge.s32.totalorder %s17_s21, 4  }
 0x492   :  { %16 = sbr.rel (!%p14_p4) target bundleno = 1 (0x1), region = 90 }

// kernel: up_forward.3
= control target key start
LH: loop header
LB: loop body
LE: loop exit
PB: predicated region body
PF: predicated region fallthrough
CT: control target
= control target key end

     0   :  { %s4740_s24 = smov 0   ;;  %s7205_s0 = inlined_call_operand.vmem [shape: f32[2,4,8,8], index: 0, kind: input, shape index: {}]   ;;  %s7206_s1 = inlined_call_operand.vmem [shape: f32[2,4,16,16], index: 1, kind: input, shape index: {}]   ;;  %s7207_s2 = inlined_call_operand.vmem [shape: f32[16,8], index: 2, kind: input, shape index: {}]   ;;  %s7208_s3 = inlined_call_operand.vmem [shape: f32[8,16], index: 3, kind: input, shape index: {}]   ;;  %s7209_s4 = inlined_call_operand.vmem [shape: f32[4,72], index: 4, kind: input, shape index: {}]   ;;  %s7210_s5 = inlined_call_operand.vmem [shape: f32[2,4,256], index: 5, kind: output, shape index: {0}]   ;;  %s7211_s6 = inlined_call_operand.vmem [shape: f32[2,4,1], index: 6, kind: output, shape index: {1}]   ;;  %s7212_s7 = inlined_call_operand.vmem [shape: f32[2,4,1], index: 7, kind: output, shape index: {2}]  }
   0x1 LB: > { %s4542_s25 = sadd.s32 4294967295, %s4685_s24   ;;  %p4546_p0 = scmp.ge.s32.totalorder %s4685_s24, 1  ;;  %s4685_s24 = sphi %s4740_s24, %s18_s24  }
   0x2   : > { %p252_p1 = scmp.lt.s32.totalorder %s4685_s24, 3 }
   0x4   : > { %p253_p2 = pnand %p4546_p0, %p252_p1 }
   0x6   : > { %256 = sbr.rel (%p253_p2) target bundleno = 1352 (0x548), region = 40 }
   0xb   : > { %v399_v0 = vld [vmem:[%s7208_s3] sm:$0xff]  ;;  %p4751_p3 = scmp.lt.s32.totalorder %s4542_s25, 1  ;;  %vm320_vm0 = vcmask 146432   ;;  %v4687_v1 = vmov 0.0   ;;  %vm400_vm1 = vcmask 64512   ;;  %s4688_s14 = smov 1   ;;  %v1236_v51 = vlaneseq }
   0xc   : > { %4590 = vmatprep.subr.mxu1 %v399_v0  ;;  %321 = vst.msk [vmem:[#allocation2] sm:$0xff] %vm320_vm0, %v4687_v1  ;;  %322 = vst.msk [vmem:[#allocation2 + $0x8] sm:$0xff] %vm320_vm0, %v4687_v1  ;;  %vm323_vm2 = vcmask 140288   ;;  %v4822_v14 = vld [vmem:[%s7207_s2] sm:$0xff]  ;;  %vm386_vm3 = vcmask 138248   ;;  %s4689_s17 = smov 127  }
   0xd   : > { %325 = vst.msk [vmem:[#allocation2 + $0x18] sm:$0xff] %vm320_vm0, %v4687_v1  ;;  %326 = vst.msk [vmem:[#allocation2 + $0x20] sm:$0xff] %vm320_vm0, %v4687_v1  ;;  %4591 = vmatpush3.msra.mxu1 %v399_v0  ;;  %s7789_s25 = smov (!%p4751_p3, %s4542_s25), 1  ;;  %4610 = vmatprep.mubr.msk.f32.mxu0 %vm400_vm1, %v4822_v14  ;;  %s4690_s18 = smov 126   ;;  %v4691_v49 = vmov 1983009808  }
   0xe   : > { %328 = vst.msk [vmem:[#allocation2 + $0x30] sm:$0xff] %vm320_vm0, %v4687_v1  ;;  %329 = vst.msk [vmem:[#allocation2 + $0x38] sm:$0xff] %vm320_vm0, %v4687_v1  ;;  %s4570_s29 = sshll.u32 %s7789_s25, 5  ;;  %s4571_s30 = sshll.u32 %s7789_s25, 6  ;;  %v1234_v50 = vunpack.c.l.s4 %v4691_v49  ;;  %v4889_v53 = vshrl.u32 %v1236_v51, 7  ;;  %vm4183_vm4 = vcmask 130048  }
   0xf   : > { %331 = vst.msk [vmem:[#allocation2 + $0x48] sm:$0xff] %vm320_vm0, %v4687_v1  ;;  %332 = vst.msk [vmem:[#allocation2 + $0x50] sm:$0xff] %vm320_vm0, %v4687_v1  ;;  %s301_s10 = scalar_lea.vmem %s7205_s0, %s4570_s29  ;;  %s306_s13 = scalar_lea.vmem %s7206_s1, %s4571_s30  ;;  %vm4193_vm5 = vcmask 261120   ;;  %vm4203_vm6 = vcmask 392192   ;;  %vm4213_vm7 = vcmask 523264   ;;  %vm4223_vm8 = vcmask 654336  }
  0x10   : > { %334 = vst.msk [vmem:[#allocation2 + $0x60] sm:$0xff] %vm320_vm0, %v4687_v1  ;;  %335 = vst.msk [vmem:[#allocation2 + $0x68] sm:$0xff] %vm320_vm0, %v4687_v1  ;;  %v395_v2 = vld [vmem:[%s301_s10] sm:$0xff]  ;;  %v396_v3 = vld [vmem:[%s301_s10 + $0x8] sm:$0xff]  ;;  %v1235_v52 = vunpack.c.0.s8 %v1234_v50  ;;  %s4693_s21 = smov 48   ;;  %s4694_s22 = smov 64  }
  0x11   : > { %337 = vst.msk [vmem:[#allocation2 + $0x78] sm:$0xff] %vm320_vm0, %v4687_v1  ;;  %338 = vst.msk [vmem:[#allocation2 + $0x80] sm:$0xff] %vm320_vm0, %v4687_v1  ;;  %v397_v4 = vld [vmem:[%s301_s10 + $0x10] sm:$0xff]  ;;  %4592 = vmatprep.mubr.msk.f32.mxu1 %vm400_vm1, %v395_v2  ;;  %v346_v5 = vld [vmem:[%s306_s13] sm:$0xff]  ;;  %s4695_s23 = smov 16   ;;  %s4696_s26 = smov 112  }
  0x12   : > { %340 = vst.msk [vmem:[#allocation2 + $0x90] sm:$0xff] %vm320_vm0, %v4687_v1  ;;  %341 = vst.msk [vmem:[#allocation2 + $0x98] sm:$0xff] %vm320_vm0, %v4687_v1  ;;  %v348_v6 = vld [vmem:[%s306_s13 + $0x10] sm:$0xff]  ;;  %4593 = vmatmul.mubr.msk.f32.vlgmr.msra.gmra.mxu1 %vm400_vm1, %v396_v3  ;;  %362 = vrot.lane.b32.xlu0 %v346_v5, %s4688_s14  ;;  %v398_v7 = vld [vmem:[%s301_s10 + $0x18] sm:$0xff]  ;;  %v4894_v54 = vsub.s32 %v1235_v52, %v4889_v53  ;;  %s4697_s27 = smov 32   ;;  %s4698_s28 = smov 80  }
  0x13   : > { %343 = vst.msk [vmem:[#allocation2 + $0xa8] sm:$0xff] %vm320_vm0, %v4687_v1  ;;  %344 = vst.msk [vmem:[#allocation2 + $0xb0] sm:$0xff] %vm320_vm0, %v4687_v1  ;;  %4595 = vmatprep.mubr.msk.f32.mxu1 %vm400_vm1, %v397_v4  ;;  %366 = vrot.lane.b32.xlu1 %v348_v6, %s4688_s14  ;;  %v347_v8 = vld [vmem:[%s306_s13 + $0x8] sm:$0xff]  ;;  %v349_v9 = vld [vmem:[%s306_s13 + $0x18] sm:$0xff]  ;;  %s4699_s29 = smov 96   ;;  %vm4233_vm9 = vcmask 785408  }
  0x14   : > { %v351_v10 = vld [vmem:[%s306_s13 + $0x28] sm:$0xff]  ;;  %v353_v11 = vld [vmem:[%s306_s13 + $0x38] sm:$0xff]  ;;  %v350_v12 = vld [vmem:[%s306_s13 + $0x20] sm:$0xff]  ;;  %324 = vst.msk [vmem:[#allocation2 + $0x10] sm:$0x3] %vm323_vm2, %v4687_v1  ;;  %vm4243_vm10 = vcmask 916480  }
  0x15   : > { %v352_v13 = vld [vmem:[%s306_s13 + $0x30] sm:$0xff]  ;;  %327 = vst.msk [vmem:[#allocation2 + $0x28] sm:$0x3] %vm323_vm2, %v4687_v1  ;;  %330 = vst.msk [vmem:[#allocation2 + $0x40] sm:$0x3] %vm323_vm2, %v4687_v1  ;;  %vm4317_vm11 = vcmask 588800  }
  0x16   : > { %4596 = vmatmul.mubr.msk.f32.gmra.mxu1 %vm400_vm1, %v398_v7  ;;  %364 = vrot.lane.b32.xlu0 %v347_v8, %s4688_s14  ;;  %333 = vst.msk [vmem:[#allocation2 + $0x58] sm:$0x3] %vm323_vm2, %v4687_v1  ;;  %336 = vst.msk [vmem:[#allocation2 + $0x70] sm:$0x3] %vm323_vm2, %v4687_v1  ;;  %s4572_s9 = sshll.u32 %s7789_s25, 3  ;;  %vm4397_vm12 = vcmask 1043456  }
  0x17   : > { %368 = vrot.lane.b32.xlu1 %v349_v9, %s4688_s14  ;;  %339 = vst.msk [vmem:[#allocation2 + $0x88] sm:$0x3] %vm323_vm2, %v4687_v1  ;;  %342 = vst.msk [vmem:[#allocation2 + $0xa0] sm:$0x3] %vm323_vm2, %v4687_v1  ;;  %4600 = vmatprep.mubr.msk.f32.mxu1 %vm400_vm1, %v4822_v14  ;;  %s311_s12 = scalar_lea.vmem %s7210_s5, %s4572_s9  ;;  %s4553_s13 = sshll.u32 %s7789_s25, 2  ;;  %vm4403_vm13 = vcmask 3072  }
  0x18   : > { %345 = vst.msk [vmem:[#allocation2 + $0xb8] sm:$0x3] %vm323_vm2, %v4687_v1  ;;  %s315_s16 = scalar_lea.vmem %s7211_s6, %s4553_s13  ;;  %s319_s19 = scalar_lea.vmem %s7212_s7, %s4553_s13 }
  0x1a   : > { %372 = vrot.lane.b32.xlu0 %v351_v10, %s4688_s14 }
  0x1b   : > { %376 = vrot.lane.b32.xlu1 %v353_v11, %s4688_s14 }
  0x1e   : > { %370 = vrot.lane.b32.xlu0 %v350_v12, %s4688_s14 }
  0x1f   : > { %374 = vrot.lane.b32.xlu1 %v352_v13, %s4688_s14 }
  0x84   : > { %v363_v15 = vpop.permute.xlu0 %362 }
  0x85   : > { %387 = vst.msk [vmem:[#allocation2 + $0x1] sm:$0xff] %vm386_vm3, %v363_v15  ;;  %v367_v16 = vpop.permute.xlu1 %366 }
  0x86   : > { %389 = vst.msk [vmem:[#allocation2 + $0x19] sm:$0xff] %vm386_vm3, %v367_v16 }
  0x88   : > { %v365_v17 = vpop.permute.xlu0 %364 }
  0x89   : > { %388 = vst.msk [vmem:[#allocation2 + $0x9] sm:$0xff] %vm386_vm3, %v365_v17  ;;  %v369_v18 = vpop.permute.xlu1 %368 }
  0x8a   : > { %390 = vst.msk [vmem:[#allocation2 + $0x21] sm:$0xff] %vm386_vm3, %v369_v18 }
  0x8c   : > { %v373_v19 = vpop.permute.xlu0 %372  ;;  %v4832_v20 = vld [vmem:[#allocation2] sm:$0xff] }
  0x8d   : > { %392 = vst.msk [vmem:[#allocation2 + $0x39] sm:$0xff] %vm386_vm3, %v373_v19  ;;  %v377_v21 = vpop.permute.xlu1 %376  ;;  %911 = vrot.lane.b32.xlu0 %v4832_v20, %s4689_s17  ;;  %v4838_v22 = vld [vmem:[#allocation2 + $0x18] sm:$0xff] }
  0x8e   : > { %394 = vst.msk [vmem:[#allocation2 + $0x51] sm:$0xff] %vm386_vm3, %v377_v21 }
  0x90   : > { %v371_v23 = vpop.permute.xlu0 %370  ;;  %v4840_v24 = vld [vmem:[#allocation2 + $0x8] sm:$0xff] }
  0x91   : > { %391 = vst.msk [vmem:[#allocation2 + $0x31] sm:$0xff] %vm386_vm3, %v371_v23  ;;  %913 = vrot.lane.b32.xlu1 %v4840_v24, %s4689_s17  ;;  %v375_v25 = vpop.permute.xlu1 %374  ;;  %915 = vrot.lane.b32.xlu0 %v4838_v22, %s4689_s17  ;;  %v4848_v26 = vld [vmem:[#allocation2 + $0x20] sm:$0xff]  ;;  %v880_v27 = vld [vmem:[#allocation2 + $0xa] sm:$0xff] }
  0x92   : > { %393 = vst.msk [vmem:[#allocation2 + $0x49] sm:$0xff] %vm386_vm3, %v375_v25  ;;  %v882_v31 = vld [vmem:[#allocation2 + $0x22] sm:$0xff]  ;;  %v881_v45 = vld [vmem:[#allocation2 + $0x1a] sm:$0xff] }
  0x93   : > { %v879_v41 = vld [vmem:[#allocation2 + $0x2] sm:$0xff] }
  0x94   : > { %v884_v28 = vld [vmem:[#allocation2 + $0x3a] sm:$0xff]  ;;  %v4962_v17 = vld [vmem:[#allocation2 + $0x9] sm:$0xff] }
  0x95   : > { %917 = vrot.lane.b32.xlu1 %v4848_v26, %s4689_s17  ;;  %v3271_v29 = vcombine.low %v880_v27, %v884_v28  ;;  %v3272_v30 = vcombine.high %v880_v27, %v884_v28  ;;  %v886_v32 = vld [vmem:[#allocation2 + $0x52] sm:$0xff]  ;;  %7362 = vst [vmem:[#allocation3_spill] sm:$0xff] %v4962_v17 }
  0x96   : > { %v3287_v33 = vcombine.low %v882_v31, %v886_v32  ;;  %v3288_v34 = vcombine.high %v882_v31, %v886_v32  ;;  %v4986_v25 = vld [vmem:[#allocation2 + $0x39] sm:$0xff] }
  0x97   : > { %v4897_v55 = vrot.slane %v3271_v29, %v4894_v54  ;;  %v4900_v56 = vrot.slane %v3272_v30, %v4894_v54  ;;  %7363 = vst [vmem:[#allocation4_spill] sm:$0xff] %v4986_v25 }
  0x98   : > { %v4852_v35 = vld [vmem:[#allocation2 + $0x38] sm:$0xff]  ;;  %v4854_v36 = vld [vmem:[#allocation2 + $0x30] sm:$0xff]  ;;  %v4903_v57 = vrot.slane %v3287_v33, %v4894_v54  ;;  %v4906_v58 = vrot.slane %v3288_v34, %v4894_v54  ;;  %v5008_v33 = vld [vmem:[#allocation2 + $0x1] sm:$0xff] }
  0x99   : > { %921 = vrot.lane.b32.xlu1 %v4852_v35, %s4689_s17  ;;  %919 = vrot.lane.b32.xlu0 %v4854_v36, %s4689_s17  ;;  %v1231_v37 = vcombine.low %v4832_v20, %v4854_v36  ;;  %v1232_v38 = vcombine.high %v4832_v20, %v4854_v36  ;;  %v4864_v39 = vld [vmem:[#allocation2 + $0x50] sm:$0xff]  ;;  %v4866_v40 = vld [vmem:[#allocation2 + $0x48] sm:$0xff]  ;;  %v2455_v59 = vcombine.low %v4840_v24, %v4852_v35 }
  0x9a   : > { %v883_v42 = vld [vmem:[#allocation2 + $0x32] sm:$0xff]  ;;  %v885_v46 = vld [vmem:[#allocation2 + $0x4a] sm:$0xff]  ;;  %v2471_v60 = vcombine.low %v4848_v26, %v4864_v39  ;;  %v1247_v63 = vcombine.low %v4838_v22, %v4866_v40  ;;  %v2456_v7 = vcombine.high %v4840_v24, %v4852_v35  ;;  %v2472_v8 = vcombine.high %v4848_v26, %v4864_v39  ;;  %7365 = vst [vmem:[#allocation6_spill] sm:$0xff] %v5008_v33 }
  0x9b   : > { %v2047_v43 = vcombine.low %v879_v41, %v883_v42  ;;  %v2048_v44 = vcombine.high %v879_v41, %v883_v42  ;;  %v2063_v47 = vcombine.low %v881_v45, %v885_v46  ;;  %v2064_v48 = vcombine.high %v881_v45, %v885_v46  ;;  %v5010_v34 = vld [vmem:[#allocation2 + $0x51] sm:$0xff] }
  0x9c   : > { %v1248_v9 = vcombine.high %v4838_v22, %v4866_v40  ;;  %v4947_v11 = vrot.slane %v2455_v59, %v4894_v54  ;;  %v4950_v12 = vrot.slane %v1231_v37, %v4894_v54  ;;  %v4957_v15 = vrot.slane %v2471_v60, %v4894_v54  ;;  %7366 = vst [vmem:[#allocation7_spill] sm:$0xff] %v5010_v34 }
  0x9d   : > { %925 = vrot.lane.b32.xlu1 %v4864_v39, %s4689_s17  ;;  %923 = vrot.lane.b32.xlu0 %v4866_v40, %s4689_s17  ;;  %v4915_v61 = vrot.slane %v2047_v43, %v4894_v54  ;;  %v4918_v62 = vrot.slane %v2063_v47, %v4894_v54  ;;  %v4929_v3 = vrot.slane %v2048_v44, %v4894_v54  ;;  %v499_v43 = vld [vmem:[%s7207_s2 + $0x8] sm:$0xff] }
  0x9e   : > { %v4932_v4 = vrot.slane %v2064_v48, %v4894_v54  ;;  %v4960_v16 = vrot.slane %v1247_v63, %v4894_v54  ;;  %v4972_v21 = vrot.slane %v1232_v38, %v4894_v54  ;;  %v4978_v23 = vrot.slane %v2456_v7, %v4894_v54  ;;  %v5018_v38 = vld [vmem:[#allocation2 + $0x31] sm:$0xff] }
  0x9f   : > { %7367 = vst [vmem:[#allocation8_spill] sm:$0xff] %v5018_v38 }
  0xa1   : > { %961 = vrot.lane.b32.xlu1 %v4840_v24, %s4690_s18  ;;  %959 = vrot.lane.b32.xlu0 %v4832_v20, %s4690_s18  ;;  %v4981_v24 = vrot.slane %v2472_v8, %v4894_v54 }
  0xa5   : > { %965 = vrot.lane.b32.xlu1 %v4848_v26, %s4690_s18  ;;  %963 = vrot.lane.b32.xlu0 %v4838_v22, %s4690_s18  ;;  %v4975_v22 = vrot.slane %v1248_v9, %v4894_v54  ;;  %v4988_v26 = vld [vmem:[#allocation2 + $0x21] sm:$0xff] }
  0xa6   : > { %7364 = vst [vmem:[#allocation5_spill] sm:$0xff] %v4988_v26 }
  0xa9   : > { %1185 = vrot.lane.b32.xlu1 %v880_v27, %s4690_s18  ;;  %967 = vrot.lane.b32.xlu0 %v4854_v36, %s4690_s18 }
  0xad   : > { %1193 = vrot.lane.b32.xlu1 %v884_v28, %s4690_s18  ;;  %1189 = vrot.lane.b32.xlu0 %v882_v31, %s4690_s18 }
  0xb1   : > { %1183 = vrot.lane.b32.xlu1 %v879_v41, %s4690_s18  ;;  %1197 = vrot.lane.b32.xlu0 %v886_v32, %s4690_s18 }
  0xb5   : > { %1191 = vrot.lane.b32.xlu1 %v883_v42, %s4690_s18  ;;  %1187 = vrot.lane.b32.xlu0 %v881_v45, %s4690_s18 }
  0xb9   : > { %1137 = vrot.lane.b32.xlu1 %v880_v27, %s4689_s17  ;;  %1195 = vrot.lane.b32.xlu0 %v885_v46, %s4690_s18 }
  0xbd   : > { %1145 = vrot.lane.b32.xlu1 %v884_v28, %s4689_s17  ;;  %1141 = vrot.lane.b32.xlu0 %v882_v31, %s4689_s17 }
  0xc1   : > { %1135 = vrot.lane.b32.xlu1 %v879_v41, %s4689_s17  ;;  %1149 = vrot.lane.b32.xlu0 %v886_v32, %s4689_s17  ;;  %v5020_v41 = vld [vmem:[#allocation2 + $0x19] sm:$0xff] }
  0xc2   : > { %7368 = vst [vmem:[#allocation9_spill] sm:$0xff] %v5020_v41 }
  0xc5   : > { %1143 = vrot.lane.b32.xlu1 %v883_v42, %s4689_s17  ;;  %1139 = vrot.lane.b32.xlu0 %v881_v45, %s4689_s17 }
  0xc9   : > { %1073 = vrot.lane.b32.xlu1 %v4962_v17, %s4690_s18  ;;  %1147 = vrot.lane.b32.xlu0 %v885_v46, %s4689_s17  ;;  %v5034_v46 = vld [vmem:[#allocation2 + $0x49] sm:$0xff] }
  0xca   : > { %7369 = vst [vmem:[#allocation10_spill] sm:$0xff] %v5034_v46 }
  0xcd   : > { %1081 = vrot.lane.b32.xlu1 %v4986_v25, %s4690_s18  ;;  %1077 = vrot.lane.b32.xlu0 %v4988_v26, %s4690_s18 }
  0xd1   : > { %1071 = vrot.lane.b32.xlu1 %v5008_v33, %s4690_s18  ;;  %1085 = vrot.lane.b32.xlu0 %v5010_v34, %s4690_s18 }
  0xd2   : > { %v4594_v37 = vpop.f32.mrf.mxu1 }
  0xd4   : > { %v479_v42 = vpop.f32.mrf.mxu1 }
  0xd5   : > { %4598 = vmatprep.subr.mxu1 %v479_v42  ;;  %1079 = vrot.lane.b32.xlu1 %v5018_v38, %s4690_s18 }
  0xd6   : > { %4599 = vmatpush3.msra.mxu1 %v479_v42  ;;  %v4597_v44 = vpop.f32.mrf.mxu1  ;;  %1075 = vrot.lane.b32.xlu0 %v5020_v41, %s4690_s18 }
  0xd7   : > { %4601 = vmatmul.mubr.msk.f32.vlgmr.msra.gmra.mxu1 %vm400_vm1, %v499_v43  ;;  %4603 = vmatprep.subr.mxu1 %v4594_v37 }
  0xd8   : > { %4604 = vmatpush3.msra.mxu1 %v4594_v37  ;;  %4605 = vmatprep.mubr.msk.f32.mxu1 %vm400_vm1, %v4822_v14  ;;  %v489_v45 = vpop.f32.mrf.mxu1 }
  0xd9   : > { %4608 = vmatprep.subr.mxu0 %v489_v45  ;;  %4613 = vmatprep.subr.mxu1 %v4597_v44 }
  0xda   : > { %4609 = vmatpush3.msra.mxu0 %v489_v45  ;;  %1025 = vrot.lane.b32.xlu1 %v4962_v17, %s4689_s17 }
  0xdb   : > { %4606 = vmatmul.mubr.msk.f32.vlgmr.msra.gmra.mxu1 %vm400_vm1, %v499_v43  ;;  %4611 = vmatmul.mubr.msk.f32.vlgmr.msra.gmra.mxu0 %vm400_vm1, %v499_v43 }
  0xdc   : > { %4614 = vmatpush3.msra.mxu1 %v4597_v44  ;;  %4615 = vmatprep.mubr.msk.f32.mxu1 %vm400_vm1, %v4822_v14 }
  0xdd   : > { %1083 = vrot.lane.b32.xlu0 %v5034_v46, %s4690_s18  ;;  %4385 = vmatprep.mubr.f32.mxu0 %v4687_v1 }
  0xde   : > { %1033 = vrot.lane.b32.xlu1 %v4986_v25, %s4689_s17 }
  0xdf   : > { %4616 = vmatmul.mubr.msk.f32.vlgmr.msra.gmra.mxu1 %vm400_vm1, %v499_v43 }
  0xe1   : > { %1029 = vrot.lane.b32.xlu0 %v4988_v26, %s4689_s17 }
  0xe2   : > { %1023 = vrot.lane.b32.xlu1 %v5008_v33, %s4689_s17 }
  0xe5   : > { %1037 = vrot.lane.b32.xlu0 %v5010_v34, %s4689_s17 }
  0xe6   : > { %1031 = vrot.lane.b32.xlu1 %v5018_v38, %s4689_s17 }
  0xe9   : > { %1027 = vrot.lane.b32.xlu0 %v5020_v41, %s4689_s17 }
  0xea   : > { %969 = vrot.lane.b32.xlu1 %v4852_v35, %s4690_s18 }
  0xed   : > { %1035 = vrot.lane.b32.xlu0 %v5034_v46, %s4689_s17 }
  0xee   : > { %971 = vrot.lane.b32.xlu1 %v4866_v40, %s4690_s18 }
  0xf1   : > { %973 = vrot.lane.b32.xlu0 %v4864_v39, %s4690_s18 }
  0xff   : > { %v5064_v1 = vpop.permute.xlu0 %911 }
 0x100   : > { %7370 = vst [vmem:[#allocation11_spill] sm:$0xff] %v5064_v1 }
 0x103   : > { %v5066_v14 = vpop.permute.xlu1 %913  ;;  %v5068_v47 = vpop.permute.xlu0 %915 }
 0x104   : > { %7371 = vst [vmem:[#allocation12_spill] sm:$0xff] %v5066_v14  ;;  %7372 = vst [vmem:[#allocation13_spill] sm:$0xff] %v5068_v47 }
 0x107   : > { %v5070_v48 = vpop.permute.xlu1 %917 }
 0x108   : > { %7373 = vst [vmem:[#allocation14_spill] sm:$0xff] %v5070_v48 }
 0x10b   : > { %v5072_v49 = vpop.permute.xlu0 %919  ;;  %v5074_v35 = vpop.permute.xlu1 %921 }
 0x10c   : > { %7374 = vst [vmem:[#allocation15_spill] sm:$0xff] %v5072_v49  ;;  %7375 = vst [vmem:[#allocation16_spill] sm:$0xff] %v5074_v35 }
 0x10f   : > { %v5076_v50 = vpop.permute.xlu0 %923  ;;  %v5078_v51 = vpop.permute.xlu1 %925 }
 0x110   : > { %7376 = vst [vmem:[#allocation17_spill] sm:$0xff] %v5076_v50  ;;  %7377 = vst [vmem:[#allocation18_spill] sm:$0xff] %v5078_v51 }
 0x113   : > { %v5080_v40 = vpop.permute.xlu0 %959  ;;  %v5082_v39 = vpop.permute.xlu1 %961 }
 0x114   : > { %7378 = vst [vmem:[#allocation19_spill] sm:$0xff] %v5080_v40  ;;  %7379 = vst [vmem:[#allocation20_spill] sm:$0xff] %v5082_v39 }
 0x117   : > { %v5085_v60 = vpop.permute.xlu0 %963  ;;  %v5089_v9 = vpop.permute.xlu1 %965 }
 0x118   : > { %7380 = vst [vmem:[#allocation21_spill] sm:$0xff] %v5085_v60  ;;  %7381 = vst [vmem:[#allocation22_spill] sm:$0xff] %v5089_v9 }
 0x11b   : > { %v5091_v37 = vpop.permute.xlu0 %967  ;;  %v5095_v44 = vpop.permute.xlu1 %1185 }
 0x11c   : > { %7382 = vst [vmem:[#allocation23_spill] sm:$0xff] %v5091_v37  ;;  %7383 = vst [vmem:[#allocation24_spill] sm:$0xff] %v5095_v44 }
 0x197   : > { %v4602_v52 = vpop.f32.mrf.mxu1 }
 0x198   : > { %816 = vrot.lane.b32.xlu0 %v4602_v52, %s4688_s14  ;;  %v5099_v52 = vpop.permute.xlu0 %1189 }
 0x199   : > { %v572_v59 = vpop.f32.mrf.mxu1  ;;  %7384 = vst [vmem:[#allocation25_spill] sm:$0xff] %v5099_v52 }
 0x19b   : > { %v4607_v63 = vpop.f32.mrf.mxu1  ;;  %v4612_v8 = vpop.f32.mrf.mxu0 }
 0x19c   : > { %814 = vrot.lane.b32.xlu0 %v572_v59, %s4688_s14  ;;  %820 = vrot.lane.b32.xlu1 %v4607_v63, %s4688_s14  ;;  %v5102_v59 = vpop.permute.xlu1 %1193  ;;  %v5104_v63 = vpop.permute.xlu0 %1197 }
 0x19d   : > { %v647_v7 = vpop.f32.mrf.mxu1  ;;  %v722_v42 = vpop.f32.mrf.mxu0  ;;  %7385 = vst [vmem:[#allocation26_spill] sm:$0xff] %v5102_v59  ;;  %7386 = vst [vmem:[#allocation27_spill] sm:$0xff] %v5104_v63 }
 0x19f   : > { %v4617_v43 = vpop.f32.mrf.mxu1 }
 0x1a0   : > { %824 = vrot.lane.b32.xlu0 %v4612_v8, %s4688_s14  ;;  %818 = vrot.lane.b32.xlu1 %v647_v7, %s4688_s14  ;;  %v5106_v8 = vpop.permute.xlu1 %1183  ;;  %v5108_v7 = vpop.permute.xlu0 %1187 }
 0x1a1   : > { %v797_v45 = vpop.f32.mrf.mxu1  ;;  %7387 = vst [vmem:[#allocation28_spill] sm:$0xff] %v5106_v8  ;;  %7388 = vst [vmem:[#allocation29_spill] sm:$0xff] %v5108_v7 }
 0x1a4   : > { %822 = vrot.lane.b32.xlu0 %v722_v42, %s4688_s14  ;;  %828 = vrot.lane.b32.xlu1 %v4617_v43, %s4688_s14  ;;  %v5110_v36 = vpop.permute.xlu1 %1191  ;;  %v5112_v32 = vpop.permute.xlu0 %1195 }
 0x1a5   : > { %7389 = vst [vmem:[#allocation30_spill] sm:$0xff] %v5110_v36  ;;  %7390 = vst [vmem:[#allocation31_spill] sm:$0xff] %v5112_v32 }
 0x1a8   : > { %826 = vrot.lane.b32.xlu1 %v797_v45, %s4688_s14  ;;  %v5114_v42 = vpop.permute.xlu1 %1137  ;;  %v5116_v43 = vpop.permute.xlu0 %1141 }
 0x1a9   : > { %7391 = vst [vmem:[#allocation32_spill] sm:$0xff] %v5114_v42  ;;  %7392 = vst [vmem:[#allocation33_spill] sm:$0xff] %v5116_v43 }
 0x1ac   : > { %v5118_v31 = vpop.permute.xlu1 %1145  ;;  %v5120_v30 = vpop.permute.xlu0 %1149 }
 0x1ad   : > { %7393 = vst [vmem:[#allocation34_spill] sm:$0xff] %v5118_v31  ;;  %7394 = vst [vmem:[#allocation35_spill] sm:$0xff] %v5120_v30 }
 0x1b0   : > { %v5122_v45 = vpop.permute.xlu1 %1135  ;;  %v5124_v29 = vpop.permute.xlu0 %1139 }
 0x1b1   : > { %7395 = vst [vmem:[#allocation36_spill] sm:$0xff] %v5122_v45  ;;  %7396 = vst [vmem:[#allocation37_spill] sm:$0xff] %v5124_v29 }
 0x1b4   : > { %v5126_v28 = vpop.permute.xlu1 %1143  ;;  %v5128_v27 = vpop.permute.xlu0 %1147 }
 0x1b5   : > { %7397 = vst [vmem:[#allocation38_spill] sm:$0xff] %v5126_v28  ;;  %7398 = vst [vmem:[#allocation39_spill] sm:$0xff] %v5128_v27 }
 0x1b8   : > { %v5130_v20 = vpop.permute.xlu1 %1073  ;;  %v5132_v19 = vpop.permute.xlu0 %1077 }
 0x1b9   : > { %7399 = vst [vmem:[#allocation40_spill] sm:$0xff] %v5130_v20  ;;  %7400 = vst [vmem:[#allocation41_spill] sm:$0xff] %v5132_v19 }
 0x1bc   : > { %v5134_v18 = vpop.permute.xlu1 %1081  ;;  %v5136_v13 = vpop.permute.xlu0 %1085 }
 0x1bd   : > { %7401 = vst [vmem:[#allocation42_spill] sm:$0xff] %v5134_v18  ;;  %7402 = vst [vmem:[#allocation43_spill] sm:$0xff] %v5136_v13  ;;  %v7431_v18 = vcombine.high %v4929_v3, %v4932_v4 }
 0x1c0   : > { %v5138_v10 = vpop.permute.xlu1 %1071  ;;  %v5140_v6 = vpop.permute.xlu0 %1075 }
 0x1c1   : > { %7403 = vst [vmem:[#allocation44_spill] sm:$0xff] %v5138_v10  ;;  %7404 = vst [vmem:[#allocation45_spill] sm:$0xff] %v5140_v6 }
 0x1c4   : > { %v5142_v5 = vpop.permute.xlu1 %1079  ;;  %v5144_v2 = vpop.permute.xlu0 %1083 }
 0x1c5   : > { %7405 = vst [vmem:[#allocation46_spill] sm:$0xff] %v5142_v5  ;;  %7406 = vst [vmem:[#allocation47_spill] sm:$0xff] %v5144_v2 }
 0x1c8   : > { %v5146_v0 = vpop.permute.xlu1 %1025  ;;  %v5148_v9 = vpop.permute.xlu0 %1029 }
 0x1c9   : > { %7407 = vst [vmem:[#allocation48_spill] sm:$0xff] %v5146_v0  ;;  %7408 = vst [vmem:[#allocation49_spill] sm:$0xff] %v5148_v9 }
 0x1cc   : > { %v5150_v60 = vpop.permute.xlu1 %1033  ;;  %v5152_v39 = vpop.permute.xlu0 %1037 }
 0x1cd   : > { %7409 = vst [vmem:[#allocation50_spill] sm:$0xff] %v5150_v60  ;;  %7410 = vst [vmem:[#allocation51_spill] sm:$0xff] %v5152_v39 }
 0x1d0   : > { %v5154_v29 = vpop.permute.xlu1 %1023  ;;  %v5156_v27 = vpop.permute.xlu0 %1027 }
 0x1d1   : > { %7411 = vst [vmem:[#allocation52_spill] sm:$0xff] %v5154_v29  ;;  %7412 = vst [vmem:[#allocation53_spill] sm:$0xff] %v5156_v27 }
 0x1d4   : > { %v5158_v45 = vpop.permute.xlu1 %1031  ;;  %v5160_v10 = vpop.permute.xlu0 %1035 }
 0x1d5   : > { %7413 = vst [vmem:[#allocation54_spill] sm:$0xff] %v5158_v45  ;;  %7414 = vst [vmem:[#allocation55_spill] sm:$0xff] %v5160_v10  ;;  %v4692_v10 = vmov 1934713408  }
 0x1d6   : > { %v1298_v39 = vunpack.c.l.s4 %v4692_v10 }
 0x1d8   : > { %v5162_v6 = vpop.permute.xlu1 %969  ;;  %v5164_v5 = vpop.permute.xlu0 %973 }
 0x1d9   : > { %7415 = vst [vmem:[#allocation56_spill] sm:$0xff] %v5162_v6  ;;  %7416 = vst [vmem:[#allocation57_spill] sm:$0xff] %v5164_v5  ;;  %v1655_v5 = vcombine.low %v5020_v41, %v5034_v46 }
 0x1dc   : > { %v5166_v2 = vpop.permute.xlu1 %971 }
 0x1dd   : > { %7417 = vst [vmem:[#allocation58_spill] sm:$0xff] %v5166_v2 }
 0x20a   : > { %v817_v0 = vpop.permute.xlu0 %816 }
 0x20b   : > { %840 = vst.msk [vmem:[#allocation2 + $0x69] sm:$0xff] %vm386_vm3, %v817_v0  ;;  %v2863_v0 = vcombine.low %v4962_v17, %v4986_v25 }
 0x20d   : > { %v5194_v6 = vrot.slane %v2863_v0, %v4894_v54 }
 0x20e   : > { %v815_v9 = vpop.permute.xlu0 %814  ;;  %v821_v60 = vpop.permute.xlu1 %820 }
 0x20f   : > { %839 = vst.msk [vmem:[#allocation2 + $0x61] sm:$0xff] %vm386_vm3, %v815_v9  ;;  %842 = vst.msk [vmem:[#allocation2 + $0x81] sm:$0xff] %vm386_vm3, %v821_v60  ;;  %v2879_v9 = vcombine.low %v4988_v26, %v5010_v34  ;;  %v1639_v60 = vcombine.low %v5008_v33, %v5018_v38 }
 0x210   : > { %7418 = vst [vmem:[#allocation59_spill] sm:$0xff] %v5194_v6 }
 0x211   : > { %v5197_v28 = vrot.slane %v2879_v9, %v4894_v54  ;;  %v5200_v40 = vrot.slane %v1639_v60, %v4894_v54 }
 0x212   : > { %v825_v27 = vpop.permute.xlu0 %824  ;;  %v819_v29 = vpop.permute.xlu1 %818  ;;  %v5171_v45 = vld [vmem:[#allocation2 + $0x6a] sm:$0xff] }
 0x213   : > { %844 = vst.msk [vmem:[#allocation2 + $0x99] sm:$0xff] %vm386_vm3, %v825_v27  ;;  %841 = vst.msk [vmem:[#allocation2 + $0x79] sm:$0xff] %vm386_vm3, %v819_v29  ;;  %1201 = vrot.lane.b32.xlu1 %v5171_v45, %s4690_s18  ;;  %v1299_v29 = vunpack.c.0.s8 %v1298_v39  ;;  %v5203_v39 = vrot.slane %v1655_v5, %v4894_v54  ;;  %v7422_v5 = vcombine.high %v4897_v55, %v4903_v57 }
 0x214   : > { %7419 = vst [vmem:[#allocation60_spill] sm:$0xff] %v5197_v28  ;;  %7420 = vst [vmem:[#allocation61_spill] sm:$0xff] %v5200_v40  ;;  %v2927_v32 = vcombine.low %v5194_v6, %v5197_v28 }
 0x215   : > { %7421 = vst [vmem:[#allocation62_spill] sm:$0xff] %v5203_v39  ;;  %v5206_v37 = vsub.s32 %v1299_v29, %v4889_v53  ;;  %v7423_v53 = vcombine.low %v4900_v56, %v4906_v58  ;;  %v1703_v20 = vcombine.low %v5200_v40, %v5203_v39 }
 0x216   : > { %v823_v10 = vpop.permute.xlu0 %822  ;;  %v829_v2 = vpop.permute.xlu1 %828  ;;  %v5185_v27 = vld [vmem:[#allocation2 + $0x60] sm:$0xff]  ;;  %v5287_v48 = vld [vmem:[#allocation2 + $0x68] sm:$0xff] }
 0x217   : > { %843 = vst.msk [vmem:[#allocation2 + $0x91] sm:$0xff] %vm386_vm3, %v823_v10  ;;  %846 = vst.msk [vmem:[#allocation2 + $0xb1] sm:$0xff] %vm386_vm3, %v829_v2  ;;  %927 = vrot.lane.b32.xlu0 %v5185_v27, %s4689_s17  ;;  %1153 = vrot.lane.b32.xlu1 %v5171_v45, %s4689_s17  ;;  %v872_v2 = vld [vmem:[#allocation2 + $0x69] sm:$0xff]  ;;  %v5218_v60 = vrot.slane %v7422_v5, %v5206_v37  ;;  %v5224_v29 = vrot.slane %v7423_v53, %v5206_v37  ;;  %v874_v51 = vld [vmem:[#allocation2 + $0x81] sm:$0xff] }
 0x218   : > { %v890_v0 = vld [vmem:[#allocation2 + $0x82] sm:$0xff]  ;;  %v7426_v53 = vcombine.high %v4900_v56, %v4906_v58  ;;  %v5279_v47 = vrot.slane %v7431_v18, %v5206_v37  ;;  %v7432_v58 = vcombine.low %v4929_v3, %v4932_v4  ;;  %v5295_v18 = vrot.slane %v2927_v32, %v5206_v37 }
 0x219   : > { %v5297_v35 = vld [vmem:[#allocation2 + $0x62] sm:$0xff]  ;;  %v7438_v32 = vcombine.high %v4950_v12, %v4960_v16 }
 0x21a   : > { %v827_v10 = vpop.permute.xlu1 %826  ;;  %v5212_v9 = vld [vmem:[#allocation2 + $0x9a] sm:$0xff]  ;;  %v5244_v19 = vrot.slane %v7426_v53, %v5206_v37  ;;  %v5285_v50 = vrot.slane %v7432_v58, %v5206_v37  ;;  %7433 = vst [vmem:[#allocation66_spill] sm:$0xff] %v5295_v18  ;;  %v5304_v58 = vrot.slane %v1703_v20, %v5206_v37 }
 0x21b   : > { %845 = vst.msk [vmem:[#allocation2 + $0xa9] sm:$0xff] %vm386_vm3, %v827_v10  ;;  %975 = vrot.lane.b32.xlu0 %v5185_v27, %s4690_s18  ;;  %1089 = vrot.lane.b32.xlu1 %v872_v2, %s4690_s18  ;;  %v7424_v10 = vcombine.low %v4897_v55, %v4903_v57  ;;  %v5236_v36 = vld [vmem:[#allocation2 + $0x99] sm:$0xff]  ;;  %v7428_v55 = vcombine.low %v4915_v61, %v4918_v62 }
 0x21c   : > { %7427 = vst [vmem:[#allocation64_spill] sm:$0xff] %v5244_v19  ;;  %v3303_v53 = vcombine.low %v5171_v45, %v5212_v9  ;;  %v2896_v1 = vcombine.high %v872_v2, %v5236_v36  ;;  %7435 = vst [vmem:[#allocation68_spill] sm:$0xff] %v5304_v58  ;;  %v5316_v30 = vrot.slane %v7438_v32, %v5206_v37  ;;  %v5330_v52 = vld [vmem:[#allocation2 + $0x7a] sm:$0xff] }
 0x21d   : > { %v5230_v7 = vrot.slane %v7424_v10, %v5206_v37  ;;  %v5250_v57 = vrot.slane %v7428_v55, %v5206_v37  ;;  %v7430_v10 = vcombine.high %v4915_v61, %v4918_v62  ;;  %v3304_v61 = vcombine.high %v5171_v45, %v5212_v9  ;;  %v5375_v6 = vld [vmem:[#allocation2 + $0x79] sm:$0xff] }
 0x21e   : > { %v5234_v8 = vld [vmem:[#allocation2 + $0x90] sm:$0xff]  ;;  %v5268_v55 = vld [vmem:[#allocation2 + $0x98] sm:$0xff]  ;;  %v2895_v45 = vcombine.low %v872_v2, %v5236_v36  ;;  %v3311_v20 = vrot.slane %v3303_v53, %v4894_v54  ;;  %v5342_v40 = vrot.slane %v2896_v1, %v4894_v54 }
 0x21f   : > { %7425 = vst [vmem:[#allocation63_spill] sm:$0xff] %v5230_v7  ;;  %v5238_v5 = vld [vmem:[#allocation2 + $0xb2] sm:$0xff]  ;;  %7429 = vst [vmem:[#allocation65_spill] sm:$0xff] %v5250_v57  ;;  %v5256_v13 = vrot.slane %v7430_v10, %v5206_v37  ;;  %1205 = vrot.lane.b32.xlu0 %v890_v0, %s4690_s18  ;;  %1041 = vrot.lane.b32.xlu1 %v872_v2, %s4689_s17  ;;  %v1263_v56 = vcombine.low %v5185_v27, %v5234_v8 }
 0x220   : > { %v3319_v62 = vcombine.low %v890_v0, %v5238_v5  ;;  %v5273_v10 = vld [vmem:[#allocation2 + $0x92] sm:$0xff]  ;;  %v3320_v49 = vcombine.high %v890_v0, %v5238_v5  ;;  %v2487_v3 = vcombine.low %v5287_v48, %v5268_v55  ;;  %v7436_v2 = vcombine.low %v4947_v11, %v4957_v15  ;;  %7441 = vst [vmem:[#allocation71_spill] sm:$0xff] %v5342_v40 }
 0x221   : > { %v5292_v14 = vld [vmem:[#allocation2 + $0xb1] sm:$0xff]  ;;  %v2079_v42 = vcombine.low %v5297_v35, %v5273_v10  ;;  %v3318_v32 = vrot.slane %v3304_v61, %v4894_v54  ;;  %v5339_v59 = vrot.slane %v2895_v45, %v4894_v54  ;;  %v871_v61 = vld [vmem:[#allocation2 + $0x61] sm:$0xff]  ;;  %v2080_v45 = vcombine.high %v5297_v35, %v5273_v10 }
 0x222   : > { %v5301_v4 = vld [vmem:[#allocation2 + $0xaa] sm:$0xff]  ;;  %v5310_v43 = vrot.slane %v7436_v2, %v5206_v37  ;;  %v7439_v2 = vcombine.low %v4950_v12, %v4960_v16  ;;  %v2911_v63 = vcombine.low %v874_v51, %v5292_v14  ;;  %v2912_v44 = vcombine.high %v874_v51, %v5292_v14 }
 0x223   : > { %7434 = vst [vmem:[#allocation67_spill] sm:$0xff] %v5301_v4  ;;  %1157 = vrot.lane.b32.xlu0 %v890_v0, %s4689_s17  ;;  %929 = vrot.lane.b32.xlu1 %v5287_v48, %s4689_s17  ;;  %v3327_v0 = vrot.slane %v3319_v62, %v4894_v54  ;;  %v5336_v53 = vld [vmem:[#allocation2 + $0x91] sm:$0xff]  ;;  %v3334_v12 = vrot.slane %v3320_v49, %v4894_v54 }
 0x224   : > { %7437 = vst [vmem:[#allocation69_spill] sm:$0xff] %v5310_v43  ;;  %v5328_v31 = vrot.slane %v7439_v2, %v5206_v37  ;;  %v2095_v16 = vcombine.low %v5330_v52, %v5301_v4  ;;  %v5348_v62 = vrot.slane %v1263_v56, %v4894_v54  ;;  %v5353_v39 = vrot.slane %v2487_v3, %v4894_v54  ;;  %v5363_v41 = vld [vmem:[#allocation2 + $0xb0] sm:$0xff] }
 0x225   : > { %v2087_v1 = vrot.slane %v2079_v42, %v4894_v54  ;;  %v1671_v49 = vcombine.low %v871_v61, %v5336_v53  ;;  %v1672_v56 = vcombine.high %v871_v61, %v5336_v53  ;;  %v5365_v2 = vld [vmem:[#allocation2 + $0xa9] sm:$0xff]  ;;  %v5368_v3 = vrot.slane %v2911_v63, %v4894_v54  ;;  %v5377_v42 = vld [vmem:[#allocation2 + $0x80] sm:$0xff] }
 0x226   : > { %7440 = vst [vmem:[#allocation70_spill] sm:$0xff] %v5328_v31  ;;  %v5371_v46 = vrot.slane %v2912_v44, %v4894_v54  ;;  %v2096_v33 = vcombine.high %v5330_v52, %v5301_v4  ;;  %v3368_v38 = vcombine.high %v3311_v20, %v3327_v0  ;;  %v2103_v28 = vrot.slane %v2095_v16, %v4894_v54  ;;  %v5392_v16 = vld [vmem:[#allocation2 + $0xa8] sm:$0xff] }
 0x227   : > { %1093 = vrot.lane.b32.xlu0 %v874_v51, %s4690_s18  ;;  %1199 = vrot.lane.b32.xlu1 %v5297_v35, %s4690_s18  ;;  %v3383_v26 = vcombine.low %v3318_v32, %v3334_v12  ;;  %v3367_v34 = vcombine.low %v3311_v20, %v3327_v0  ;;  %v3384_v17 = vcombine.high %v3318_v32, %v3334_v12 }
 0x228   : > { %7442 = vst [vmem:[#allocation72_spill] sm:$0xff] %v5371_v46  ;;  %v2503_v63 = vcombine.low %v5377_v42, %v5363_v41  ;;  %v1687_v44 = vcombine.low %v5375_v6, %v5365_v2  ;;  %v1688_v25 = vcombine.high %v5375_v6, %v5365_v2  ;;  %v5387_v4 = vrot.slane %v3368_v38, %v5206_v37 }
 0x229   : > { %v5395_v20 = vrot.slane %v3383_v26, %v5206_v37  ;;  %v5398_v32 = vrot.slane %v3367_v34, %v5206_v37  ;;  %v5401_v0 = vrot.slane %v3384_v17, %v5206_v37  ;;  %v5411_v26 = vld [vmem:[#allocation2 + $0x78] sm:$0xff]  ;;  %v2959_v38 = vcombine.low %v5339_v59, %v5368_v3 }
 0x22a   : > { %7443 = vst [vmem:[#allocation73_spill] sm:$0xff] %v5387_v4  ;;  %v2110_v4 = vrot.slane %v2096_v33, %v4894_v54  ;;  %v2144_v17 = vcombine.high %v2087_v1, %v2103_v28  ;;  %v5435_v33 = vrot.slane %v1671_v49, %v4894_v54  ;;  %v1280_v12 = vcombine.high %v5411_v26, %v5392_v16 }
 0x22b   : > { %1045 = vrot.lane.b32.xlu0 %v874_v51, %s4689_s17  ;;  %1151 = vrot.lane.b32.xlu1 %v5297_v35, %s4689_s17  ;;  %7444 = vst [vmem:[#allocation74_spill] sm:$0xff] %v5395_v20  ;;  %7445 = vst [vmem:[#allocation75_spill] sm:$0xff] %v5398_v32  ;;  %v1279_v35 = vcombine.low %v5411_v26, %v5392_v16  ;;  %v2143_v51 = vcombine.low %v2087_v1, %v2103_v28 }
 0x22c   : > { %7446 = vst [vmem:[#allocation76_spill] sm:$0xff] %v5401_v0  ;;  %v2094_v20 = vrot.slane %v2080_v45, %v4894_v54  ;;  %v5440_v34 = vrot.slane %v1687_v44, %v4894_v54  ;;  %v2511_v46 = vrot.slane %v2503_v63, %v4894_v54  ;;  %v5444_v40 = vrot.slane %v1688_v25, %v4894_v54 }
 0x22d   : > { %v5447_v0 = vrot.slane %v2143_v51, %v5206_v37  ;;  %v5450_v28 = vrot.slane %v2144_v17, %v5206_v37  ;;  %v5453_v45 = vrot.slane %v1672_v56, %v4894_v54  ;;  %v1287_v1 = vrot.slane %v1279_v35, %v4894_v54 }
 0x22e   : > { %7447 = vst [vmem:[#allocation77_spill] sm:$0xff] %v5444_v40  ;;  %v2160_v49 = vcombine.high %v2094_v20, %v2110_v4  ;;  %v2159_v19 = vcombine.low %v2094_v20, %v2110_v4  ;;  %v2504_v25 = vcombine.high %v5377_v42, %v5363_v41  ;;  %v1735_v20 = vcombine.low %v5435_v33, %v5440_v34 }
 0x22f   : > { %931 = vrot.lane.b32.xlu0 %v5411_v26, %s4689_s17  ;;  %1087 = vrot.lane.b32.xlu1 %v871_v61, %s4690_s18  ;;  %7448 = vst [vmem:[#allocation78_spill] sm:$0xff] %v5447_v0  ;;  %7449 = vst [vmem:[#allocation79_spill] sm:$0xff] %v5453_v45  ;;  %v2551_v56 = vcombine.low %v5353_v39, %v2511_v46  ;;  %v1294_v17 = vrot.slane %v1280_v12, %v4894_v54 }
 0x230   : > { %v5468_v51 = vrot.slane %v2160_v49, %v5206_v37  ;;  %v5471_v4 = vrot.slane %v2159_v19, %v5206_v37  ;;  %v7450_v35 = vcombine.high %v4947_v11, %v4957_v15  ;;  %v2518_v44 = vrot.slane %v2504_v25, %v4894_v54 }
 0x231   : > { %v5509_v63 = vrot.slane %v2551_v56, %v5206_v37  ;;  %v1328_v40 = vcombine.high %v5348_v62, %v1287_v1  ;;  %v1327_v12 = vcombine.low %v5348_v62, %v1287_v1  ;;  %v7454_v11 = vcombine.high %v5185_v27, %v5234_v8 }
 0x232   : > { %v5499_v49 = vrot.slane %v7450_v35, %v5206_v37  ;;  %v7455_v35 = vcombine.low %v4978_v23, %v4981_v24  ;;  %v7456_v25 = vcombine.low %v4972_v21, %v4975_v22  ;;  %v7457_v62 = vcombine.high %v4978_v23, %v4981_v24 }
 0x233   : > { %935 = vrot.lane.b32.xlu0 %v5234_v8, %s4689_s17  ;;  %1039 = vrot.lane.b32.xlu1 %v871_v61, %s4689_s17  ;;  %v7451_v61 = vcombine.high %v4972_v21, %v4975_v22  ;;  %7453 = vst [vmem:[#allocation81_spill] sm:$0xff] %v5509_v63  ;;  %v1278_v15 = vrot.slane %v7454_v11, %v4894_v54 }
 0x234   : > { %v5527_v56 = vrot.slane %v7456_v25, %v5206_v37  ;;  %v5533_v1 = vrot.slane %v7457_v62, %v5206_v37  ;;  %v7459_v27 = vcombine.high %v5287_v48, %v5268_v55  ;;  %v5543_v45 = vrot.slane %v1735_v20, %v5206_v37 }
 0x235   : > { %v5505_v19 = vrot.slane %v7451_v61, %v5206_v37  ;;  %v5521_v61 = vrot.slane %v7455_v35, %v5206_v37  ;;  %v5540_v35 = vrot.slane %v2959_v38, %v5206_v37  ;;  %v2584_v21 = vcombine.high %v5310_v43, %v5509_v63 }
 0x236   : > { %7458 = vst [vmem:[#allocation82_spill] sm:$0xff] %v5533_v1  ;;  %v2502_v11 = vrot.slane %v7459_v27, %v4894_v54  ;;  %7461 = vst [vmem:[#allocation84_spill] sm:$0xff] %v5543_v45  ;;  %v5552_v22 = vrot.slane %v1328_v40, %v5206_v37  ;;  %v5555_v23 = vrot.slane %v1327_v12, %v5206_v37 }
 0x237   : > { %1203 = vrot.lane.b32.xlu0 %v5330_v52, %s4690_s18  ;;  %977 = vrot.lane.b32.xlu1 %v5287_v48, %s4690_s18  ;;  %7452 = vst [vmem:[#allocation80_spill] sm:$0xff] %v5505_v19  ;;  %7460 = vst [vmem:[#allocation83_spill] sm:$0xff] %v5540_v35  ;;  %v2552_v24 = vcombine.high %v5353_v39, %v2511_v46  ;;  %v1344_v48 = vcombine.high %v1278_v15, %v1294_v17 }
 0x238   : > { %7462 = vst [vmem:[#allocation85_spill] sm:$0xff] %v5555_v23  ;;  %v2567_v38 = vcombine.low %v2502_v11, %v2518_v44  ;;  %v1343_v20 = vcombine.low %v1278_v15, %v1294_v17  ;;  %v2568_v25 = vcombine.high %v2502_v11, %v2518_v44  ;;  %v1361_v62 = vcombine.low %v5316_v30, %v5552_v22  ;;  %v7482_v15 = vld [vmem:[#allocation71_spill] sm:$0xff] }
 0x239   : > { %v1362_v27 = vcombine.high %v5316_v30, %v5552_v22  ;;  %v5565_v40 = vrot.slane %v2552_v24, %v5206_v37  ;;  %v5568_v12 = vrot.slane %v1344_v48, %v5206_v37 }
 0x23a   : > { %v5571_v46 = vrot.slane %v2567_v38, %v5206_v37  ;;  %v5574_v39 = vrot.slane %v1343_v20, %v5206_v37  ;;  %v5577_v44 = vrot.slane %v2568_v25, %v5206_v37 }
 0x23b   : > { %1155 = vrot.lane.b32.xlu0 %v5330_v52, %s4689_s17  ;;  %1209 = vrot.lane.b32.xlu1 %v5212_v9, %s4690_s18  ;;  %v1360_v52 = vcombine.high %v5328_v31, %v5555_v23  ;;  %7463 = vst [vmem:[#allocation86_spill] sm:$0xff] %v5568_v12  ;;  %v2585_v17 = vcombine.low %v5499_v49, %v5565_v40 }
 0x23c   : > { %7464 = vst [vmem:[#allocation87_spill] sm:$0xff] %v5577_v44  ;;  %v1365_v24 = vcombine.low %v5505_v19, %v5568_v12 }
 0x23f   : > { %1091 = vrot.lane.b32.xlu0 %v5375_v6, %s4690_s18  ;;  %1161 = vrot.lane.b32.xlu1 %v5212_v9, %s4689_s17 }
 0x243   : > { %1043 = vrot.lane.b32.xlu0 %v5375_v6, %s4689_s17  ;;  %1097 = vrot.lane.b32.xlu1 %v5236_v36, %s4690_s18  ;;  %v7465_v6 = vld [vmem:[#allocation67_spill] sm:$0xff] }
 0x247   : > { %981 = vrot.lane.b32.xlu0 %v5377_v42, %s4690_s18  ;;  %1049 = vrot.lane.b32.xlu1 %v5236_v36, %s4689_s17  ;;  %v7466_v36 = vld [vmem:[#allocation4_spill] sm:$0xff] }
 0x24b   : > { %983 = vrot.lane.b32.xlu0 %v5234_v8, %s4690_s18  ;;  %933 = vrot.lane.b32.xlu1 %v5377_v42, %s4689_s17 }
 0x24f   : > { %1213 = vrot.lane.b32.xlu0 %v5238_v5, %s4690_s18  ;;  %937 = vrot.lane.b32.xlu1 %v5268_v55, %s4689_s17 }
 0x253   : > { %1165 = vrot.lane.b32.xlu0 %v5238_v5, %s4689_s17  ;;  %1207 = vrot.lane.b32.xlu1 %v5273_v10, %s4690_s18  ;;  %v7468_v5 = vld [vmem:[#allocation7_spill] sm:$0xff] }
 0x257   : > { %1101 = vrot.lane.b32.xlu0 %v5292_v14, %s4690_s18  ;;  %1159 = vrot.lane.b32.xlu1 %v5273_v10, %s4689_s17 }
 0x25b   : > { %1053 = vrot.lane.b32.xlu0 %v5292_v14, %s4689_s17  ;;  %1095 = vrot.lane.b32.xlu1 %v5336_v53, %s4690_s18  ;;  %v7467_v14 = vld [vmem:[#allocation3_spill] sm:$0xff] }
 0x25c   : > { %v2864_v8 = vcombine.high %v7467_v14, %v7466_v36  ;;  %v7474_v36 = vcombine.high %v5230_v7, %v5398_v32  ;;  %v7475_v14 = vld [vmem:[#allocation60_spill] sm:$0xff] }
 0x25d   : > { %v7535_v32 = vld [vmem:[#allocation16_spill] sm:$0xff] }
 0x25e   : > { %v7536_v7 = vld [vmem:[#allocation12_spill] sm:$0xff] }
 0x25f   : > { %1047 = vrot.lane.b32.xlu1 %v5336_v53, %s4689_s17  ;;  %939 = vrot.lane.b32.xlu0 %v5392_v16, %s4689_s17  ;;  %v7470_v53 = vld [vmem:[#allocation73_spill] sm:$0xff]  ;;  %v2591_v12 = vcombine.low %v7536_v7, %v7535_v32 }
 0x260   : > { %v7471_v42 = vcombine.high %v5218_v60, %v7470_v53  ;;  %v7544_v32 = vld [vmem:[#allocation17_spill] sm:$0xff] }
 0x263   : > { %985 = vrot.lane.b32.xlu1 %v5268_v55, %s4690_s18  ;;  %1211 = vrot.lane.b32.xlu0 %v7465_v6, %s4690_s18  ;;  %v7469_v55 = vld [vmem:[#allocation5_spill] sm:$0xff] }
 0x264   : > { %v2880_v10 = vcombine.high %v7469_v55, %v7468_v5  ;;  %v7476_v5 = vld [vmem:[#allocation59_spill] sm:$0xff] }
 0x265   : > { %v2928_v55 = vcombine.high %v7476_v5, %v7475_v14 }
 0x267   : > { %979 = vrot.lane.b32.xlu1 %v5411_v26, %s4690_s18  ;;  %1163 = vrot.lane.b32.xlu0 %v7465_v6, %s4689_s17  ;;  %v2894_v26 = vrot.slane %v2880_v10, %v4894_v54  ;;  %v7478_v10 = vld [vmem:[#allocation64_spill] sm:$0xff] }
 0x26b   : > { %941 = vrot.lane.b32.xlu1 %v5363_v41, %s4689_s17  ;;  %1099 = vrot.lane.b32.xlu0 %v5365_v2, %s4690_s18 }
 0x26f   : > { %987 = vrot.lane.b32.xlu1 %v5392_v16, %s4690_s18  ;;  %1051 = vrot.lane.b32.xlu0 %v5365_v2, %s4689_s17  ;;  %v2878_v16 = vrot.slane %v2864_v8, %v4894_v54  ;;  %v7472_v2 = vld [vmem:[#allocation74_spill] sm:$0xff] }
 0x270   : > { %v7473_v6 = vcombine.low %v5224_v29, %v7472_v2 }
 0x271   : > { %v2943_v14 = vcombine.low %v2878_v16, %v2894_v26 }
 0x273   : > { %4024 = vrot.lane.b32.xlu1 %v7471_v42, %s4693_s21  ;;  %989 = vrot.lane.b32.xlu0 %v5363_v41, %s4690_s18  ;;  %v7477_v41 = vcombine.high %v5339_v59, %v5368_v3  ;;  %v7479_v42 = vld [vmem:[#allocation76_spill] sm:$0xff] }
 0x274   : > { %v7480_v48 = vcombine.high %v7478_v10, %v7479_v42  ;;  %v7483_v59 = vld [vmem:[#allocation72_spill] sm:$0xff] }
 0x275   : > { %v2974_v8 = vrot.slane %v7477_v41, %v5206_v37  ;;  %v7484_v3 = vcombine.low %v7482_v15, %v7483_v59 }
 0x277   : > { %4060 = vrot.lane.b32.xlu1 %v7473_v6, %s4694_s22  ;;  %3952 = vrot.lane.b32.xlu0 %v7474_v36, %s4695_s23  ;;  %v7481_v6 = vcombine.low %v5218_v60, %v7470_v53  ;;  %v2942_v36 = vrot.slane %v2928_v55, %v5206_v37  ;;  %v2983_v41 = vrot.slane %v7484_v3, %v5206_v37 }
 0x278   : > { %v2951_v60 = vrot.slane %v2943_v14, %v5206_v37  ;;  %v2944_v53 = vcombine.high %v2878_v16, %v2894_v26  ;;  %v7486_v55 = vcombine.high %v7482_v15, %v7483_v59  ;;  %v2992_v16 = vcombine.high %v5295_v18, %v5540_v35  ;;  %v7532_v18 = vld [vmem:[#allocation35_spill] sm:$0xff] }
 0x279   : > { %v2994_v5 = vcombine.high %v2942_v36, %v2974_v8  ;;  %v2993_v59 = vcombine.low %v2942_v36, %v2974_v8 }
 0x27a   : > { %v2990_v11 = vrot.slane %v7486_v55, %v5206_v37  ;;  %v7492_v55 = vld [vmem:[#allocation8_spill] sm:$0xff] }
 0x27b   : > { %4168 = vrot.lane.b32.xlu1 %v7480_v48, %s4696_s26  ;;  %3988 = vrot.lane.b32.xlu0 %v7481_v6, %s4697_s27  ;;  %v7485_v48 = vcombine.high %v5224_v29, %v7472_v2  ;;  %v2995_v6 = vcombine.low %v2951_v60, %v2983_v41  ;;  %v2958_v29 = vrot.slane %v2944_v53, %v5206_v37 }
 0x27c   : > { %v7491_v53 = vcombine.low %v5256_v13, %v5450_v28 }
 0x27d   : > { %v2998_v14 = vcombine.high %v2958_v29, %v2990_v11 }
 0x27f   : > { %4018 = vrot.lane.b32.xlu1 %v2994_v5, %s4693_s21  ;;  %4096 = vrot.lane.b32.xlu0 %v7485_v48, %s4698_s28  ;;  %v7487_v5 = vcombine.low %v7478_v10, %v7479_v42  ;;  %v7489_v10 = vcombine.high %v5250_v57, %v5447_v0  ;;  %v2996_v48 = vcombine.high %v2951_v60, %v2983_v41  ;;  %v7533_v0 = vld [vmem:[#allocation33_spill] sm:$0xff] }
 0x280   : > { %v7496_v41 = vcombine.high %v5256_v13, %v5450_v28  ;;  %v7499_v13 = vcombine.low %v5285_v50, %v5471_v4  ;;  %v7500_v28 = vld [vmem:[#allocation62_spill] sm:$0xff] }
 0x283   : > { %4054 = vrot.lane.b32.xlu1 %v2995_v6, %s4694_s22  ;;  %4132 = vrot.lane.b32.xlu0 %v7487_v5, %s4699_s29  ;;  %v2997_v6 = vcombine.low %v2958_v29, %v2990_v11  ;;  %v7493_v5 = vld [vmem:[#allocation6_spill] sm:$0xff]  ;;  %v7498_v29 = vcombine.low %v5279_v47, %v5468_v51 }
 0x285   : > { %v5718_v2 = vpop.permute.xlu1 %1201 }
 0x287   : > { %4162 = vrot.lane.b32.xlu1 %v2998_v14, %s4696_s26  ;;  %3946 = vrot.lane.b32.xlu0 %v2992_v16, %s4695_s23  ;;  %v1640_v14 = vcombine.high %v7493_v5, %v7492_v55  ;;  %v7494_v16 = vld [vmem:[#allocation10_spill] sm:$0xff] }
 0x289   : > { %v5724_v15 = vpop.permute.xlu0 %927  ;;  %v5726_v26 = vpop.permute.xlu1 %1153 }
 0x28a   : > { %7488 = vst [vmem:[#allocation67_spill] sm:$0xff] %v5724_v15 }
 0x28b   : > { %3700 = vrot.lane.b32.xlu1 %v7489_v10, %s4695_s23  ;;  %3982 = vrot.lane.b32.xlu0 %v2993_v59, %s4697_s27  ;;  %v7495_v59 = vld [vmem:[#allocation9_spill] sm:$0xff] }
 0x28c   : > { %v1656_v10 = vcombine.high %v7495_v59, %v7494_v16 }
 0x28d   : > { %v5733_v42 = vpop.permute.xlu0 %975  ;;  %v5735_v3 = vpop.permute.xlu1 %1089 }
 0x28e   : > { %7490 = vst [vmem:[#allocation4_spill] sm:$0xff] %v5733_v42  ;;  %v1670_v11 = vrot.slane %v1656_v10, %v4894_v54  ;;  %v7503_v10 = vcombine.high %v5279_v47, %v5468_v51  ;;  %v7507_v47 = vld [vmem:[#allocation77_spill] sm:$0xff] }
 0x28f   : > { %3736 = vrot.lane.b32.xlu1 %v7491_v53, %s4697_s27  ;;  %4090 = vrot.lane.b32.xlu0 %v2996_v48, %s4698_s28  ;;  %v1654_v53 = vrot.slane %v1640_v14, %v4894_v54  ;;  %v7502_v14 = vcombine.high %v5435_v33, %v5440_v34  ;;  %v1768_v34 = vcombine.high %v5304_v58, %v5543_v45  ;;  %v7506_v33 = vld [vmem:[#allocation79_spill] sm:$0xff] }
 0x290   : > { %v7508_v51 = vcombine.low %v7506_v33, %v7507_v47  ;;  %v7511_v9 = vcombine.high %v7506_v33, %v7507_v47 }
 0x291   : > { %v5742_v8 = vpop.permute.xlu0 %1205  ;;  %v5744_v36 = vpop.permute.xlu1 %1041  ;;  %v1750_v59 = vrot.slane %v7502_v14, %v5206_v37 }
 0x292   : > { %v1759_v14 = vrot.slane %v7508_v51, %v5206_v37  ;;  %v1766_v25 = vrot.slane %v7511_v9, %v5206_v37 }
 0x293   : > { %3772 = vrot.lane.b32.xlu1 %v7496_v41, %s4693_s21  ;;  %4126 = vrot.lane.b32.xlu0 %v2997_v6, %s4699_s29  ;;  %v7501_v6 = vld [vmem:[#allocation61_spill] sm:$0xff]  ;;  %v7504_v41 = vcombine.high %v5285_v50, %v5471_v4  ;;  %v1720_v4 = vcombine.high %v1654_v53, %v1670_v11 }
 0x294   : > { %v1704_v55 = vcombine.high %v7501_v6, %v7500_v28 }
 0x295   : > { %v5755_v60 = vpop.permute.xlu0 %1157  ;;  %v5757_v48 = vpop.permute.xlu1 %929 }
 0x296   : > { %7497 = vst [vmem:[#allocation3_spill] sm:$0xff] %v5757_v48 }
 0x297   : > { %3880 = vrot.lane.b32.xlu1 %v7498_v29, %s4699_s29  ;;  %3808 = vrot.lane.b32.xlu0 %v7499_v13, %s4694_s22  ;;  %v1718_v29 = vrot.slane %v1704_v55, %v5206_v37  ;;  %v1719_v13 = vcombine.low %v1654_v53, %v1670_v11 }
 0x299   : > { %v5771_v5 = vpop.permute.xlu0 %1093  ;;  %v5773_v16 = vpop.permute.xlu1 %1199  ;;  %v1769_v20 = vcombine.low %v1718_v29, %v1750_v59  ;;  %v1727_v50 = vrot.slane %v1719_v13, %v5206_v37 }
 0x29b   : > { %3916 = vrot.lane.b32.xlu1 %v7503_v10, %s4696_s26  ;;  %3844 = vrot.lane.b32.xlu0 %v7504_v41, %s4698_s28  ;;  %v1770_v41 = vcombine.high %v1718_v29, %v1750_v59  ;;  %v1771_v38 = vcombine.low %v1727_v50, %v1759_v14  ;;  %v1772_v13 = vcombine.high %v1727_v50, %v1759_v14  ;;  %v7523_v14 = vld [vmem:[#allocation26_spill] sm:$0xff] }
 0x29d   : > { %v5788_v28 = vpop.permute.xlu0 %1045  ;;  %v5790_v6 = vpop.permute.xlu1 %1151 }
 0x29e   : > { %7505 = vst [vmem:[#allocation7_spill] sm:$0xff] %v5790_v6 }
 0x29f   : > { %3730 = vrot.lane.b32.xlu1 %v1769_v20, %s4697_s27  ;;  %3694 = vrot.lane.b32.xlu0 %v1768_v34, %s4695_s23  ;;  %v1734_v20 = vrot.slane %v1720_v4, %v5206_v37  ;;  %v7525_v4 = vld [vmem:[#allocation27_spill] sm:$0xff] }
 0x2a1   : > { %v5801_v55 = vpop.permute.xlu0 %931  ;;  %v5803_v10 = vpop.permute.xlu1 %1087  ;;  %v1773_v11 = vcombine.low %v1734_v20, %v1766_v25  ;;  %v1774_v9 = vcombine.high %v1734_v20, %v1766_v25 }
 0x2a2   : > { %7509 = vst [vmem:[#allocation5_spill] sm:$0xff] %v5801_v55  ;;  %7510 = vst [vmem:[#allocation73_spill] sm:$0xff] %v5803_v10 }
 0x2a3   : > { %3766 = vrot.lane.b32.xlu1 %v1770_v41, %s4693_s21  ;;  %3802 = vrot.lane.b32.xlu0 %v1771_v38, %s4694_s22  ;;  %v7526_v41 = vld [vmem:[#allocation25_spill] sm:$0xff] }
 0x2a5   : > { %v5812_v34 = vpop.permute.xlu0 %935  ;;  %v5814_v53 = vpop.permute.xlu1 %1039 }
 0x2a6   : > { %7512 = vst [vmem:[#allocation74_spill] sm:$0xff] %v5812_v34  ;;  %7513 = vst [vmem:[#allocation60_spill] sm:$0xff] %v5814_v53  ;;  %v7557_v53 = vld [vmem:[#allocation41_spill] sm:$0xff] }
 0x2a7   : > { %3874 = vrot.lane.b32.xlu1 %v1773_v11, %s4699_s29  ;;  %3838 = vrot.lane.b32.xlu0 %v1772_v13, %s4698_s28  ;;  %v3560_v11 = vcombine.high %v7526_v41, %v7525_v4 }
 0x2a9   : > { %v5818_v59 = vpop.permute.xlu0 %1203  ;;  %v5820_v29 = vpop.permute.xlu1 %977 }
 0x2aa   : > { %7514 = vst [vmem:[#allocation59_spill] sm:$0xff] %v5820_v29  ;;  %v7556_v29 = vld [vmem:[#allocation43_spill] sm:$0xff] }
 0x2ab   : > { %3910 = vrot.lane.b32.xlu1 %v1774_v9, %s4696_s26  ;;  %3940 = vrot.lane.b32.xlu0 %v2584_v21, %s4695_s23 }
 0x2ad   : > { %v5827_v38 = vpop.permute.xlu0 %1155  ;;  %v1210_v33 = vpop.permute.xlu1 %1209 }
 0x2ae   : > { %7515 = vst [vmem:[#allocation64_spill] sm:$0xff] %v5827_v38  ;;  %v3575_v13 = vcombine.low %v5718_v2, %v1210_v33 }
 0x2af   : > { %3724 = vrot.lane.b32.xlu1 %v1361_v62, %s4697_s27  ;;  %3688 = vrot.lane.b32.xlu0 %v1360_v52, %s4695_s23  ;;  %v7518_v52 = vcombine.high %v5499_v49, %v5565_v40  ;;  %v3559_v49 = vcombine.low %v7526_v41, %v7525_v4  ;;  %v7527_v40 = vcombine.low %v5527_v56, %v5574_v39 }
 0x2b0   : > { %v5901_v4 = vrot.slane %v3560_v11, %v4894_v54  ;;  %v3423_v11 = vcombine.low %v7533_v0, %v7532_v18 }
 0x2b1   : > { %v5837_v25 = vpop.permute.xlu0 %1091  ;;  %v5839_v47 = vpop.permute.xlu1 %1161  ;;  %v3567_v45 = vrot.slane %v3559_v49, %v4894_v54 }
 0x2b2   : > { %7516 = vst [vmem:[#allocation76_spill] sm:$0xff] %v5837_v25 }
 0x2b3   : > { %3760 = vrot.lane.b32.xlu1 %v1362_v27, %s4693_s21  ;;  %3976 = vrot.lane.b32.xlu0 %v2585_v17, %s4697_s27  ;;  %v7520_v27 = vcombine.low %v5521_v61, %v5571_v46 }
 0x2b5   : > { %v5849_v21 = vpop.permute.xlu0 %1043  ;;  %v5851_v62 = vpop.permute.xlu1 %1097 }
 0x2b6   : > { %7517 = vst [vmem:[#allocation71_spill] sm:$0xff] %v5849_v21 }
 0x2b7   : > { %3868 = vrot.lane.b32.xlu1 %v1365_v24, %s4699_s29  ;;  %4012 = vrot.lane.b32.xlu0 %v7518_v52, %s4693_s21  ;;  %v7524_v24 = vld [vmem:[#allocation24_spill] sm:$0xff] }
 0x2b8   : > { %v3543_v50 = vcombine.low %v7524_v24, %v7523_v14  ;;  %v3544_v20 = vcombine.high %v7524_v24, %v7523_v14  ;;  %v7529_v14 = vcombine.high %v5521_v61, %v5571_v46  ;;  %v7531_v61 = vld [vmem:[#allocation32_spill] sm:$0xff] }
 0x2b9   : > { %v5861_v30 = vpop.permute.xlu0 %981  ;;  %v5863_v22 = vpop.permute.xlu1 %1049 }
 0x2ba   : > { %7519 = vst [vmem:[#allocation72_spill] sm:$0xff] %v5861_v30  ;;  %v5898_v24 = vrot.slane %v3544_v20, %v4894_v54 }
 0x2bb   : > { %4048 = vrot.lane.b32.xlu0 %v7520_v27, %s4694_s22  ;;  %v3551_v27 = vrot.slane %v3543_v50, %v4894_v54  ;;  %v3583_v50 = vrot.slane %v3575_v13, %v4894_v54  ;;  %v7534_v13 = vcombine.high %v5527_v56, %v5574_v39 }
 0x2bd   : > { %v5869_v17 = vpop.permute.xlu0 %983  ;;  %v5871_v51 = vpop.permute.xlu1 %933 }
 0x2be   : > { %7521 = vst [vmem:[#allocation8_spill] sm:$0xff] %v5869_v17  ;;  %7522 = vst [vmem:[#allocation6_spill] sm:$0xff] %v5871_v51  ;;  %v3151_v51 = vcombine.low %v7557_v53, %v7556_v29 }
 0x2bf   : > { %3796 = vrot.lane.b32.xlu0 %v7527_v40, %s4694_s22  ;;  %v3576_v40 = vcombine.high %v5718_v2, %v1210_v33  ;;  %v3608_v33 = vcombine.high %v3551_v27, %v3567_v45 }
 0x2c1   : > { %v1214_v9 = vpop.permute.xlu0 %1213  ;;  %v5886_v52 = vpop.permute.xlu1 %937  ;;  %v5915_v57 = vrot.slane %v3576_v40, %v4894_v54 }
 0x2c2   : > { %7528 = vst [vmem:[#allocation10_spill] sm:$0xff] %v5886_v52  ;;  %v3591_v58 = vcombine.low %v5742_v8, %v1214_v9  ;;  %v3592_v35 = vcombine.high %v5742_v8, %v1214_v9  ;;  %v7530_v9 = vld [vmem:[#allocation34_spill] sm:$0xff] }
 0x2c3   : > { %4084 = vrot.lane.b32.xlu0 %v7529_v14, %s4698_s28  ;;  %v3407_v46 = vcombine.low %v7531_v61, %v7530_v9  ;;  %v3408_v39 = vcombine.high %v7531_v61, %v7530_v9  ;;  %v3622_v9 = vrot.slane %v3608_v33, %v5206_v37  ;;  %v7540_v61 = vld [vmem:[#allocation15_spill] sm:$0xff] }
 0x2c4   : > { %v3599_v41 = vrot.slane %v3591_v58, %v4894_v54  ;;  %v5906_v49 = vrot.slane %v3592_v35, %v4894_v54  ;;  %v3439_v58 = vcombine.low %v5726_v26, %v5839_v47 }
 0x2c5   : > { %v1166_v8 = vpop.permute.xlu0 %1165  ;;  %v5908_v2 = vpop.permute.xlu1 %1207 }
 0x2c6   : > { %v3639_v14 = vcombine.low %v3583_v50, %v3599_v41  ;;  %v3640_v20 = vcombine.high %v3583_v50, %v3599_v41  ;;  %v3455_v35 = vcombine.low %v5755_v60, %v1166_v8  ;;  %v3607_v50 = vcombine.low %v3551_v27, %v3567_v45 }
 0x2c7   : > { %3832 = vrot.lane.b32.xlu0 %v7534_v13, %s4698_s28  ;;  %v3623_v41 = vcombine.low %v5898_v24, %v5901_v4  ;;  %v3655_v40 = vcombine.low %v5915_v57, %v5906_v49  ;;  %v3456_v19 = vcombine.high %v5755_v60, %v1166_v8  ;;  %v3415_v45 = vrot.slane %v3407_v46, %v4894_v54  ;;  %v7541_v46 = vld [vmem:[#allocation11_spill] sm:$0xff] }
 0x2c8   : > { %v3463_v63 = vrot.slane %v3455_v35, %v4894_v54  ;;  %v3654_v56 = vrot.slane %v3640_v20, %v5206_v37  ;;  %v3424_v27 = vcombine.high %v7533_v0, %v7532_v18  ;;  %v5943_v13 = vrot.slane %v3639_v14, %v5206_v37  ;;  %v7542_v0 = vld [vmem:[#allocation18_spill] sm:$0xff] }
 0x2c9   : > { %v5932_v43 = vpop.permute.xlu0 %1101  ;;  %v5934_v23 = vpop.permute.xlu1 %1159  ;;  %v3431_v60 = vrot.slane %v3423_v11, %v4894_v54  ;;  %v3440_v8 = vcombine.high %v5726_v26, %v5839_v47  ;;  %v3447_v35 = vrot.slane %v3439_v58, %v4894_v54  ;;  %v7539_v20 = vcombine.low %v5533_v1, %v5577_v44  ;;  %v7543_v14 = vld [vmem:[#allocation14_spill] sm:$0xff]  ;;  %v7545_v11 = vld [vmem:[#allocation13_spill] sm:$0xff] }
 0x2ca   : > { %7537 = vst [vmem:[#allocation9_spill] sm:$0xff] %v5934_v23  ;;  %7538 = vst [vmem:[#allocation62_spill] sm:$0xff] %v5943_v13  ;;  %v1367_v18 = vcombine.low %v7541_v46, %v7540_v61  ;;  %v2607_v7 = vcombine.low %v7543_v14, %v7542_v0  ;;  %v1383_v31 = vcombine.low %v7545_v11, %v7544_v32  ;;  %v7554_v0 = vld [vmem:[#allocation42_spill] sm:$0xff] }
 0x2cb   : > { %4120 = vrot.lane.b32.xlu0 %v7539_v20, %s4699_s29  ;;  %v5961_v26 = vrot.slane %v3607_v50, %v5206_v37  ;;  %v5964_v47 = vrot.slane %v3456_v19, %v4894_v54  ;;  %v3504_v58 = vcombine.high %v3447_v35, %v3463_v63  ;;  %v3674_v44 = vcombine.high %v3622_v9, %v3654_v56 }
 0x2cc   : > { %v5971_v1 = vrot.slane %v3655_v40, %v5206_v37  ;;  %v5974_v46 = vrot.slane %v3408_v39, %v4894_v54  ;;  %v5977_v11 = vrot.slane %v3424_v27, %v4894_v54  ;;  %v3503_v50 = vcombine.low %v3447_v35, %v3463_v63 }
 0x2cd   : > { %7546 = vst [vmem:[#allocation61_spill] sm:$0xff] %v5961_v26  ;;  %v5966_v20 = vpop.permute.xlu0 %1053  ;;  %v5968_v33 = vpop.permute.xlu1 %1095  ;;  %v3672_v19 = vcombine.high %v5961_v26, %v5943_v13  ;;  %v3472_v32 = vcombine.high %v3415_v45, %v3431_v60  ;;  %v5982_v61 = vrot.slane %v3440_v8, %v4894_v54  ;;  %4028 = vrot.lane.b32.xlu1 %v3674_v44, %s4693_s21  ;;  %v7555_v26 = vld [vmem:[#allocation40_spill] sm:$0xff] }
 0x2ce   : > { %7547 = vst [vmem:[#allocation79_spill] sm:$0xff] %v5968_v33  ;;  %v5986_v14 = vrot.slane %v3623_v41, %v5206_v37  ;;  %v5989_v40 = vrot.slane %v2591_v12, %v4894_v54  ;;  %v5992_v39 = vrot.slane %v1367_v18, %v4894_v54  ;;  %v5995_v63 = vrot.slane %v2607_v7, %v4894_v54 }
 0x2cf   : > { %v3471_v27 = vcombine.low %v3415_v45, %v3431_v60  ;;  %3956 = vrot.lane.b32.xlu0 %v3672_v19, %s4695_s23  ;;  %v3519_v8 = vcombine.low %v5982_v61, %v5964_v47  ;;  %v3183_v44 = vcombine.low %v5771_v5, %v5932_v43  ;;  %v3518_v18 = vrot.slane %v3504_v58, %v5206_v37 }
 0x2d0   : > { %7548 = vst [vmem:[#allocation77_spill] sm:$0xff] %v5989_v40  ;;  %7549 = vst [vmem:[#allocation26_spill] sm:$0xff] %v5992_v39  ;;  %v3675_v41 = vcombine.low %v5986_v14, %v5971_v1  ;;  %v6010_v7 = vrot.slane %v1383_v31, %v4894_v54  ;;  %v3487_v45 = vcombine.low %v5974_v46, %v5977_v11 }
 0x2d1   : > { %7550 = vst [vmem:[#allocation24_spill] sm:$0xff] %v5995_v63  ;;  %v6004_v12 = vpop.permute.xlu0 %939  ;;  %v6006_v35 = vpop.permute.xlu1 %1047  ;;  %v3673_v60 = vcombine.low %v3622_v9, %v3654_v56  ;;  %v6015_v19 = vrot.slane %v3503_v50, %v5206_v37  ;;  %v3135_v13 = vcombine.low %v7555_v26, %v7554_v0  ;;  %v3486_v31 = vrot.slane %v3472_v32, %v5206_v37  ;;  %v7558_v9 = vld [vmem:[#allocation30_spill] sm:$0xff]  ;;  %v7559_v50 = vld [vmem:[#allocation28_spill] sm:$0xff] }
 0x2d2   : > { %7551 = vst [vmem:[#allocation27_spill] sm:$0xff] %v6004_v12  ;;  %7552 = vst [vmem:[#allocation25_spill] sm:$0xff] %v6006_v35  ;;  %v3167_v35 = vcombine.low %v5735_v3, %v5851_v62  ;;  %4064 = vrot.lane.b32.xlu1 %v3675_v41, %s4694_s22  ;;  %v3624_v56 = vcombine.high %v5898_v24, %v5901_v4  ;;  %v2319_v30 = vcombine.low %v7559_v50, %v7558_v9 }
 0x2d3   : > { %7553 = vst [vmem:[#allocation34_spill] sm:$0xff] %v6015_v19  ;;  %3992 = vrot.lane.b32.xlu0 %v3673_v60, %s4697_s27  ;;  %v6033_v21 = vrot.slane %v3471_v27, %v5206_v37  ;;  %v3656_v25 = vcombine.high %v5915_v57, %v5906_v49  ;;  %v6038_v41 = vrot.slane %v3183_v44, %v4894_v54  ;;  %v7562_v60 = vld [vmem:[#allocation31_spill] sm:$0xff]  ;;  %v7563_v27 = vld [vmem:[#allocation29_spill] sm:$0xff] }
 0x2d4   : > { %v3538_v32 = vcombine.high %v3486_v31, %v3518_v18  ;;  %v6045_v24 = vrot.slane %v3519_v8, %v5206_v37  ;;  %v2320_v4 = vcombine.high %v7559_v50, %v7558_v9  ;;  %v2335_v63 = vcombine.low %v7563_v27, %v7562_v60  ;;  %v7564_v50 = vld [vmem:[#allocation23_spill] sm:$0xff] }
 0x2d5   : > { %7560 = vst [vmem:[#allocation32_spill] sm:$0xff] %v6033_v21  ;;  %v6040_v38 = vpop.permute.xlu0 %1211  ;;  %v6042_v58 = vpop.permute.xlu1 %985  ;;  %v2336_v57 = vcombine.high %v7563_v27, %v7562_v60  ;;  %v3536_v49 = vcombine.high %v6033_v21, %v6015_v19  ;;  %v6056_v44 = vrot.slane %v3135_v13, %v4894_v54  ;;  %v6059_v40 = vrot.slane %v3151_v51, %v4894_v54 }
 0x2d6   : > { %7561 = vst [vmem:[#allocation35_spill] sm:$0xff] %v6042_v58  ;;  %v3175_v8 = vrot.slane %v3167_v35, %v4894_v54  ;;  %4026 = vrot.lane.b32.xlu1 %v3538_v32, %s4693_s21  ;;  %v6064_v9 = vrot.slane %v3487_v45, %v5206_v37  ;;  %v7565_v58 = vld [vmem:[#allocation19_spill] sm:$0xff]  ;;  %v3136_v60 = vcombine.high %v7555_v26, %v7554_v0 }
 0x2d7   : > { %v3152_v13 = vcombine.high %v7557_v53, %v7556_v29  ;;  %v3184_v51 = vcombine.high %v5771_v5, %v5932_v43  ;;  %3954 = vrot.lane.b32.xlu0 %v3536_v49, %s4695_s23  ;;  %v6076_v35 = vrot.slane %v2319_v30, %v4894_v54  ;;  %v3670_v0 = vrot.slane %v3656_v25, %v5206_v37 }
 0x2d8   : > { %v3232_v45 = vcombine.high %v3175_v8, %v6038_v41  ;;  %v3539_v32 = vcombine.low %v6064_v9, %v6045_v24  ;;  %v6087_v53 = vrot.slane %v2320_v4, %v4894_v54  ;;  %v6090_v43 = vrot.slane %v2335_v63, %v4894_v54  ;;  %v7570_v4 = vld [vmem:[#allocation38_spill] sm:$0xff]  ;;  %v7571_v63 = vld [vmem:[#allocation36_spill] sm:$0xff] }
 0x2d9   : > { %v6081_v27 = vpop.permute.xlu0 %1163  ;;  %v6083_v55 = vpop.permute.xlu1 %979  ;;  %v3168_v5 = vcombine.high %v5735_v3, %v5851_v62  ;;  %v3537_v29 = vcombine.low %v3486_v31, %v3518_v18  ;;  %v6095_v30 = vrot.slane %v2336_v57, %v4894_v54  ;;  %v3488_v26 = vcombine.high %v5974_v46, %v5977_v11 }
 0x2da   : > { %7566 = vst [vmem:[#allocation33_spill] sm:$0xff] %v6081_v27  ;;  %7567 = vst [vmem:[#allocation42_spill] sm:$0xff] %v6083_v55  ;;  %v3200_v49 = vcombine.high %v6056_v44, %v6059_v40  ;;  %4062 = vrot.lane.b32.xlu1 %v3539_v32, %s4694_s22  ;;  %v3638_v25 = vrot.slane %v3624_v56, %v5206_v37  ;;  %v2183_v21 = vcombine.low %v7571_v63, %v7570_v4  ;;  %v7577_v63 = vld [vmem:[#allocation37_spill] sm:$0xff]  ;;  %v7578_v55 = vld [vmem:[#allocation51_spill] sm:$0xff] }
 0x2db   : > { %7568 = vst [vmem:[#allocation40_spill] sm:$0xff] %v6087_v53  ;;  %7569 = vst [vmem:[#allocation43_spill] sm:$0xff] %v6095_v30  ;;  %v6106_v19 = vrot.slane %v3136_v60, %v4894_v54  ;;  %v6109_v3 = vrot.slane %v3152_v13, %v4894_v54  ;;  %v6112_v62 = vrot.slane %v3184_v51, %v4894_v54  ;;  %3990 = vrot.lane.b32.xlu0 %v3537_v29, %s4697_s27  ;;  %v7574_v60 = vld [vmem:[#allocation50_spill] sm:$0xff]  ;;  %v7575_v13 = vld [vmem:[#allocation48_spill] sm:$0xff] }
 0x2dc   : > { %v3520_v46 = vcombine.high %v5982_v61, %v5964_v47  ;;  %v3047_v11 = vcombine.low %v5788_v28, %v5966_v20  ;;  %v3678_v18 = vcombine.high %v3638_v25, %v3670_v0  ;;  %v6124_v57 = vrot.slane %v3232_v45, %v5206_v37  ;;  %v7576_v47 = vld [vmem:[#allocation39_spill] sm:$0xff] }
 0x2dd   : > { %v6119_v31 = vpop.permute.xlu0 %1099  ;;  %v6121_v56 = vpop.permute.xlu1 %941  ;;  %v2999_v51 = vcombine.low %v7575_v13, %v7574_v60  ;;  %v6129_v32 = vrot.slane %v3168_v5, %v4894_v54  ;;  %v3231_v29 = vcombine.low %v3175_v8, %v6038_v41  ;;  %v3676_v61 = vcombine.high %v5986_v14, %v5971_v1 }
 0x2de   : > { %7572 = vst [vmem:[#allocation41_spill] sm:$0xff] %v6119_v31  ;;  %7573 = vst [vmem:[#allocation30_spill] sm:$0xff] %v6121_v56  ;;  %v2199_v4 = vcombine.low %v7577_v63, %v7576_v47  ;;  %v7579_v31 = vld [vmem:[#allocation49_spill] sm:$0xff]  ;;  %v3031_v45 = vcombine.low %v5744_v36, %v5863_v22  ;;  %4172 = vrot.lane.b32.xlu1 %v3678_v18, %s4696_s26  ;;  %v6142_v27 = vrot.slane %v3200_v49, %v5206_v37 }
 0x2df   : > { %v3015_v56 = vcombine.low %v7579_v31, %v7578_v55  ;;  %v3199_v41 = vcombine.low %v6056_v44, %v6059_v40  ;;  %v3215_v1 = vcombine.low %v6106_v19, %v6109_v3  ;;  %v3247_v14 = vcombine.low %v6129_v32, %v6112_v62  ;;  %4100 = vrot.lane.b32.xlu0 %v3676_v61, %s4698_s28 }
 0x2e0   : > { %v6152_v8 = vrot.slane %v3488_v26, %v5206_v37  ;;  %v3048_v5 = vcombine.high %v5788_v28, %v5966_v20  ;;  %v6157_v49 = vrot.slane %v3047_v11, %v4894_v54  ;;  %v3266_v40 = vcombine.high %v6142_v27, %v6124_v57 }
 0x2e1   : > { %v6161_v44 = vpop.permute.xlu0 %1051  ;;  %v6163_v18 = vpop.permute.xlu1 %987  ;;  %v6166_v63 = vrot.slane %v3520_v46, %v5206_v37  ;;  %v3000_v26 = vcombine.high %v7575_v13, %v7574_v60  ;;  %v6171_v61 = vrot.slane %v2999_v51, %v4894_v54  ;;  %v3677_v28 = vcombine.low %v3638_v25, %v3670_v0  ;;  %v7586_v51 = vld [vmem:[#allocation46_spill] sm:$0xff] }
 0x2e2   : > { %7580 = vst [vmem:[#allocation28_spill] sm:$0xff] %v6161_v44  ;;  %7581 = vst [vmem:[#allocation31_spill] sm:$0xff] %v6163_v18  ;;  %v6174_v20 = vrot.slane %v3231_v29, %v5206_v37  ;;  %v3016_v11 = vcombine.high %v7579_v31, %v7578_v55  ;;  %v6179_v47 = vrot.slane %v3015_v56, %v4894_v54  ;;  %4022 = vrot.lane.b32.xlu1 %v3266_v40, %s4693_s21  ;;  %v7587_v29 = vld [vmem:[#allocation44_spill] sm:$0xff] }
 0x2e3   : > { %v3032_v46 = vcombine.high %v5744_v36, %v5863_v22  ;;  %v6184_v18 = vrot.slane %v3031_v45, %v4894_v54  ;;  %v2383_v0 = vcombine.low %v6076_v35, %v6090_v43  ;;  %v6190_v25 = vrot.slane %v2183_v21, %v4894_v54  ;;  %4136 = vrot.lane.b32.xlu0 %v3677_v28, %s4699_s29 }
 0x2e4   : > { %7582 = vst [vmem:[#allocation29_spill] sm:$0xff] %v6174_v20  ;;  %v6193_v60 = vrot.slane %v2199_v4, %v4894_v54  ;;  %v6197_v55 = vrot.slane %v3199_v41, %v5206_v37  ;;  %v6200_v36 = vrot.slane %v3048_v5, %v4894_v54  ;;  %v3542_v31 = vcombine.high %v6152_v8, %v6166_v63 }
 0x2e5   : > { %v3096_v22 = vcombine.high %v6184_v18, %v6157_v49  ;;  %v6206_v56 = vpop.permute.xlu0 %989  ;;  %v6208_v21 = vpop.permute.xlu1 %4024  ;;  %v6211_v4 = vrot.slane %v3247_v14, %v5206_v37  ;;  %v3216_v13 = vcombine.high %v6106_v19, %v6109_v3  ;;  %v1911_v45 = vcombine.low %v7587_v29, %v7586_v51 }
 0x2e6   : > { %7583 = vst [vmem:[#allocation50_spill] sm:$0xff] %v6197_v55  ;;  %7584 = vst [vmem:[#allocation48_spill] sm:$0xff] %v6206_v56  ;;  %v3264_v41 = vcombine.high %v6197_v55, %v6174_v20  ;;  %v6220_v5 = vrot.slane %v3215_v1, %v5206_v37  ;;  %v6223_v40 = vrot.slane %v3000_v26, %v4894_v54  ;;  %4170 = vrot.lane.b32.xlu1 %v3542_v31, %s4696_s26  ;;  %v7657_v55 = vld [vmem:[#allocation37_spill] sm:$0xff] }
 0x2e7   : > { %7585 = vst [vmem:[#allocation51_spill] sm:$0xff] %v6208_v21  ;;  %v6226_v28 = vrot.slane %v3016_v11, %v4894_v54  ;;  %v3064_v14 = vcombine.high %v6171_v61, %v6179_v47  ;;  %v6231_v19 = vrot.slane %v3032_v46, %v4894_v54  ;;  %v2384_v1 = vcombine.high %v6076_v35, %v6090_v43  ;;  %v7588_v21 = vld [vmem:[#allocation47_spill] sm:$0xff]  ;;  %v7589_v11 = vld [vmem:[#allocation45_spill] sm:$0xff] }
 0x2e8   : > { %v2399_v26 = vcombine.low %v6087_v53, %v6095_v30  ;;  %v1927_v29 = vcombine.low %v7589_v11, %v7588_v21  ;;  %3950 = vrot.lane.b32.xlu0 %v3264_v41, %s4695_s23  ;;  %v7590_v46 = vcombine.low %v7565_v58, %v7564_v50  ;;  %v3267_v35 = vcombine.low %v6220_v5, %v6211_v4  ;;  %v7594_v50 = vld [vmem:[#allocation52_spill] sm:$0xff] }
 0x2e9   : > { %v3111_v31 = vcombine.low %v6231_v19, %v6200_v36  ;;  %v6253_v43 = vpop.permute.xlu0 %3952  ;;  %v6255_v3 = vpop.permute.xlu1 %4060  ;;  %v6258_v11 = vrot.slane %v3096_v22, %v5206_v37  ;;  %v6263_v58 = vrot.slane %v1911_v45, %v4894_v54  ;;  %v3540_v53 = vcombine.high %v6064_v9, %v6045_v24 }
 0x2ea   : > { %v6247_v51 = vrot.slane %v7590_v46, %v4894_v54  ;;  %7591 = vst [vmem:[#allocation49_spill] sm:$0xff] %v6253_v43  ;;  %7592 = vst [vmem:[#allocation88_spill] sm:$0xff] %v6255_v3  ;;  %v7593_v46 = vld [vmem:[#allocation54_spill] sm:$0xff]  ;;  %v3079_v43 = vcombine.low %v6223_v40, %v6226_v28  ;;  %4058 = vrot.lane.b32.xlu1 %v3267_v35, %s4694_s22  ;;  %v6273_v22 = vrot.slane %v3064_v14, %v5206_v37 }
 0x2eb   : > { %v1775_v21 = vcombine.low %v7594_v50, %v7593_v46  ;;  %v6276_v3 = vrot.slane %v3216_v13, %v5206_v37  ;;  %v6279_v45 = vrot.slane %v2383_v0, %v5206_v37  ;;  %v6282_v41 = vrot.slane %v1927_v29, %v4894_v54  ;;  %v7596_v50 = vld [vmem:[#allocation55_spill] sm:$0xff]  ;;  %v7597_v46 = vld [vmem:[#allocation53_spill] sm:$0xff] }
 0x2ec   : > { %v1791_v24 = vcombine.low %v7597_v46, %v7596_v50  ;;  %4098 = vrot.lane.b32.xlu0 %v3540_v53, %s4698_s28  ;;  %v6288_v9 = vrot.slane %v2384_v1, %v5206_v37  ;;  %v6291_v14 = vrot.slane %v2399_v26, %v5206_v37  ;;  %v3248_v13 = vcombine.high %v6129_v32, %v6112_v62  ;;  %v7600_v50 = vld [vmem:[#allocation56_spill] sm:$0xff] }
 0x2ed   : > { %7595 = vst [vmem:[#allocation89_spill] sm:$0xff] %v6279_v45  ;;  %v2367_v0 = vcombine.low %v5818_v59, %v6040_v38  ;;  %v3130_v29 = vcombine.high %v6273_v22, %v6258_v11  ;;  %v6299_v35 = vpop.permute.xlu0 %3988  ;;  %v6301_v46 = vpop.permute.xlu1 %4168  ;;  %v6304_v53 = vrot.slane %v3111_v31, %v5206_v37  ;;  %v3063_v1 = vcombine.low %v6171_v61, %v6179_v47 }
 0x2ee   : > { %7598 = vst [vmem:[#allocation90_spill] sm:$0xff] %v6299_v35  ;;  %7599 = vst [vmem:[#allocation91_spill] sm:$0xff] %v6301_v46  ;;  %v6309_v26 = vrot.slane %v1775_v21, %v4894_v54  ;;  %v3095_v62 = vcombine.low %v6184_v18, %v6157_v49  ;;  %v3265_v32 = vcombine.low %v6142_v27, %v6124_v57  ;;  %v7601_v46 = vld [vmem:[#allocation20_spill] sm:$0xff]  ;;  %v7602_v49 = vld [vmem:[#allocation58_spill] sm:$0xff] }
 0x2ef   : > { %v3080_v35 = vcombine.high %v6223_v40, %v6226_v28  ;;  %v2727_v30 = vcombine.low %v7601_v46, %v7600_v50  ;;  %v2351_v31 = vcombine.low %v5773_v16, %v5908_v2  ;;  %4020 = vrot.lane.b32.xlu1 %v3130_v29, %s4693_s21  ;;  %v6323_v47 = vrot.slane %v3079_v43, %v5206_v37  ;;  %v7603_v18 = vld [vmem:[#allocation21_spill] sm:$0xff]  ;;  %v7605_v21 = vld [vmem:[#allocation22_spill] sm:$0xff] }
 0x2f0   : > { %v6326_v61 = vrot.slane %v1791_v24, %v4894_v54  ;;  %v1519_v27 = vcombine.low %v7603_v18, %v7602_v49  ;;  %v7604_v57 = vld [vmem:[#allocation57_spill] sm:$0xff]  ;;  %v1399_v28 = vcombine.low %v5724_v15, %v5812_v34  ;;  %3986 = vrot.lane.b32.xlu0 %v3265_v32, %s4697_s27  ;;  %v3112_v29 = vcombine.high %v6231_v19, %v6200_v36  ;;  %v7620_v50 = vld [vmem:[#allocation42_spill] sm:$0xff] }
 0x2f1   : > { %v2743_v40 = vcombine.low %v7605_v21, %v7604_v57  ;;  %v6338_v43 = vrot.slane %v2367_v0, %v4894_v54  ;;  %v3131_v24 = vcombine.low %v6323_v47, %v6304_v53  ;;  %v6342_v46 = vpop.permute.xlu0 %4096  ;;  %v6344_v18 = vpop.permute.xlu1 %4018  ;;  %v6347_v49 = vrot.slane %v3248_v13, %v5206_v37  ;;  %v7616_v21 = vld [vmem:[#allocation41_spill] sm:$0xff]  ;;  %v7619_v57 = vld [vmem:[#allocation31_spill] sm:$0xff] }
 0x2f2   : > { %7606 = vst [vmem:[#allocation92_spill] sm:$0xff] %v6342_v46  ;;  %7607 = vst [vmem:[#allocation93_spill] sm:$0xff] %v6344_v18  ;;  %v2215_v32 = vcombine.low %v5790_v6, %v5934_v23  ;;  %v3541_v36 = vcombine.low %v6152_v8, %v6166_v63  ;;  %v6356_v19 = vrot.slane %v3095_v62, %v5206_v37  ;;  %v7622_v6 = vld [vmem:[#allocation30_spill] sm:$0xff] }
 0x2f3   : > { %v6359_v0 = vrot.slane %v2727_v30, %v4894_v54  ;;  %v2359_v18 = vrot.slane %v2351_v31, %v4894_v54  ;;  %4056 = vrot.lane.b32.xlu1 %v3131_v24, %s4694_s22  ;;  %v6364_v13 = vrot.slane %v3063_v1, %v5206_v37  ;;  %v6367_v15 = vrot.slane %v3080_v35, %v5206_v37 }
 0x2f4   : > { %7608 = vst [vmem:[#allocation94_spill] sm:$0xff] %v6356_v19  ;;  %v6372_v63 = vrot.slane %v1519_v27, %v4894_v54  ;;  %v6375_v8 = vrot.slane %v2743_v40, %v4894_v54  ;;  %v6378_v30 = vrot.slane %v1399_v28, %v4894_v54  ;;  %4134 = vrot.lane.b32.xlu0 %v3541_v36, %s4699_s29 }
 0x2f5   : > { %7609 = vst [vmem:[#allocation95_spill] sm:$0xff] %v6364_v13  ;;  %v1535_v1 = vcombine.low %v5733_v42, %v5869_v17  ;;  %v2415_v35 = vcombine.low %v2359_v18, %v6338_v43  ;;  %v3270_v62 = vcombine.high %v6276_v3, %v6347_v49  ;;  %v6386_v31 = vpop.permute.xlu0 %4132  ;;  %v6388_v27 = vpop.permute.xlu1 %4054  ;;  %v6391_v40 = vrot.slane %v3112_v29, %v5206_v37  ;;  %v7614_v29 = vld [vmem:[#allocation33_spill] sm:$0xff]  ;;  %v7615_v42 = vld [vmem:[#allocation64_spill] sm:$0xff] }
 0x2f6   : > { %7610 = vst [vmem:[#allocation96_spill] sm:$0xff] %v6378_v30  ;;  %7611 = vst [vmem:[#allocation97_spill] sm:$0xff] %v6386_v31  ;;  %v2623_v28 = vcombine.low %v5757_v48, %v5886_v52  ;;  %v2352_v24 = vcombine.high %v5773_v16, %v5908_v2  ;;  %v6398_v36 = vrot.slane %v2215_v32, %v4894_v54  ;;  %v7617_v48 = vld [vmem:[#allocation76_spill] sm:$0xff]  ;;  %v7618_v2 = vld [vmem:[#allocation71_spill] sm:$0xff] }
 0x2f7   : > { %7612 = vst [vmem:[#allocation98_spill] sm:$0xff] %v6388_v27  ;;  %v3128_v46 = vcombine.high %v6364_v13, %v6356_v19  ;;  %v1943_v31 = vcombine.low %v5803_v10, %v5968_v33  ;;  %v7613_v27 = vld [vmem:[#allocation5_spill] sm:$0xff]  ;;  %v2231_v17 = vcombine.low %v7615_v42, %v7614_v29  ;;  %v1959_v52 = vcombine.low %v7617_v48, %v7616_v21  ;;  %v7621_v33 = vld [vmem:[#allocation72_spill] sm:$0xff]  ;;  %v7623_v48 = vld [vmem:[#allocation6_spill] sm:$0xff] }
 0x2f8   : > { %v1415_v34 = vcombine.low %v7613_v27, %v6004_v12  ;;  %4166 = vrot.lane.b32.xlu1 %v3270_v62, %s4696_s26  ;;  %v2368_v16 = vcombine.high %v5818_v59, %v6040_v38  ;;  %v1823_v32 = vcombine.low %v7618_v2, %v6161_v44  ;;  %v1551_v10 = vcombine.low %v7620_v50, %v7619_v57  ;;  %v7627_v50 = vld [vmem:[#allocation25_spill] sm:$0xff]  ;;  %v7628_v57 = vld [vmem:[#allocation60_spill] sm:$0xff]  ;;  %v7656_v13 = vld [vmem:[#allocation39_spill] sm:$0xff] }
 0x2f9   : > { %v2775_v27 = vcombine.low %v7621_v33, %v6206_v56  ;;  %3948 = vrot.lane.b32.xlu0 %v3128_v46, %s4695_s23  ;;  %v2416_v12 = vcombine.high %v2359_v18, %v6338_v43  ;;  %v2639_v21 = vcombine.low %v7623_v48, %v7622_v6  ;;  %v3134_v62 = vcombine.high %v6367_v15, %v6391_v40  ;;  %v6425_v59 = vpop.permute.xlu0 %3946  ;;  %v6427_v38 = vpop.permute.xlu1 %4162  ;;  %v7629_v56 = vld [vmem:[#allocation35_spill] sm:$0xff] }
 0x2fa   : > { %7624 = vst [vmem:[#allocation33_spill] sm:$0xff] %v6425_v59  ;;  %7625 = vst [vmem:[#allocation64_spill] sm:$0xff] %v6427_v38  ;;  %v6430_v2 = vrot.slane %v2415_v35, %v5206_v37  ;;  %v1807_v33 = vcombine.low %v7628_v57, %v7627_v50  ;;  %v7630_v46 = vld [vmem:[#allocation59_spill] sm:$0xff]  ;;  %v3129_v18 = vcombine.low %v6273_v22, %v6258_v11 }
 0x2fb   : > { %v2759_v44 = vcombine.low %v7630_v46, %v7629_v56  ;;  %v6441_v23 = vrot.slane %v1943_v31, %v4894_v54  ;;  %v6444_v38 = vrot.slane %v1415_v34, %v4894_v54  ;;  %v6447_v35 = vrot.slane %v2231_v17, %v4894_v54 }
 0x2fc   : > { %7626 = vst [vmem:[#allocation99_spill] sm:$0xff] %v6430_v2  ;;  %v6450_v59 = vrot.slane %v1959_v52, %v4894_v54  ;;  %4164 = vrot.lane.b32.xlu1 %v3134_v62, %s4696_s26  ;;  %v6454_v46 = vrot.slane %v2368_v16, %v4894_v54  ;;  %v6457_v11 = vrot.slane %v1823_v32, %v4894_v54 }
 0x2fd   : > { %7633 = vst [vmem:[#allocation25_spill] sm:$0xff] %v6444_v38  ;;  %v6460_v22 = vrot.slane %v1551_v10, %v4894_v54  ;;  %v6463_v34 = vrot.slane %v2775_v27, %v4894_v54  ;;  %3984 = vrot.lane.b32.xlu0 %v3129_v18, %s4697_s27  ;;  %v6467_v17 = vrot.slane %v2639_v21, %v4894_v54  ;;  %v6471_v31 = vpop.permute.xlu0 %3982  ;;  %v6473_v16 = vpop.permute.xlu1 %3700 }
 0x2fe   : > { %v2448_v52 = vcombine.high %v6279_v45, %v6430_v2  ;;  %7634 = vst [vmem:[#allocation60_spill] sm:$0xff] %v6471_v31  ;;  %7635 = vst [vmem:[#allocation35_spill] sm:$0xff] %v6473_v16  ;;  %v2430_v32 = vrot.slane %v2416_v12, %v5206_v37  ;;  %v6479_v27 = vrot.slane %v1535_v1, %v4894_v54  ;;  %v7655_v45 = vld [vmem:[#allocation36_spill] sm:$0xff] }
 0x2ff   : > { %v6482_v18 = vrot.slane %v1807_v33, %v4894_v54  ;;  %v6485_v21 = vrot.slane %v2759_v44, %v4894_v54  ;;  %v3268_v43 = vcombine.high %v6220_v5, %v6211_v4  ;;  %v6490_v31 = vrot.slane %v2623_v28, %v4894_v54 }
 0x300   : > { %v6493_v12 = vrot.slane %v2352_v24, %v4894_v54  ;;  %v2279_v6 = vcombine.low %v6398_v36, %v6447_v35  ;;  %v2007_v1 = vcombine.low %v6441_v23, %v6450_v59  ;;  %3704 = vrot.lane.b32.xlu1 %v2448_v52, %s4695_s23  ;;  %v1463_v33 = vcombine.low %v6378_v30, %v6444_v38 }
 0x301   : > { %7638 = vst [vmem:[#allocation100_spill] sm:$0xff] %v6490_v31  ;;  %v1871_v44 = vcombine.low %v6482_v18, %v6457_v11  ;;  %v1599_v4 = vcombine.low %v6479_v27, %v6460_v22  ;;  %v2823_v5 = vcombine.low %v6485_v21, %v6463_v34  ;;  %4094 = vrot.lane.b32.xlu0 %v3268_v43, %s4698_s28  ;;  %v6514_v16 = vpop.permute.xlu0 %4090  ;;  %v6516_v62 = vpop.permute.xlu1 %3736 }
 0x302   : > { %v2431_v28 = vcombine.low %v6493_v12, %v6454_v46  ;;  %v2687_v24 = vcombine.low %v6490_v31, %v6467_v17  ;;  %v2449_v52 = vcombine.low %v6288_v9, %v2430_v32  ;;  %7639 = vst [vmem:[#allocation101_spill] sm:$0xff] %v6514_v16  ;;  %7640 = vst [vmem:[#allocation102_spill] sm:$0xff] %v6516_v62 }
 0x303   : > { %v1567_v48 = vcombine.low %v6247_v51, %v6372_v63  ;;  %v2791_v43 = vcombine.low %v6359_v0, %v6375_v8  ;;  %v3269_v30 = vcombine.low %v6276_v3, %v6347_v49  ;;  %v7641_v38 = vcombine.low %v6190_v25, %v6193_v60 }
 0x304   : > { %3740 = vrot.lane.b32.xlu1 %v2449_v52, %s4697_s27  ;;  %v6534_v16 = vrot.slane %v2279_v6, %v5206_v37  ;;  %v7642_v10 = vcombine.low %v6263_v58, %v6282_v41  ;;  %v6543_v20 = vrot.slane %v2007_v1, %v5206_v37  ;;  %v7643_v49 = vcombine.low %v6309_v26, %v6326_v61 }
 0x305   : > { %v6530_v31 = vrot.slane %v7641_v38, %v5206_v37  ;;  %4130 = vrot.lane.b32.xlu0 %v3269_v30, %s4699_s29  ;;  %v6555_v38 = vrot.slane %v1871_v44, %v5206_v37  ;;  %v6561_v1 = vrot.slane %v1599_v4, %v5206_v37  ;;  %v2450_v52 = vcombine.high %v6288_v9, %v2430_v32  ;;  %v6564_v3 = vpop.permute.xlu0 %4126  ;;  %v6566_v30 = vpop.permute.xlu1 %3772 }
 0x306   : > { %v6540_v62 = vrot.slane %v7642_v10, %v5206_v37  ;;  %v6552_v6 = vrot.slane %v7643_v49, %v5206_v37  ;;  %v6558_v10 = vrot.slane %v2823_v5, %v5206_v37  ;;  %7644 = vst [vmem:[#allocation103_spill] sm:$0xff] %v6564_v3  ;;  %7645 = vst [vmem:[#allocation104_spill] sm:$0xff] %v6566_v30 }
 0x307   : > { %v2439_v19 = vrot.slane %v2431_v28, %v5206_v37  ;;  %v6570_v49 = vrot.slane %v2687_v24, %v5206_v37  ;;  %v6573_v44 = vrot.slane %v1463_v33, %v5206_v37  ;;  %v3132_v5 = vcombine.high %v6323_v47, %v6304_v53  ;;  %v7646_v28 = vld [vmem:[#allocation77_spill] sm:$0xff]  ;;  %v7647_v24 = vld [vmem:[#allocation24_spill] sm:$0xff] }
 0x308   : > { %v6578_v4 = vrot.slane %v2791_v43, %v5206_v37  ;;  %v6581_v9 = vrot.slane %v1567_v48, %v5206_v37  ;;  %3776 = vrot.lane.b32.xlu1 %v2450_v52, %s4693_s21  ;;  %v7648_v3 = vcombine.low %v7646_v28, %v7647_v24  ;;  %v7649_v53 = vcombine.low %v5992_v39, %v6010_v7  ;;  %v7653_v43 = vld [vmem:[#allocation40_spill] sm:$0xff]  ;;  %v7659_v39 = vld [vmem:[#allocation7_spill] sm:$0xff] }
 0x309   : > { %4092 = vrot.lane.b32.xlu0 %v3132_v5, %s4698_s28  ;;  %v2451_v30 = vcombine.low %v6291_v14, %v2439_v19  ;;  %v6612_v48 = vpop.permute.xlu0 %3808  ;;  %v6614_v2 = vpop.permute.xlu1 %3880  ;;  %v2280_v32 = vcombine.high %v6398_v36, %v6447_v35  ;;  %v2200_v52 = vcombine.high %v7657_v55, %v7656_v13  ;;  %v2312_v55 = vcombine.high %v6530_v31, %v6534_v16 }
 0x30a   : > { %v6590_v33 = vrot.slane %v7648_v3, %v5206_v37  ;;  %v6596_v47 = vrot.slane %v7649_v53, %v5206_v37  ;;  %v2432_v53 = vcombine.high %v6493_v12, %v6454_v46  ;;  %7650 = vst [vmem:[#allocation77_spill] sm:$0xff] %v6612_v48  ;;  %7651 = vst [vmem:[#allocation24_spill] sm:$0xff] %v6614_v2  ;;  %v7652_v12 = vld [vmem:[#allocation43_spill] sm:$0xff]  ;;  %v7654_v2 = vld [vmem:[#allocation38_spill] sm:$0xff] }
 0x30b   : > { %v2232_v3 = vcombine.high %v7615_v42, %v7614_v29  ;;  %v3133_v46 = vcombine.low %v6367_v15, %v6391_v40  ;;  %v2400_v48 = vcombine.high %v7653_v43, %v7652_v12  ;;  %v2184_v5 = vcombine.high %v7655_v45, %v7654_v2  ;;  %v7658_v29 = vld [vmem:[#allocation9_spill] sm:$0xff] }
 0x30c   : > { %3812 = vrot.lane.b32.xlu1 %v2451_v30, %s4694_s22  ;;  %v2248_v42 = vcombine.high %v6190_v25, %v6193_v60  ;;  %v2216_v36 = vcombine.high %v7659_v39, %v7658_v29  ;;  %v2452_v15 = vcombine.high %v6291_v14, %v2439_v19  ;;  %v2446_v30 = vrot.slane %v2432_v53, %v5206_v37 }
 0x30d   : > { %4128 = vrot.lane.b32.xlu0 %v3133_v46, %s4699_s29  ;;  %v6639_v40 = vpop.permute.xlu0 %3844  ;;  %v6641_v35 = vpop.permute.xlu1 %3916  ;;  %v2246_v45 = vrot.slane %v2232_v3, %v4894_v54  ;;  %v2294_v25 = vrot.slane %v2280_v32, %v5206_v37  ;;  %v2414_v39 = vrot.slane %v2400_v48, %v5206_v37  ;;  %v2198_v60 = vrot.slane %v2184_v5, %v4894_v54 }
 0x30e   : > { %v2214_v14 = vrot.slane %v2200_v52, %v4894_v54  ;;  %v2230_v19 = vrot.slane %v2216_v36, %v4894_v54  ;;  %v2262_v13 = vrot.slane %v2248_v42, %v5206_v37  ;;  %v2008_v2 = vcombine.high %v6441_v23, %v6450_v59 }
 0x30f   : > { %v2453_v43 = vcombine.low %v2414_v39, %v2446_v30  ;;  %v1976_v5 = vcombine.high %v6263_v58, %v6282_v41  ;;  %v2454_v12 = vcombine.high %v2414_v39, %v2446_v30 }
 0x310   : > { %3848 = vrot.lane.b32.xlu1 %v2452_v15, %s4698_s28  ;;  %v2295_v53 = vcombine.low %v2230_v19, %v2246_v45  ;;  %v2313_v48 = vcombine.low %v2262_v13, %v2294_v25  ;;  %v2263_v52 = vcombine.low %v2198_v60, %v2214_v14  ;;  %v2296_v46 = vcombine.high %v2230_v19, %v2246_v45  ;;  %v7666_v19 = vld [vmem:[#allocation41_spill] sm:$0xff] }
 0x311   : > { %3702 = vrot.lane.b32.xlu0 %v2312_v55, %s4695_s23  ;;  %v6657_v3 = vpop.permute.xlu0 %3694  ;;  %v6659_v32 = vpop.permute.xlu1 %3730  ;;  %v2022_v59 = vrot.slane %v2008_v2, %v5206_v37  ;;  %v2314_v29 = vcombine.high %v2262_v13, %v2294_v25  ;;  %v2264_v15 = vcombine.high %v2198_v60, %v2214_v14  ;;  %v1990_v58 = vrot.slane %v1976_v5, %v5206_v37  ;;  %v7667_v25 = vld [vmem:[#allocation76_spill] sm:$0xff]  ;;  %v7668_v60 = vld [vmem:[#allocation46_spill] sm:$0xff] }
 0x312   : > { %7660 = vst [vmem:[#allocation43_spill] sm:$0xff] %v6657_v3  ;;  %7661 = vst [vmem:[#allocation40_spill] sm:$0xff] %v6659_v32  ;;  %v2303_v36 = vrot.slane %v2295_v53, %v5206_v37  ;;  %v2271_v41 = vrot.slane %v2263_v52, %v5206_v37  ;;  %v2310_v39 = vrot.slane %v2296_v46, %v5206_v37  ;;  %v7669_v14 = vld [vmem:[#allocation44_spill] sm:$0xff]  ;;  %v7670_v53 = vld [vmem:[#allocation47_spill] sm:$0xff] }
 0x313   : > { %v2041_v45 = vcombine.low %v1990_v58, %v2022_v59  ;;  %v1960_v13 = vcombine.high %v7667_v25, %v7666_v19  ;;  %v2278_v52 = vrot.slane %v2264_v15, %v5206_v37  ;;  %v2040_v25 = vcombine.high %v6540_v62, %v6543_v20 }
 0x314   : > { %3884 = vrot.lane.b32.xlu1 %v2453_v43, %s4699_s29  ;;  %v2315_v2 = vcombine.low %v2271_v41, %v2303_v36  ;;  %v1912_v43 = vcombine.high %v7669_v14, %v7668_v60  ;;  %v7676_v14 = vld [vmem:[#allocation71_spill] sm:$0xff] }
 0x315   : > { %3738 = vrot.lane.b32.xlu0 %v2313_v48, %s4697_s27  ;;  %v6665_v42 = vpop.permute.xlu0 %3802  ;;  %v6667_v23 = vpop.permute.xlu1 %3766  ;;  %v7671_v48 = vld [vmem:[#allocation45_spill] sm:$0xff]  ;;  %v2317_v46 = vcombine.low %v2278_v52, %v2310_v39  ;;  %v1974_v19 = vrot.slane %v1960_v13, %v4894_v54  ;;  %v2042_v13 = vcombine.high %v1990_v58, %v2022_v59  ;;  %v7681_v59 = vld [vmem:[#allocation52_spill] sm:$0xff] }
 0x316   : > { %7662 = vst [vmem:[#allocation38_spill] sm:$0xff] %v6665_v42  ;;  %7663 = vst [vmem:[#allocation36_spill] sm:$0xff] %v6667_v23  ;;  %v1928_v5 = vcombine.high %v7671_v48, %v7670_v53  ;;  %v1926_v60 = vrot.slane %v1912_v43, %v4894_v54  ;;  %v1872_v48 = vcombine.high %v6482_v18, %v6457_v11  ;;  %v7677_v43 = vld [vmem:[#allocation70_spill] sm:$0xff] }
 0x317   : > { %v7680_v18 = vld [vmem:[#allocation54_spill] sm:$0xff] }
 0x318   : > { %3920 = vrot.lane.b32.xlu1 %v2454_v12, %s4696_s26  ;;  %v7672_v12 = vld [vmem:[#allocation79_spill] sm:$0xff]  ;;  %v1776_v58 = vcombine.high %v7681_v59, %v7680_v18 }
 0x319   : > { %3774 = vrot.lane.b32.xlu0 %v2314_v29, %s4693_s21  ;;  %v6675_v30 = vpop.permute.xlu0 %3838  ;;  %v6677_v55 = vpop.permute.xlu1 %3874  ;;  %v7673_v29 = vld [vmem:[#allocation73_spill] sm:$0xff] }
 0x31a   : > { %7664 = vst [vmem:[#allocation39_spill] sm:$0xff] %v6675_v30  ;;  %7665 = vst [vmem:[#allocation37_spill] sm:$0xff] %v6677_v55  ;;  %v1944_v30 = vcombine.high %v7673_v29, %v7672_v12 }
 0x31c   : > { %3734 = vrot.lane.b32.xlu1 %v2041_v45, %s4697_s27  ;;  %v1942_v45 = vrot.slane %v1928_v5, %v4894_v54  ;;  %v1958_v15 = vrot.slane %v1944_v30, %v4894_v54  ;;  %v7678_v5 = vld [vmem:[#allocation85_spill] sm:$0xff]  ;;  %v2316_v30 = vcombine.high %v2271_v41, %v2303_v36 }
 0x31d   : > { %3810 = vrot.lane.b32.xlu0 %v2315_v2, %s4694_s22  ;;  %v3941_v55 = vpop.permute.xlu0 %3940  ;;  %v6691_v42 = vpop.permute.xlu1 %3910  ;;  %v7675_v2 = vld [vmem:[#allocation28_spill] sm:$0xff]  ;;  %v7679_v23 = vcombine.low %v7677_v43, %v7678_v5  ;;  %v1808_v43 = vcombine.high %v7628_v57, %v7627_v50  ;;  %v7684_v36 = vld [vmem:[#allocation69_spill] sm:$0xff]  ;;  %v1886_v5 = vrot.slane %v1872_v48, %v5206_v37  ;;  %v1904_v50 = vcombine.high %v6552_v6, %v6555_v38 }
 0x31e   : > { %7674 = vst [vmem:[#allocation9_spill] sm:$0xff] %v6691_v42  ;;  %v1824_v53 = vcombine.high %v7676_v14, %v7675_v2  ;;  %v2023_v42 = vcombine.low %v1958_v15, %v1974_v19  ;;  %v1991_v32 = vcombine.low %v1926_v60, %v1942_v45  ;;  %v7682_v2 = vld [vmem:[#allocation55_spill] sm:$0xff]  ;;  %v7683_v14 = vld [vmem:[#allocation53_spill] sm:$0xff] }
 0x31f   : > { %v1792_v3 = vcombine.high %v7683_v14, %v7682_v2 }
 0x320   : > { %3882 = vrot.lane.b32.xlu1 %v2317_v46, %s4699_s29  ;;  %v2031_v57 = vrot.slane %v2023_v42, %v5206_v37  ;;  %v1999_v48 = vrot.slane %v1991_v32, %v5206_v37 }
 0x321   : > { %3698 = vrot.lane.b32.xlu0 %v2040_v25, %s4695_s23  ;;  %v3689_v12 = vpop.permute.xlu0 %3688  ;;  %v3725_v29 = vpop.permute.xlu1 %3724  ;;  %v1840_v25 = vcombine.high %v6309_v26, %v6326_v61  ;;  %v7685_v26 = vld [vmem:[#allocation81_spill] sm:$0xff] }
 0x322   : > { %v4184_v46 = vsel %vm4183_vm4, %v7679_v23, %v3689_v12  ;;  %v1838_v23 = vrot.slane %v1824_v53, %v4894_v54  ;;  %v7686_v61 = vcombine.low %v7684_v36, %v7685_v26  ;;  %v2043_v14 = vcombine.low %v1999_v48, %v2031_v57 }
 0x323   : > { %v4194_v11 = vsel %vm4193_vm5, %v4184_v46, %v3725_v29  ;;  %v1854_v53 = vrot.slane %v1840_v25, %v5206_v37  ;;  %v1992_v36 = vcombine.high %v1926_v60, %v1942_v45  ;;  %v1600_v45 = vcombine.high %v6479_v27, %v6460_v22 }
 0x324   : > { %3770 = vrot.lane.b32.xlu1 %v2042_v13, %s4693_s21  ;;  %v4253_v41 = vsel %vm4183_vm4, %v7686_v61, %v3941_v55  ;;  %v2318_v13 = vcombine.high %v2278_v52, %v2310_v39  ;;  %v1790_v55 = vrot.slane %v1776_v58, %v4894_v54  ;;  %v1806_v39 = vrot.slane %v1792_v3, %v4894_v54 }
 0x325   : > { %3846 = vrot.lane.b32.xlu0 %v2316_v30, %s4698_s28  ;;  %v3977_v12 = vpop.permute.xlu0 %3976  ;;  %v3761_v29 = vpop.permute.xlu1 %3760  ;;  %v1822_v52 = vrot.slane %v1808_v43, %v4894_v54  ;;  %v2024_v30 = vcombine.high %v1958_v15, %v1974_v19  ;;  %v1906_v3 = vcombine.high %v1854_v53, %v1886_v5  ;;  %v2044_v19 = vcombine.high %v1999_v48, %v2031_v57 }
 0x326   : > { %v4262_v46 = vsel %vm4193_vm5, %v4253_v41, %v3977_v12  ;;  %v4204_v18 = vsel %vm4203_vm6, %v4194_v11, %v3761_v29  ;;  %v1905_v11 = vcombine.low %v1854_v53, %v1886_v5  ;;  %v1855_v25 = vcombine.low %v1790_v55, %v1806_v39 }
 0x327   : > { %v1887_v2 = vcombine.low %v1822_v52, %v1838_v23  ;;  %v2038_v43 = vrot.slane %v2024_v30, %v5206_v37  ;;  %v2006_v26 = vrot.slane %v1992_v36, %v5206_v37  ;;  %v1568_v29 = vcombine.high %v6247_v51, %v6372_v63 }
 0x328   : > { %3918 = vrot.lane.b32.xlu1 %v2318_v13, %s4696_s26  ;;  %v1863_v60 = vrot.slane %v1855_v25, %v5206_v37  ;;  %v1888_v5 = vcombine.high %v1822_v52, %v1838_v23  ;;  %v1614_v57 = vrot.slane %v1600_v45, %v5206_v37  ;;  %v2856_v27 = vcombine.high %v6578_v4, %v6558_v10 }
 0x329   : > { %3696 = vrot.lane.b32.xlu0 %v1904_v50, %s4695_s23  ;;  %v4013_v59 = vpop.permute.xlu0 %4012  ;;  %v1895_v15 = vrot.slane %v1887_v2, %v5206_v37  ;;  %v2045_v61 = vcombine.low %v2006_v26, %v2038_v43  ;;  %v1582_v51 = vrot.slane %v1568_v29, %v5206_v37  ;;  %v2824_v63 = vcombine.high %v6485_v21, %v6463_v34  ;;  %v3869_v48 = vpop.permute.xlu1 %3868  ;;  %v7687_v21 = vld [vmem:[#allocation48_spill] sm:$0xff] }
 0x32a   : > { %v4271_v42 = vsel %vm4203_vm6, %v4262_v46, %v4013_v59  ;;  %v2046_v46 = vcombine.high %v2006_v26, %v2038_v43  ;;  %v1902_v52 = vrot.slane %v1888_v5, %v5206_v37  ;;  %v7688_v59 = vld [vmem:[#allocation72_spill] sm:$0xff]  ;;  %v7691_v43 = vld [vmem:[#allocation57_spill] sm:$0xff]  ;;  %v7693_v26 = vld [vmem:[#allocation59_spill] sm:$0xff] }
 0x32b   : > { %v1907_v12 = vcombine.low %v1863_v60, %v1895_v15  ;;  %v1633_v23 = vcombine.low %v1582_v51, %v1614_v57  ;;  %v2776_v2 = vcombine.high %v7688_v59, %v7687_v21  ;;  %v2838_v36 = vrot.slane %v2824_v63, %v5206_v37 }
 0x32c   : > { %3732 = vrot.lane.b32.xlu1 %v1905_v11, %s4697_s27  ;;  %v2760_v45 = vcombine.high %v7693_v26, %v7629_v56 }
 0x32d   : > { %3806 = vrot.lane.b32.xlu0 %v2043_v14, %s4694_s22  ;;  %v4049_v58 = vpop.permute.xlu0 %4048 }
 0x32e   : > { %v4280_v32 = vsel %vm4213_vm7, %v4271_v42, %v4049_v58 }
 0x330   : > { %3768 = vrot.lane.b32.xlu1 %v1906_v3, %s4693_s21  ;;  %v7690_v3 = vld [vmem:[#allocation20_spill] sm:$0xff] }
 0x331   : > { %3842 = vrot.lane.b32.xlu0 %v2044_v19, %s4698_s28  ;;  %v3797_v41 = vpop.permute.xlu0 %3796 }
 0x332   : > { %v4214_v13 = vsel %vm4213_vm7, %v4204_v18, %v3797_v41  ;;  %v1856_v18 = vcombine.high %v1790_v55, %v1806_v39  ;;  %v1632_v55 = vcombine.high %v6581_v9, %v6561_v1  ;;  %v2792_v39 = vcombine.high %v6359_v0, %v6375_v8  ;;  %v7689_v8 = vld [vmem:[#allocation56_spill] sm:$0xff] }
 0x333   : > { %v1908_v0 = vcombine.high %v1863_v60, %v1895_v15  ;;  %v2728_v58 = vcombine.high %v7690_v3, %v7689_v8  ;;  %v6792_v41 = vrot.slane %v2776_v2, %v4894_v54  ;;  %v7694_v60 = vld [vmem:[#allocation31_spill] sm:$0xff]  ;;  %v1634_v2 = vcombine.high %v1582_v51, %v1614_v57 }
 0x334   : > { %3878 = vrot.lane.b32.xlu1 %v2045_v61, %s4699_s29  ;;  %v1870_v11 = vrot.slane %v1856_v18, %v5206_v37  ;;  %v2806_v61 = vrot.slane %v2792_v39, %v5206_v37  ;;  %v7697_v18 = vld [vmem:[#allocation19_spill] sm:$0xff]  ;;  %v2720_v8 = vcombine.high %v6590_v33, %v6570_v49 }
 0x335   : > { %3804 = vrot.lane.b32.xlu0 %v1907_v12, %s4694_s22  ;;  %v4085_v50 = vpop.permute.xlu0 %4084  ;;  %v7695_v12 = vld [vmem:[#allocation42_spill] sm:$0xff] }
 0x336   : > { %v4289_v22 = vsel %vm4223_vm8, %v4280_v32, %v4085_v50  ;;  %v1909_v42 = vcombine.low %v1870_v11, %v1902_v52  ;;  %v7692_v32 = vld [vmem:[#allocation22_spill] sm:$0xff]  ;;  %v2858_v15 = vcombine.high %v2806_v61, %v2838_v36  ;;  %v1552_v29 = vcombine.high %v7695_v12, %v7694_v60 }
 0x337   : > { %v2744_v19 = vcombine.high %v7692_v32, %v7691_v43  ;;  %v6797_v50 = vrot.slane %v2728_v58, %v4894_v54  ;;  %v2656_v58 = vcombine.high %v7646_v28, %v7647_v24  ;;  %v7703_v43 = vld [vmem:[#allocation25_spill] sm:$0xff]  ;;  %v7704_v32 = vld [vmem:[#allocation96_spill] sm:$0xff]  ;;  %v7705_v12 = vld [vmem:[#allocation26_spill] sm:$0xff] }
 0x338   : > { %3914 = vrot.lane.b32.xlu1 %v2046_v46, %s4696_s26  ;;  %v2857_v46 = vcombine.low %v2806_v61, %v2838_v36  ;;  %v6818_v36 = vrot.slane %v1552_v29, %v4894_v54  ;;  %v1432_v29 = vcombine.high %v7705_v12, %v6010_v7  ;;  %v7708_v7 = vld [vmem:[#allocation16_spill] sm:$0xff] }
 0x339   : > { %3944 = vrot.lane.b32.xlu0 %v2856_v27, %s4695_s23  ;;  %v3833_v53 = vpop.permute.xlu0 %3832  ;;  %v6800_v56 = vrot.slane %v2744_v19, %v4894_v54  ;;  %v7696_v27 = vld [vmem:[#allocation23_spill] sm:$0xff]  ;;  %v1464_v19 = vcombine.high %v7704_v32, %v7703_v43  ;;  %v7714_v43 = vld [vmem:[#allocation14_spill] sm:$0xff] }
 0x33a   : > { %v4224_v30 = vsel %vm4223_vm8, %v4214_v13, %v3833_v53  ;;  %v1504_v63 = vcombine.high %v7697_v18, %v7696_v27  ;;  %v7699_v53 = vld [vmem:[#allocation21_spill] sm:$0xff]  ;;  %v7706_v27 = vld [vmem:[#allocation30_spill] sm:$0xff] }
 0x33b   : > { %v6773_v34 = vsel %vm4233_vm9, %v4224_v30, %v3869_v48  ;;  %v7700_v30 = vld [vmem:[#allocation8_spill] sm:$0xff]  ;;  %v2807_v3 = vcombine.low %v6797_v50, %v6800_v56  ;;  %v7707_v18 = vld [vmem:[#allocation6_spill] sm:$0xff] }
 0x33c   : > { %3728 = vrot.lane.b32.xlu1 %v1633_v23, %s4697_s27  ;;  %v7698_v23 = vld [vmem:[#allocation58_spill] sm:$0xff]  ;;  %v6828_v57 = vrot.slane %v1504_v63, %v4894_v54  ;;  %v2640_v63 = vcombine.high %v7707_v18, %v7706_v27  ;;  %v1446_v27 = vrot.slane %v1432_v29, %v5206_v37  ;;  %v7719_v29 = vld [vmem:[#allocation15_spill] sm:$0xff] }
 0x33d   : > { %3692 = vrot.lane.b32.xlu0 %v1632_v55, %s4695_s23  ;;  %v4121_v14 = vpop.permute.xlu0 %4120  ;;  %v1520_v48 = vcombine.high %v7699_v53, %v7698_v23  ;;  %v7701_v55 = vld [vmem:[#allocation4_spill] sm:$0xff] }
 0x33e   : > { %v6780_v25 = vsel %vm4233_vm9, %v4289_v22, %v4121_v14  ;;  %v6803_v22 = vrot.slane %v2760_v45, %v4894_v54  ;;  %v1536_v39 = vcombine.high %v7701_v55, %v7700_v30  ;;  %v1910_v45 = vcombine.high %v1870_v11, %v1902_v52  ;;  %v7709_v30 = vld [vmem:[#allocation12_spill] sm:$0xff] }
 0x33f   : > { %v4029_v13 = vpop.permute.xlu1 %4028  ;;  %v2670_v11 = vrot.slane %v2656_v58, %v5206_v37  ;;  %v2592_v55 = vcombine.high %v7709_v30, %v7708_v7  ;;  %v7713_v58 = vld [vmem:[#allocation18_spill] sm:$0xff]  ;;  %v6881_v18 = vrot.slane %v2640_v63, %v4894_v54  ;;  %v7717_v30 = vld [vmem:[#allocation27_spill] sm:$0xff] }
 0x340   : > { %3876 = vrot.lane.b32.xlu1 %v1909_v42, %s4699_s29  ;;  %v2839_v21 = vcombine.low %v6803_v22, %v6792_v41  ;;  %v7702_v42 = vld [vmem:[#allocation100_spill] sm:$0xff]  ;;  %v6834_v51 = vrot.slane %v1536_v39, %v4894_v54  ;;  %v7710_v39 = vld [vmem:[#allocation61_spill] sm:$0xff]  ;;  %v2608_v32 = vcombine.high %v7714_v43, %v7713_v58 }
 0x341   : > { %3840 = vrot.lane.b32.xlu0 %v1908_v0, %s4698_s28  ;;  %v3957_v5 = vpop.permute.xlu0 %3956  ;;  %v2688_v14 = vcombine.high %v7702_v42, %v6467_v17  ;;  %v6831_v17 = vrot.slane %v1520_v48, %v4894_v54  ;;  %v1478_v48 = vrot.slane %v1464_v19, %v5206_v37  ;;  %v7721_v43 = vld [vmem:[#allocation17_spill] sm:$0xff] }
 0x342   : > { %v2847_v61 = vrot.slane %v2839_v21, %v5206_v37  ;;  %v1615_v28 = vcombine.low %v6834_v51, %v6818_v36  ;;  %v7711_v21 = vld [vmem:[#allocation62_spill] sm:$0xff] }
 0x343   : > { %v2702_v60 = vrot.slane %v2688_v14, %v5206_v37  ;;  %v1583_v52 = vcombine.low %v6828_v57, %v6831_v17  ;;  %v1497_v7 = vcombine.low %v1446_v27, %v1478_v48 }
 0x344   : > { %4016 = vrot.lane.b32.xlu1 %v2858_v15, %s4693_s21  ;;  %v4065_v59 = vpop.permute.xlu1 %4064  ;;  %v1496_v15 = vcombine.high %v6596_v47, %v6573_v44 }
 0x345   : > { %3980 = vrot.lane.b32.xlu0 %v2857_v46, %s4697_s27  ;;  %v3993_v0 = vpop.permute.xlu0 %3992  ;;  %v2815_v46 = vrot.slane %v2807_v3, %v5206_v37  ;;  %v1623_v3 = vrot.slane %v1615_v28, %v5206_v37 }
 0x347   : > { %v2859_v53 = vcombine.low %v2815_v46, %v2847_v61 }
 0x348   : > { %3764 = vrot.lane.b32.xlu1 %v1634_v2, %s4693_s21  ;;  %v6839_v26 = vpop.permute.xlu1 %4026  ;;  %v7712_v2 = vcombine.low %v7710_v39, %v7711_v21  ;;  %v7718_v39 = vld [vmem:[#allocation5_spill] sm:$0xff] }
 0x349   : > { %3942 = vrot.lane.b32.xlu0 %v2720_v8, %s4695_s23  ;;  %v6844_v24 = vpop.permute.xlu0 %3954  ;;  %v2721_v8 = vcombine.low %v2670_v11, %v2702_v60  ;;  %v1416_v21 = vcombine.high %v7718_v39, %v7717_v30 }
 0x34a   : > { %v4261_v42 = vsel %vm4183_vm4, %v7712_v2, %v3957_v5  ;;  %v1591_v5 = vrot.slane %v1583_v52, %v5206_v37  ;;  %v6892_v52 = vrot.slane %v2608_v32, %v4894_v54 }
 0x34b   : > { %v4270_v19 = vsel %vm4193_vm5, %v4261_v42, %v3993_v0  ;;  %v7720_v42 = vld [vmem:[#allocation11_spill] sm:$0xff] }
 0x34c   : > { %3912 = vrot.lane.b32.xlu1 %v1910_v45, %s4696_s26  ;;  %v6859_v23 = vpop.permute.xlu1 %4062  ;;  %v7715_v45 = vld [vmem:[#allocation10_spill] sm:$0xff]  ;;  %v4279_v2 = vsel %vm4203_vm6, %v4270_v19, %v4029_v13  ;;  %v1635_v0 = vcombine.low %v1591_v5, %v1623_v3  ;;  %v7724_v19 = vld [vmem:[#allocation67_spill] sm:$0xff] }
 0x34d   : > { %3690 = vrot.lane.b32.xlu0 %v1496_v15, %s4695_s23  ;;  %v6868_v14 = vpop.permute.xlu0 %3990  ;;  %v7716_v15 = vld [vmem:[#allocation3_spill] sm:$0xff]  ;;  %v7723_v13 = vld [vmem:[#allocation74_spill] sm:$0xff]  ;;  %v4288_v39 = vsel %vm4213_vm7, %v4279_v2, %v4065_v59 }
 0x34e   : > { %v2624_v12 = vcombine.high %v7716_v15, %v7715_v45  ;;  %v7722_v45 = vld [vmem:[#allocation13_spill] sm:$0xff]  ;;  %v1400_v30 = vcombine.high %v7724_v19, %v7723_v13 }
 0x34f   : > { %v1384_v15 = vcombine.high %v7722_v45, %v7721_v43  ;;  %v2860_v45 = vcombine.high %v2815_v46, %v2847_v61  ;;  %v1616_v46 = vcombine.high %v6834_v51, %v6818_v36 }
 0x350   : > { %4052 = vrot.lane.b32.xlu1 %v2859_v53, %s4694_s22  ;;  %v4173_v28 = vpop.permute.xlu1 %4172  ;;  %v6887_v53 = vrot.slane %v2592_v55, %v4894_v54  ;;  %v6895_v63 = vrot.slane %v2624_v12, %v4894_v54  ;;  %v6907_v12 = vrot.slane %v1416_v21, %v4894_v54  ;;  %v1498_v21 = vcombine.high %v1446_v27, %v1478_v48 }
 0x351   : > { %3978 = vrot.lane.b32.xlu0 %v2721_v8, %s4697_s27  ;;  %v4101_v58 = vpop.permute.xlu0 %4100  ;;  %v1368_v8 = vcombine.high %v7720_v42, %v7719_v29  ;;  %v2722_v29 = vcombine.high %v2670_v11, %v2702_v60  ;;  %v6920_v60 = vrot.slane %v1384_v15, %v4894_v54  ;;  %v1636_v15 = vcombine.high %v1591_v5, %v1623_v3 }
 0x352   : > { %v2703_v55 = vcombine.low %v6895_v63, %v6881_v18  ;;  %v4297_v42 = vsel %vm4223_vm8, %v4288_v39, %v4101_v58  ;;  %v1630_v3 = vrot.slane %v1616_v46, %v5206_v37  ;;  %v7725_v39 = vld [vmem:[#allocation50_spill] sm:$0xff] }
 0x353   : > { %v6913_v13 = vrot.slane %v1368_v8, %v4894_v54 }
 0x354   : > { %3726 = vrot.lane.b32.xlu1 %v1497_v7, %s4697_s27  ;;  %v4023_v32 = vpop.permute.xlu1 %4022  ;;  %v2840_v7 = vcombine.high %v6803_v22, %v6792_v41  ;;  %v2808_v41 = vcombine.high %v6797_v50, %v6800_v56  ;;  %v1414_v22 = vrot.slane %v1400_v30, %v4894_v54  ;;  %v2711_v2 = vrot.slane %v2703_v55, %v5206_v37 }
 0x355   : > { %3800 = vrot.lane.b32.xlu0 %v1635_v0, %s4694_s22  ;;  %v4137_v43 = vpop.permute.xlu0 %4136  ;;  %v2671_v0 = vcombine.low %v6887_v53, %v6892_v52  ;;  %v1584_v54 = vcombine.high %v6828_v57, %v6831_v17  ;;  %v1447_v36 = vcombine.low %v6913_v13, %v6920_v60 }
 0x356   : > { %v4306_v59 = vsel %vm4233_vm9, %v4297_v42, %v4137_v43  ;;  %v1479_v58 = vcombine.low %v1414_v22, %v6907_v12  ;;  %v2854_v50 = vrot.slane %v2840_v7, %v5206_v37  ;;  %v2822_v51 = vrot.slane %v2808_v41, %v5206_v37 }
 0x357   : > { %v4315_v61 = vsel %vm4243_vm10, %v4306_v59, %v4173_v28  ;;  %v2679_v56 = vrot.slane %v2671_v0, %v5206_v37  ;;  %v1598_v17 = vrot.slane %v1584_v54, %v5206_v37  ;;  %v1455_v19 = vrot.slane %v1447_v36, %v5206_v37 }
 0x358   : > { %4014 = vrot.lane.b32.xlu1 %v2722_v29, %s4693_s21  ;;  %v6929_v11 = vpop.permute.xlu1 %4170  ;;  %4335 = vmatprep.subr.mxu0 %v4315_v61  ;;  %v2861_v28 = vcombine.low %v2822_v51, %v2854_v50  ;;  %v1487_v57 = vrot.slane %v1479_v58, %v5206_v37  ;;  %v7726_v29 = vld [vmem:[#allocation29_spill] sm:$0xff]  ;;  %v2704_v41 = vcombine.high %v6895_v63, %v6881_v18 }
 0x359   : > { %4088 = vrot.lane.b32.xlu0 %v2860_v45, %s4698_s28  ;;  %v2723_v27 = vcombine.low %v2679_v56, %v2711_v2  ;;  %v1637_v55 = vcombine.low %v1598_v17, %v1630_v3  ;;  %v7727_v7 = vcombine.low %v7725_v39, %v7726_v29  ;;  %v2724_v46 = vcombine.high %v2679_v56, %v2711_v2 }
 0x35a   : > { %v3951_v8 = vpop.permute.xlu0 %3950  ;;  %v1499_v45 = vcombine.low %v1455_v19, %v1487_v57  ;;  %v2862_v58 = vcombine.high %v2822_v51, %v2854_v50  ;;  %v1638_v54 = vcombine.high %v1598_v17, %v1630_v3  ;;  %v2718_v36 = vrot.slane %v2704_v41, %v5206_v37  ;;  %v7729_v50 = vld [vmem:[#allocation94_spill] sm:$0xff]  ;;  %v7732_v17 = vld [vmem:[#allocation87_spill] sm:$0xff] }
 0x35b   : > { %v4258_v42 = vsel %vm4183_vm4, %v7727_v7, %v3951_v8  ;;  %v2672_v8 = vcombine.high %v6887_v53, %v6892_v52  ;;  %v1500_v18 = vcombine.high %v1455_v19, %v1487_v57  ;;  %v1448_v63 = vcombine.high %v6913_v13, %v6920_v60  ;;  %v7731_v57 = vld [vmem:[#allocation82_spill] sm:$0xff] }
 0x35c   : > { %3762 = vrot.lane.b32.xlu1 %v1498_v21, %s4693_s21  ;;  %v6942_v48 = vpop.permute.xlu1 %4058  ;;  %v7733_v19 = vcombine.high %v7731_v57, %v7732_v17 }
 0x35d   : > { %3836 = vrot.lane.b32.xlu0 %v1636_v15, %s4698_s28  ;;  %v1480_v15 = vcombine.high %v1414_v22, %v6907_v12  ;;  %v2686_v53 = vrot.slane %v2672_v8, %v5206_v37  ;;  %v7728_v22 = vld [vmem:[#allocation95_spill] sm:$0xff]  ;;  %v1462_v60 = vrot.slane %v1448_v63, %v5206_v37 }
 0x35e   : > { %v6945_v5 = vpop.permute.xlu0 %4098  ;;  %v7730_v56 = vcombine.low %v7728_v22, %v7729_v50  ;;  %v7741_v22 = vld [vmem:[#allocation99_spill] sm:$0xff] }
 0x35f   : > { %v2725_v2 = vcombine.low %v2686_v53, %v2718_v36  ;;  %v1494_v12 = vrot.slane %v1480_v15, %v5206_v37 }
 0x360   : > { %4050 = vrot.lane.b32.xlu1 %v2723_v27, %s4694_s22 }
 0x361   : > { %4124 = vrot.lane.b32.xlu0 %v2861_v28, %s4699_s29  ;;  %v4021_v30 = vpop.permute.xlu1 %4020  ;;  %v1501_v39 = vcombine.low %v1462_v60, %v1494_v12 }
 0x362   : > { %v3987_v43 = vpop.permute.xlu0 %3986 }
 0x363   : > { %v4267_v0 = vsel %vm4193_vm5, %v4258_v42, %v3987_v43  ;;  %v2726_v43 = vcombine.high %v2686_v53, %v2718_v36  ;;  %v7738_v36 = vld [vmem:[#allocation86_spill] sm:$0xff] }
 0x364   : > { %3872 = vrot.lane.b32.xlu1 %v1637_v55, %s4699_s29  ;;  %v6959_v59 = vsel %vm4203_vm6, %v4267_v0, %v4023_v32 }
 0x365   : > { %3798 = vrot.lane.b32.xlu0 %v1499_v45, %s4694_s22  ;;  %v4057_v61 = vpop.permute.xlu1 %4056 }
 0x366   : > { %v4135_v21 = vpop.permute.xlu0 %4134 }
 0x368   : > { %4086 = vrot.lane.b32.xlu1 %v2724_v46, %s4698_s28 }
 0x369   : > { %4160 = vrot.lane.b32.xlu0 %v2862_v58, %s4696_s26  ;;  %v7735_v58 = vld [vmem:[#allocation34_spill] sm:$0xff] }
 0x36a   : > { %v6969_v32 = vpop.permute.xlu1 %4166 }
 0x36b   : > { %v3949_v27 = vpop.permute.xlu0 %3948 }
 0x36c   : > { %3908 = vrot.lane.b32.xlu1 %v1638_v54, %s4696_s26  ;;  %v4257_v51 = vsel %vm4183_vm4, %v7730_v56, %v3949_v27  ;;  %v7737_v54 = vld [vmem:[#allocation80_spill] sm:$0xff] }
 0x36d   : > { %3834 = vrot.lane.b32.xlu0 %v1500_v18, %s4698_s28  ;;  %v7739_v27 = vcombine.high %v7737_v54, %v7738_v36  ;;  %v7749_v36 = vld [vmem:[#allocation35_spill] sm:$0xff] }
 0x36e   : > { %v6977_v52 = vpop.permute.xlu1 %4164 }
 0x36f   : > { %v3985_v3 = vpop.permute.xlu0 %3984 }
 0x370   : > { %4122 = vrot.lane.b32.xlu1 %v2725_v2, %s4699_s29  ;;  %v4266_v13 = vsel %vm4193_vm5, %v4257_v51, %v3985_v3 }
 0x371   : > { %v4275_v28 = vsel %vm4203_vm6, %v4266_v13, %v4021_v30  ;;  %4156 = vrot.lane.b32.xlu0 %v7733_v19, %s4696_s26  ;;  %v1502_v30 = vcombine.high %v1462_v60, %v1494_v12  ;;  %v7740_v12 = vld [vmem:[#allocation89_spill] sm:$0xff] }
 0x372   : > { %v3705_v55 = vpop.permute.xlu1 %3704  ;;  %v6993_v29 = vsel %vm4213_vm7, %v4275_v28, %v4057_v61  ;;  %v7734_v61 = vld [vmem:[#allocation32_spill] sm:$0xff]  ;;  %v7742_v50 = vcombine.low %v7740_v12, %v7741_v22  ;;  %v7753_v12 = vld [vmem:[#allocation102_spill] sm:$0xff] }
 0x373   : > { %v4095_v7 = vpop.permute.xlu0 %4094  ;;  %v7736_v8 = vcombine.low %v7734_v61, %v7735_v58 }
 0x374   : > { %3870 = vrot.lane.b32.xlu1 %v1501_v39, %s4699_s29  ;;  %v4192_v56 = vsel %vm4183_vm4, %v7742_v50, %v3705_v55  ;;  %v7754_v50 = vcombine.low %v6530_v31, %v6534_v16 }
 0x375   : > { %v4260_v15 = vsel %vm4183_vm4, %v7736_v8, %v6844_v24  ;;  %v7748_v8 = vld [vmem:[#allocation51_spill] sm:$0xff] }
 0x376   : > { %v3741_v42 = vpop.permute.xlu1 %3740  ;;  %v4269_v18 = vsel %vm4193_vm5, %v4260_v15, %v6868_v14 }
 0x377   : > { %v4131_v45 = vpop.permute.xlu0 %4130  ;;  %v4278_v2 = vsel %vm4203_vm6, %v4269_v18, %v6839_v26  ;;  %v4202_v24 = vsel %vm4193_vm5, %v4192_v56, %v3741_v42  ;;  %v7743_v42 = vld [vmem:[#allocation49_spill] sm:$0xff]  ;;  %v7751_v18 = vld [vmem:[#allocation78_spill] sm:$0xff] }
 0x378   : > { %4158 = vrot.lane.b32.xlu1 %v2726_v43, %s4696_s26  ;;  %v4287_v3 = vsel %vm4213_vm7, %v4278_v2, %v6859_v23  ;;  %v7744_v43 = vld [vmem:[#allocation63_spill] sm:$0xff] }
 0x379   : > { %v4296_v14 = vsel %vm4223_vm8, %v4287_v3, %v6945_v5  ;;  %v7745_v5 = vld [vmem:[#allocation75_spill] sm:$0xff]  ;;  %v7756_v3 = vld [vmem:[#allocation104_spill] sm:$0xff] }
 0x37a   : > { %v3777_v37 = vpop.permute.xlu1 %3776  ;;  %v4305_v26 = vsel %vm4233_vm9, %v4296_v14, %v4135_v21 }
 0x37b   : > { %v6997_v0 = vpop.permute.xlu0 %4092  ;;  %v4212_v13 = vsel %vm4203_vm6, %v4202_v24, %v3777_v37  ;;  %v4314_v23 = vsel %vm4243_vm10, %v4305_v26, %v6929_v11  ;;  %v7746_v37 = vcombine.low %v7744_v43, %v7745_v5  ;;  %v7755_v24 = vld [vmem:[#allocation88_spill] sm:$0xff]  ;;  %v4285_v43 = vsel %vm4213_vm7, %v6959_v59, %v6942_v48 }
 0x37c   : > { %3906 = vrot.lane.b32.xlu1 %v1502_v30, %s4696_s26  ;;  %v7760_v5 = vld [vmem:[#allocation24_spill] sm:$0xff] }
 0x37d   : > { %v4259_v30 = vsel %vm4183_vm4, %v7746_v37, %v7743_v42  ;;  %v7759_v42 = vld [vmem:[#allocation97_spill] sm:$0xff]  ;;  %v4294_v37 = vsel %vm4223_vm8, %v4285_v43, %v4095_v7  ;;  %v7762_v7 = vcombine.low %v6540_v62, %v6543_v20  ;;  %v4293_v20 = vsel %vm4223_vm8, %v6993_v29, %v6997_v0 }
 0x37e   : > { %v3813_v41 = vpop.permute.xlu1 %3812 }
 0x37f   : > { %v7000_v46 = vpop.permute.xlu0 %4128  ;;  %v4222_v28 = vsel %vm4213_vm7, %v4212_v13, %v3813_v41  ;;  %v7747_v41 = vld [vmem:[#allocation90_spill] sm:$0xff] }
 0x380   : > { %3904 = vrot.lane.b32.xlu1 %v7739_v27, %s4696_s26  ;;  %v4268_v61 = vsel %vm4193_vm5, %v4259_v30, %v7747_v41  ;;  %v7750_v27 = vld [vmem:[#allocation65_spill] sm:$0xff]  ;;  %v4303_v41 = vsel %vm4233_vm9, %v4294_v37, %v4131_v45  ;;  %v4302_v62 = vsel %vm4233_vm9, %v4293_v20, %v7000_v46 }
 0x381   : > { %v4277_v15 = vsel %vm4203_vm6, %v4268_v61, %v7748_v8  ;;  %v7752_v11 = vcombine.low %v7750_v27, %v7751_v18  ;;  %v7761_v8 = vld [vmem:[#allocation91_spill] sm:$0xff] }
 0x382   : > { %v3849_v63 = vpop.permute.xlu1 %3848 }
 0x383   : > { %v3703_v53 = vpop.permute.xlu0 %3702  ;;  %v4232_v57 = vsel %vm4223_vm8, %v4222_v28, %v3849_v63  ;;  %v4190_v63 = vsel %vm4183_vm4, %v7752_v11, %v7749_v36  ;;  %v7757_v28 = vld [vmem:[#allocation77_spill] sm:$0xff] }
 0x384   : > { %v4200_v22 = vsel %vm4193_vm5, %v4190_v63, %v7753_v12  ;;  %v4191_v56 = vsel %vm4183_vm4, %v7754_v50, %v3703_v53  ;;  %v7758_v53 = vld [vmem:[#allocation92_spill] sm:$0xff] }
 0x385   : > { %v4210_v13 = vsel %vm4203_vm6, %v4200_v22, %v7756_v3 }
 0x386   : > { %v3885_v51 = vpop.permute.xlu1 %3884  ;;  %v4220_v26 = vsel %vm4213_vm7, %v4210_v13, %v7757_v28  ;;  %v7763_v13 = vld [vmem:[#allocation33_spill] sm:$0xff]  ;;  %v7765_v28 = vld [vmem:[#allocation83_spill] sm:$0xff] }
 0x387   : > { %v3739_v60 = vpop.permute.xlu0 %3738  ;;  %v4242_v17 = vsel %vm4233_vm9, %v4232_v57, %v3885_v51  ;;  %v4286_v51 = vsel %vm4213_vm7, %v4277_v15, %v7755_v24  ;;  %v4311_v24 = vsel %vm4243_vm10, %v4302_v62, %v6977_v52  ;;  %v7782_v62 = vld [vmem:[#allocation64_spill] sm:$0xff] }
 0x388   : > { %v4201_v14 = vsel %vm4193_vm5, %v4191_v56, %v3739_v60 }
 0x38a   : > { %v3921_v19 = vpop.permute.xlu1 %3920 }
 0x38b   : > { %v4252_v55 = vsel %vm4243_vm10, %v4242_v17, %v3921_v19  ;;  %v3775_v39 = vpop.permute.xlu0 %3774  ;;  %v4230_v19 = vsel %vm4223_vm8, %v4220_v26, %v6639_v40  ;;  %v7767_v26 = vld [vmem:[#allocation60_spill] sm:$0xff] }
 0x38c   : > { %4336 = vmatpush1.msra.mxu0 %v4252_v55  ;;  %v4211_v57 = vsel %vm4203_vm6, %v4201_v14, %v3775_v39  ;;  %v4295_v55 = vsel %vm4223_vm8, %v4286_v51, %v7758_v53  ;;  %v4240_v40 = vsel %vm4233_vm9, %v4230_v19, %v7760_v5  ;;  %v7764_v14 = vld [vmem:[#allocation66_spill] sm:$0xff]  ;;  %v7768_v19 = vld [vmem:[#allocation43_spill] sm:$0xff]  ;;  %v7774_v5 = vld [vmem:[#allocation40_spill] sm:$0xff] }
 0x38d   : > { %4337 = vmatprep.subr.mxu0 %v4314_v23  ;;  %v4304_v60 = vsel %vm4233_vm9, %v4295_v55, %v7759_v42  ;;  %v4250_v48 = vsel %vm4243_vm10, %v4240_v40, %v6641_v35  ;;  %v7766_v29 = vcombine.low %v7764_v14, %v7765_v28  ;;  %v7772_v55 = vcombine.low %v6552_v6, %v6555_v38  ;;  %v7773_v42 = vld [vmem:[#allocation93_spill] sm:$0xff] }
 0x38e   : > { %v3735_v21 = vpop.permute.xlu1 %3734  ;;  %v4313_v15 = vsel %vm4243_vm10, %v4304_v60, %v7761_v8 }
 0x38f   : > { %v3811_v58 = vpop.permute.xlu0 %3810  ;;  %v4256_v0 = vsel %vm4183_vm4, %v7766_v29, %v7763_v13 }
 0x390   : > { %v4221_v31 = vsel %vm4213_vm7, %v4211_v57, %v3811_v58  ;;  %v4265_v57 = vsel %vm4193_vm5, %v4256_v0, %v7767_v26 }
 0x391   : > { %v4274_v60 = vsel %vm4203_vm6, %v4265_v57, %v7773_v42 }
 0x392   : > { %v3883_v54 = vpop.permute.xlu1 %3882 }
 0x393   : > { %v3699_v2 = vpop.permute.xlu0 %3698 }
 0x394   : > { %v4189_v45 = vsel %vm4183_vm4, %v7762_v7, %v3699_v2 }
 0x395   : > { %v4199_v27 = vsel %vm4193_vm5, %v4189_v45, %v3735_v21  ;;  %v7778_v45 = vld [vmem:[#allocation38_spill] sm:$0xff] }
 0x396   : > { %v3771_v17 = vpop.permute.xlu1 %3770 }
 0x397   : > { %v3847_v16 = vpop.permute.xlu0 %3846  ;;  %v4209_v63 = vsel %vm4203_vm6, %v4199_v27, %v3771_v17 }
 0x398   : > { %v4231_v23 = vsel %vm4223_vm8, %v4221_v31, %v3847_v16  ;;  %v7769_v31 = vld [vmem:[#allocation68_spill] sm:$0xff] }
 0x399   : > { %v4241_v39 = vsel %vm4233_vm9, %v4231_v23, %v3883_v54  ;;  %v4312_v54 = vsel %vm4243_vm10, %v4303_v41, %v6969_v32  ;;  %v7770_v16 = vld [vmem:[#allocation84_spill] sm:$0xff] }
 0x39a   : > { %v3919_v30 = vpop.permute.xlu1 %3918  ;;  %v7771_v53 = vcombine.low %v7769_v31, %v7770_v16 }
 0x39b   : > { %v4251_v61 = vsel %vm4243_vm10, %v4241_v39, %v3919_v30  ;;  %v3697_v58 = vpop.permute.xlu0 %3696  ;;  %v7775_v30 = vld [vmem:[#allocation98_spill] sm:$0xff] }
 0x39c   : > { %4338 = vmatpush1.msra.mxu0 %v4251_v61  ;;  %v4187_v52 = vsel %vm4183_vm4, %v7771_v53, %v7768_v19  ;;  %v4188_v23 = vsel %vm4183_vm4, %v7772_v55, %v3697_v58  ;;  %v4283_v41 = vsel %vm4213_vm7, %v4274_v60, %v7775_v30  ;;  %v7776_v61 = vld [vmem:[#allocation36_spill] sm:$0xff]  ;;  %v7784_v19 = vcombine.low %v6578_v4, %v6558_v10 }
 0x39d   : > { %4339 = vmatprep.subr.mxu0 %v4313_v15  ;;  %v4197_v40 = vsel %vm4193_vm5, %v4187_v52, %v7774_v5  ;;  %v7785_v52 = vcombine.low %v6581_v9, %v6561_v1 }
 0x39e   : > { %v3733_v59 = vpop.permute.xlu1 %3732  ;;  %4340 = vmatpush1.msra.mxu0 %v4250_v48  ;;  %v4207_v8 = vsel %vm4203_vm6, %v4197_v40, %v7776_v61 }
 0x39f   : > { %4341 = vmatprep.subr.mxu0 %v4312_v54  ;;  %v3807_v36 = vpop.permute.xlu0 %3806  ;;  %v4198_v37 = vsel %vm4193_vm5, %v4188_v23, %v3733_v59  ;;  %v7777_v54 = vld [vmem:[#allocation101_spill] sm:$0xff]  ;;  %v4217_v59 = vsel %vm4213_vm7, %v4207_v8, %v7778_v45 }
 0x3a0   : > { %v4219_v35 = vsel %vm4213_vm7, %v4209_v63, %v3807_v36  ;;  %v4292_v7 = vsel %vm4223_vm8, %v4283_v41, %v7777_v54  ;;  %v7779_v36 = vld [vmem:[#allocation103_spill] sm:$0xff]  ;;  %v7786_v41 = vcombine.low %v6590_v33, %v6570_v49  ;;  %v7787_v54 = vcombine.low %v6596_v47, %v6573_v44 }
 0x3a1   : > { %v4301_v27 = vsel %vm4233_vm9, %v4292_v7, %v7779_v36 }
 0x3a2   : > { %v3769_v18 = vpop.permute.xlu1 %3768 }
 0x3a3   : > { %v3843_v11 = vpop.permute.xlu0 %3842  ;;  %v4208_v6 = vsel %vm4203_vm6, %v4198_v37, %v3769_v18 }
 0x3a4   : > { %v4229_v22 = vsel %vm4223_vm8, %v4219_v35, %v3843_v11  ;;  %v7780_v11 = vld [vmem:[#allocation39_spill] sm:$0xff] }
 0x3a5   : > { %v4227_v63 = vsel %vm4223_vm8, %v4217_v59, %v7780_v11 }
 0x3a6   : > { %v3879_v12 = vpop.permute.xlu1 %3878 }
 0x3a7   : > { %v3805_v50 = vpop.permute.xlu0 %3804  ;;  %v4239_v32 = vsel %vm4233_vm9, %v4229_v22, %v3879_v12 }
 0x3a8   : > { %v4218_v38 = vsel %vm4213_vm7, %v4208_v6, %v3805_v50  ;;  %v7781_v50 = vld [vmem:[#allocation37_spill] sm:$0xff] }
 0x3a9   : > { %v4237_v20 = vsel %vm4233_vm9, %v4227_v63, %v7781_v50 }
 0x3aa   : > { %v3915_v21 = vpop.permute.xlu1 %3914 }
 0x3ab   : > { %v4249_v2 = vsel %vm4243_vm10, %v4239_v32, %v3915_v21  ;;  %v3945_v56 = vpop.permute.xlu0 %3944  ;;  %v4310_v32 = vsel %vm4243_vm10, %v4301_v27, %v7782_v62  ;;  %v7783_v21 = vld [vmem:[#allocation9_spill] sm:$0xff] }
 0x3ac   : > { %4342 = vmatpush1.msra.mxu0 %v4249_v2  ;;  %v4247_v2 = vsel %vm4243_vm10, %v4237_v20, %v7783_v21  ;;  %v4255_v31 = vsel %vm4183_vm4, %v7784_v19, %v3945_v56 }
 0x3ad   : > { %4343 = vmatprep.subr.mxu0 %v4311_v24 }
 0x3ae   : > { %v3729_v51 = vpop.permute.xlu1 %3728 }
 0x3af   : > { %v3693_v3 = vpop.permute.xlu0 %3692 }
 0x3b0   : > { %v4186_v55 = vsel %vm4183_vm4, %v7785_v52, %v3693_v3 }
 0x3b1   : > { %v4196_v5 = vsel %vm4193_vm5, %v4186_v55, %v3729_v51 }
 0x3b2   : > { %v3877_v46 = vpop.permute.xlu1 %3876 }
 0x3b3   : > { %v3841_v17 = vpop.permute.xlu0 %3840 }
 0x3b4   : > { %v4228_v15 = vsel %vm4223_vm8, %v4218_v38, %v3841_v17 }
 0x3b5   : > { %v4238_v18 = vsel %vm4233_vm9, %v4228_v15, %v3877_v46 }
 0x3b6   : > { %v4017_v43 = vpop.permute.xlu1 %4016 }
 0x3b7   : > { %v3981_v39 = vpop.permute.xlu0 %3980 }
 0x3b8   : > { %v4264_v16 = vsel %vm4193_vm5, %v4255_v31, %v3981_v39 }
 0x3b9   : > { %v4273_v42 = vsel %vm4203_vm6, %v4264_v16, %v4017_v43 }
 0x3ba   : > { %v3765_v58 = vpop.permute.xlu1 %3764 }
 0x3bb   : > { %v3943_v48 = vpop.permute.xlu0 %3942  ;;  %v4206_v4 = vsel %vm4203_vm6, %v4196_v5, %v3765_v58 }
 0x3bc   : > { %v4254_v61 = vsel %vm4183_vm4, %v7786_v41, %v3943_v48 }
 0x3be   : > { %v3913_v35 = vpop.permute.xlu1 %3912 }
 0x3bf   : > { %v4248_v12 = vsel %vm4243_vm10, %v4238_v18, %v3913_v35  ;;  %v3691_v22 = vpop.permute.xlu0 %3690 }
 0x3c0   : > { %4344 = vmatpush1.msra.mxu0 %v4248_v12  ;;  %v4185_v7 = vsel %vm4183_vm4, %v7787_v54, %v3691_v22  ;;  %v4316_v22 = vld [vmem:[%s7209_s4] sm:$0xf] }
 0x3c1   : > { %4345 = vmatprep.subr.mxu0 %v4310_v32 }
 0x3c2   : > { %4346 = vmatpush1.msra.mxu0 %v4247_v2  ;;  %v4053_v24 = vpop.permute.xlu1 %4052 }
 0x3c3   : > { %v3979_v13 = vpop.permute.xlu0 %3978  ;;  %v4282_v60 = vsel %vm4213_vm7, %v4273_v42, %v4053_v24 }
 0x3c4   : > { %v4263_v8 = vsel %vm4193_vm5, %v4254_v61, %v3979_v13 }
 0x3c6   : > { %v3727_v14 = vpop.permute.xlu1 %3726 }
 0x3c7   : > { %v3801_v28 = vpop.permute.xlu0 %3800  ;;  %v4195_v59 = vsel %vm4193_vm5, %v4185_v7, %v3727_v14 }
 0x3c8   : > { %v4216_v37 = vsel %vm4213_vm7, %v4206_v4, %v3801_v28 }
 0x3ca   : > { %v4015_v29 = vpop.permute.xlu1 %4014 }
 0x3cb   : > { %v4089_v0 = vpop.permute.xlu0 %4088  ;;  %v4272_v38 = vsel %vm4203_vm6, %v4263_v8, %v4015_v29 }
 0x3cc   : > { %v4291_v40 = vsel %vm4223_vm8, %v4282_v60, %v4089_v0 }
 0x3ce   : > { %v3763_v46 = vpop.permute.xlu1 %3762 }
 0x3cf   : > { %v3837_v26 = vpop.permute.xlu0 %3836  ;;  %v4205_v48 = vsel %vm4203_vm6, %v4195_v59, %v3763_v46 }
 0x3d0   : > { %v4226_v9 = vsel %vm4223_vm8, %v4216_v37, %v3837_v26 }
 0x3d2   : > { %v4051_v57 = vpop.permute.xlu1 %4050 }
 0x3d3   : > { %v4125_v17 = vpop.permute.xlu0 %4124  ;;  %v4281_v15 = vsel %vm4213_vm7, %v4272_v38, %v4051_v57 }
 0x3d4   : > { %v4300_v56 = vsel %vm4233_vm9, %v4291_v40, %v4125_v17 }
 0x3d6   : > { %v3873_v53 = vpop.permute.xlu1 %3872 }
 0x3d7   : > { %v3799_v23 = vpop.permute.xlu0 %3798  ;;  %v4236_v3 = vsel %vm4233_vm9, %v4226_v9, %v3873_v53 }
 0x3d8   : > { %v4215_v27 = vsel %vm4213_vm7, %v4205_v48, %v3799_v23 }
 0x3da   : > { %v4087_v10 = vpop.permute.xlu1 %4086 }
 0x3db   : > { %v4161_v39 = vpop.permute.xlu0 %4160  ;;  %v4290_v45 = vsel %vm4223_vm8, %v4281_v15, %v4087_v10 }
 0x3dc   : > { %v4309_v1 = vsel %vm4243_vm10, %v4300_v56, %v4161_v39 }
 0x3dd   : > { %4347 = vmatprep.subr.mxu0 %v4309_v1 }
 0x3de   : > { %v3909_v43 = vpop.permute.xlu1 %3908 }
 0x3df   : > { %v4246_v51 = vsel %vm4243_vm10, %v4236_v3, %v3909_v43  ;;  %v3835_v58 = vpop.permute.xlu0 %3834 }
 0x3e0   : > { %4348 = vmatpush1.msra.mxu0 %v4246_v51  ;;  %v4225_v11 = vsel %vm4223_vm8, %v4215_v27, %v3835_v58 }
 0x3e2   : > { %v4123_v30 = vpop.permute.xlu1 %4122 }
 0x3e3   : > { %v4299_v49 = vsel %vm4233_vm9, %v4290_v45, %v4123_v30  ;;  %v4157_v44 = vpop.permute.xlu0 %4156 }
 0x3e4   : > { %v4307_v35 = vsel %vm4243_vm10, %v6780_v25, %v4157_v44 }
 0x3e6   : > { %v3871_v6 = vpop.permute.xlu1 %3870 }
 0x3e7   : > { %v4235_v47 = vsel %vm4233_vm9, %v4225_v11, %v3871_v6 }
 0x3ea   : > { %v4159_v33 = vpop.permute.xlu1 %4158 }
 0x3eb   : > { %v4308_v36 = vsel %vm4243_vm10, %v4299_v49, %v4159_v33 }
 0x3ec   : > { %4349 = vmatprep.subr.mxu0 %v4308_v36 }
 0x3ee   : > { %v3907_v63 = vpop.permute.xlu1 %3906 }
 0x3ef   : > { %v4245_v18 = vsel %vm4243_vm10, %v4235_v47, %v3907_v63 }
 0x3f0   : > { %4350 = vmatpush1.msra.mxu0 %v4245_v18 }
 0x3f1   : > { %4351 = vmatprep.subr.mxu0 %v4307_v35 }
 0x3f2   : > { %v3905_v12 = vpop.permute.xlu1 %3904 }
 0x3f3   : > { %v4244_v50 = vsel %vm4243_vm10, %v6773_v34, %v3905_v12 }
 0x3f4   : > { %4352 = vmatpush1.msra.mxu0 %v4244_v50 }
 0x3f5   : > { %4567 = vmatmul.mubr.msk.f32.vlgmr.msra.gmra.mxu0 %vm4317_vm11, %v4316_v22 }
 0x4b5   : > { %v4387_v20 = vpop.f32.mrf.mxu0 }
 0x4b6   : > { %v4405_v62 = vmul.f32 %v4387_v20, %v4387_v20  ;;  %v4398_v32 = vsel %vm4397_vm12, %v4387_v20, 0.0 }
 0x4b7   : > { %v4389_v25 = vpop.f32.mrf.mxu0 }
 0x4b8   : > { %v4394_v21 = vcombine.low %v4387_v20, %v4389_v25  ;;  %v4399_v2 = vsel %vm4397_vm12, %v4389_v25, 0.0  ;;  %v4406_v24 = vmul.f32 %v4389_v25, %v4389_v25  ;;  %v4407_v34 = vsel %vm4397_vm12, %v4405_v62, 0.0 }
 0x4b9   : > { %v4400_v13 = vadd.f32 %v4399_v2, %v4398_v32 }
 0x4ba   : > { %4396 = vst [vmem:[%s311_s12] sm:$0xff] %v4394_v21  ;;  %v4408_v14 = vsel %vm4397_vm12, %v4406_v24, 0.0 }
 0x4bb   : > { %4401 = vadd.xlane.f32.xlu0 %v4400_v13  ;;  %v4409_v28 = vadd.f32 %v4408_v14, %v4407_v34 }
 0x4bd   : > { %4410 = vadd.xlane.f32.xlu1 %v4409_v28 }
 0x544   : > { %v4402_v29 = vpop.xlane.xlu0 %4401 }
 0x545   : > { %4404 = vst.msk [vmem:[%s315_s16] sm:$0xf] %vm4403_vm13, %v4402_v29 }
 0x546   : > { %v4411_v0 = vpop.xlane.xlu1 %4410 }
 0x547   : > { %4412 = vst.msk [vmem:[%s319_s19] sm:$0xf] %vm4403_vm13, %v4411_v0 }
 0x548 PF: > { %s18_s24 = sadd.s32 1, %s4685_s24  }
 0x549   : > { %p15_p4 = scmp.ge.s32.totalorder %s18_s24, 4  }
 0x54b   :  { %17 = sbr.rel (!%p15_p4) target bundleno = 1 (0x1), region = 98 }

</bundles_post_ra>
